<compile_context>
chip_gen: v7x
topology: tpu7x:2x2x1
jax: 0.10.0
libtpu: 0.0.40
codegen_flags: <defaults>
</compile_context>

<pallas_src>
import numpy as np
import jax
import jax.numpy as jnp
from jax.experimental import pallas as pl
from jax.experimental.pallas import tpu as pltpu

EPS = 1e-5  # BatchNorm2d default eps


# ------------------------- in-kernel building blocks -------------------------
def _conv_band_relu(x, m_ref, b_ref, pad_ref, B, H):
    """'Same' conv + (BN-folded) bias + ReLU.

    x:       (B*H, W*Cin) activation, lane index = w*Cin + ci
    m_ref:   (k, W*Cin, W*Cout) banded weight matrices (one per kernel row dy)
    b_ref:   (1, W*Cout) bias (BN folded in), tiled over w
    pad_ref: (B, H+16, W*Cin) zero-bordered VMEM scratch (interior rows 8:8+H)
    returns  (B*H, W*Cout)
    """
    k, K, N = m_ref.shape
    p = k // 2
    pad_ref[:, 8:8 + H, :] = x.reshape(B, H, K)           # aligned interior store
    acc = jnp.zeros((B * H, N), jnp.float32)
    for dy in range(k):                                   # 3 or 5 lane-dense matmuls
        r0 = 8 - p + dy
        slab = pad_ref[:, r0:r0 + H, :].reshape(B * H, K)
        acc = acc + jnp.dot(slab, m_ref[dy], preferred_element_type=jnp.float32)
    return jnp.maximum(acc + b_ref[...], 0.0)


def _maxpool2x2(y, B, H):
    """2x2 max pool.  y: (B*H, 2*L) with lanes ordered [even-w | odd-w] blocks
    (set up by the preceding conv's permuted band matrix).  Returns
    (B*(H//2), L) in standard lane order w*C + c."""
    L = y.shape[1] // 2
    t = jnp.maximum(y[:, :L], y[:, L:])                   # pool over w (lane halves)
    t = t.reshape(B * H // 2, 2, L)                       # pair adjacent rows (h)
    return jnp.max(t, axis=1)                             # pool over h


def _affine_relu(y, s_ref, t_ref):
    """relu(BN(y)) for the residual branches (BN as per-channel affine)."""
    return jnp.maximum(y * s_ref[...] + t_ref[...], 0.0)


# ------------------------------ fused kernel ---------------------------------
def _backbone02_kernel(x_ref,
                       m1, b1, m2, b2, m3, b3, m6, b6, m7, b7, m8, b8, m9, b9,
                       s8, t8, s16, t16, wfc, bfc,
                       o_ref,
                       pad0, pad1, pad2):
    B = o_ref.shape[0]
    # Zero the padded scratch buffers once; convs only ever rewrite the interior,
    # so the border rows stay zero (= vertical 'same' padding).
    pad0[...] = jnp.zeros(pad0.shape, jnp.float32)
    pad1[...] = jnp.zeros(pad1.shape, jnp.float32)
    pad2[...] = jnp.zeros(pad2.shape, jnp.float32)

    # ---- stage 0: 32x32, 1 -> 8 channels (c1, 5x5) --------------------------
    x = x_ref[...]                                   # (B*32, 32)
    a1 = _conv_band_relu(x, m1, b1, pad0, B, 32)     # (B*32, 256) [even|odd w]
    p1 = _maxpool2x2(a1, B, 32)                      # (B*16, 128)

    # ---- stage 1: 16x16, 8 channels (residual blocks; c2/c3 reused) ---------
    a2 = _conv_band_relu(p1, m2, b2, pad1, B, 16)    # out2
    a3 = _conv_band_relu(a2, m3, b3, pad1, B, 16)    # out3 (pre-residual)
    a3 = _affine_relu(a3 + p1, s8, t8)               # out3
    a4 = _conv_band_relu(a3, m2, b2, pad1, B, 16)    # out4 (c2 reused)
    a5 = _conv_band_relu(a4, m3, b3, pad1, B, 16)    # out5 (c3 reused)
    a5 = _affine_relu(a5 + a3, s8, t8)               # out5
    a6 = _conv_band_relu(a5, m6, b6, pad1, B, 16)    # out6: (B*16, 256), 16ch
    p6 = _maxpool2x2(a6, B, 16)                      # (B*8, 128)

    # ---- stage 2: 8x8, 16 -> 32 channels -------------------------------------
    a7 = _conv_band_relu(p6, m7, b7, pad2, B, 8)     # out7
    a8 = _conv_band_relu(a7, m8, b8, pad2, B, 8)     # out8 (pre-residual)
    a8 = _affine_relu(a8 + p6, s16, t16)             # out8
    a9 = _conv_band_relu(a8, m9, b9, pad2, B, 8)     # out9: (B*8, 256), 32ch
    p9 = _maxpool2x2(a9, B, 8)                       # (B*4, 128), lane = w*32+c

    # ---- FC epilogue (output padded to 128 lanes; real logits in [:, :2]) ----
    f = p9.reshape(B, 4, 128)
    y = jnp.zeros((B, 128), jnp.float32)
    for h in range(4):
        y = y + jnp.dot(f[:, h, :], wfc[h], preferred_element_type=jnp.float32)
    o_ref[...] = jnp.maximum(y + bfc[...], 0.0)


# ------------------------------- wrapper --------------------------------------
def backbone02_forward(x_nchw, prep):
    """x_nchw: (B, 1, 32, 32) float; prep: output of prepare_params()."""
    B = x_nchw.shape[0]
    assert x_nchw.shape[1:] == (1, 32, 32), x_nchw.shape
    # Cin == 1, so NCHW flattens directly to rows=(b,h), lanes=w.
    x2d = x_nchw.astype(jnp.float32).reshape(B * 32, 32)
    out = pl.pallas_call(
        _backbone02_kernel,
        out_shape=jax.ShapeDtypeStruct((B, 128), jnp.float32),
        scratch_shapes=[
            pltpu.VMEM((B, 48, 32), jnp.float32),    # 32x32 stage (5x5 conv)
            pltpu.VMEM((B, 32, 128), jnp.float32),   # 16x16 stage
            pltpu.VMEM((B, 24, 128), jnp.float32),   # 8x8 stage
        ],
        compiler_params=pltpu.CompilerParams(vmem_limit_bytes=32 * 1024 * 1024),
    )(x2d, *prep)
    return out[:, :2]


# --------------------------- one-time param prep ------------------------------
def prepare_params(params):
    """Fold eval-mode BN into the convs, build per-dy banded conv matrices
    (lane-dense layout), tiled bias / BN vectors and the permuted+padded FC
    weight.  Host-side, run once."""
    def bn_affine(bn):
        g, b, m, v = (np.asarray(a, np.float32) for a in bn)
        s = g / np.sqrt(v + EPS)
        return s, b - m * s

    s8, t8 = bn_affine(params["bn8"])
    s16, t16 = bn_affine(params["bn16"])
    s32, t32 = bn_affine(params["bn32"])

    def band(conv, bn_st, W, permute_out):
        w, b = (np.asarray(a, np.float32) for a in conv)
        s, t = bn_st
        w_eff = w * s[:, None, None, None]       # fold BN scale into weights
        b_eff = b * s + t                        # fold BN shift into bias
        cout, cin, k, _ = w_eff.shape
        pd, W2 = k // 2, W // 2
        mats = np.zeros((k, W * cin, W * cout), np.float32)
        for dy in range(k):
            for dx in range(k):
                blk = w_eff[:, :, dy, dx].T      # (cin, cout)
                for wo in range(W):
                    wi = wo + dx - pd
                    if 0 <= wi < W:              # horizontal zero-pad folded in
                        base = ((wo % 2) * W2 + wo // 2) if permute_out else wo
                        mats[dy, wi * cin:(wi + 1) * cin,
                             base * cout:(base + 1) * cout] = blk
        bias = np.tile(b_eff, W).reshape(1, W * cout)
        return jnp.asarray(mats), jnp.asarray(bias)

    m1, b1 = band(params["c1"], (s8, t8), 32, True)     # feeds a pool
    m2, b2 = band(params["c2"], (s8, t8), 16, False)
    m3, b3 = band(params["c3"], (s8, t8), 16, False)
    m6, b6 = band(params["c6"], (s16, t16), 16, True)   # feeds a pool
    m7, b7 = band(params["c7"], (s16, t16), 8, False)
    m8, b8 = band(params["c8"], (s16, t16), 8, False)
    m9, b9 = band(params["c9"], (s32, t32), 8, True)    # feeds a pool

    s8t = jnp.asarray(np.tile(s8, 16).reshape(1, 128))
    t8t = jnp.asarray(np.tile(t8, 16).reshape(1, 128))
    s16t = jnp.asarray(np.tile(s16, 8).reshape(1, 128))
    t16t = jnp.asarray(np.tile(t16, 8).reshape(1, 128))

    # FC: PyTorch flatten order (c*16 + h*4 + w) -> kernel order (h*128 + w*32 + c),
    # padded from 2 to 128 output columns (lane-dense final store).
    w_fc, b_fc = (np.asarray(a, np.float32) for a in params["fc"])
    wf = w_fc.reshape(2, 32, 4, 4).transpose(2, 3, 1, 0).reshape(512, 2)
    wpad = np.zeros((512, 128), np.float32)
    wpad[:, :2] = wf
    bpad = np.zeros((1, 128), np.float32)
    bpad[0, :2] = b_fc
    wfc = jnp.asarray(wpad.reshape(4, 128, 128))
    bfc = jnp.asarray(bpad)

    return (m1, b1, m2, b2, m3, b3, m6, b6, m7, b7, m8, b8, m9, b9,
            s8t, t8t, s16t, t16t, wfc, bfc)


# ----------------------------- params / reference -----------------------------
def init_params(key):
    """Random parameters mirroring backbone02's modules (PyTorch layouts)."""
    def conv_init(k, cout, cin, ks):
        k1, k2 = jax.random.split(k)
        bound = 1.0 / np.sqrt(cin * ks * ks)
        w = jax.random.uniform(k1, (cout, cin, ks, ks), jnp.float32, -bound, bound)
        b = jax.random.uniform(k2, (cout,), jnp.float32, -bound, bound)
        return w, b

    def bn_init(k, c):
        k1, k2, k3, k4 = jax.random.split(k, 4)
        return (jax.random.uniform(k1, (c,), jnp.float32, 0.7, 1.3),   # gamma
                jax.random.uniform(k2, (c,), jnp.float32, -0.2, 0.2),  # beta
                jax.random.uniform(k3, (c,), jnp.float32, -0.2, 0.2),  # running_mean
                jax.random.uniform(k4, (c,), jnp.float32, 0.5, 1.5))   # running_var

    ks = jax.random.split(key, 12)
    params = {
        "c1": conv_init(ks[0], 8, 1, 5),
        "c2": conv_init(ks[1], 8, 8, 3),
        "c3": conv_init(ks[2], 8, 8, 3),
        "c6": conv_init(ks[3], 16, 8, 3),
        "c7": conv_init(ks[4], 16, 16, 3),
        "c8": conv_init(ks[5], 16, 16, 3),
        "c9": conv_init(ks[6], 32, 16, 3),
        "bn8": bn_init(ks[7], 8),
        "bn16": bn_init(ks[8], 16),
        "bn32": bn_init(ks[9], 32),
    }
    kf1, kf2 = jax.random.split(ks[10])
    bound = 1.0 / np.sqrt(32 * 4 * 4)
    params["fc"] = (
        jax.random.uniform(kf1, (2, 32 * 4 * 4), jnp.float32, -bound, bound),
        jax.random.uniform(kf2, (2,), jnp.float32, 0.0, 0.3),
    )
    return params


def ref_forward(x, params):
    """Pure-JAX/XLA reference mirroring backbone02.forward (NCHW, eval-mode BN)."""
    hi = jax.lax.Precision.HIGHEST
    r = lambda z: jnp.maximum(z, 0.0)

    def conv(z, cp, pad):
        w, b = cp
        y = jax.lax.conv_general_dilated(
            z, w, (1, 1), [(pad, pad), (pad, pad)],
            dimension_numbers=("NCHW", "OIHW", "NCHW"), precision=hi)
        return y + b[None, :, None, None]

    def bn(z, bnp):
        g, b, m, v = bnp
        s = g / jnp.sqrt(v + EPS)
        return z * s[None, :, None, None] + (b - m * s)[None, :, None, None]

    def pool(z):
        return jax.lax.reduce_window(z, -jnp.inf, jax.lax.max,
                                     (1, 1, 2, 2), (1, 1, 2, 2), "VALID")

    x = x.astype(jnp.float32)
    out1 = pool(r(bn(conv(x, params["c1"], 2), params["bn8"])))
    out2 = r(bn(conv(out1, params["c2"], 1), params["bn8"]))
    out3 = r(bn(conv(out2, params["c3"], 1), params["bn8"]))
    out3 = r(bn(out3 + out1, params["bn8"]))
    out4 = r(bn(conv(out3, params["c2"], 1), params["bn8"]))
    out5 = r(bn(conv(out4, params["c3"], 1), params["bn8"]))
    out5 = r(bn(out5 + out3, params["bn8"]))
    out6 = pool(r(bn(conv(out5, params["c6"], 1), params["bn16"])))
    out7 = r(bn(conv(out6, params["c7"], 1), params["bn16"]))
    out8 = r(bn(conv(out7, params["c8"], 1), params["bn16"]))
    out8 = r(bn(out8 + out6, params["bn16"]))
    out9 = pool(r(bn(conv(out8, params["c9"], 1), params["bn32"])))
    flat = out9.reshape(out9.shape[0], -1)
    w_fc, b_fc = params["fc"]
    return r(jnp.dot(flat, w_fc.T, precision=hi) + b_fc[None, :])


# ------------------------------------ main ------------------------------------
if __name__ == "__main__":
    root = jax.random.PRNGKey(0)
    kx, kp = jax.random.split(root)
    # input implied by the module: three 2x2 pools + fc(32*4*4) -> 32x32 input
    x = jax.random.normal(kx, (2, 1, 32, 32), jnp.float32)   # NCHW, like PyTorch
    params = init_params(kp)
    prep = prepare_params(params)                            # one-time host prep

    fwd = jax.jit(backbone02_forward)
    out = jax.block_until_ready(fwd(x, prep))
    ref = jax.block_until_ready(ref_forward(x, params))

    assert out.shape == (2, 2), out.shape
    out_np, ref_np = np.asarray(out), np.asarray(ref)
    if not np.allclose(out_np, ref_np, rtol=3e-2, atol=3e-3):
        diff = float(np.max(np.abs(out_np - ref_np)))
        raise AssertionError(f"kernel/reference mismatch, max|diff|={diff}")
    print("KERNEL_OK")
</pallas_src>

<mosaic_0001>
module attributes {stable_mosaic.version = 11 : i64} {
  func.func @_backbone02_kernel(%arg0: memref<64x32xf32, #tpu.memory_space<vmem>>, %arg1: memref<5x32x256xf32, #tpu.memory_space<vmem>>, %arg2: memref<1x256xf32, #tpu.memory_space<vmem>>, %arg3: memref<3x128x128xf32, #tpu.memory_space<vmem>>, %arg4: memref<1x128xf32, #tpu.memory_space<vmem>>, %arg5: memref<3x128x128xf32, #tpu.memory_space<vmem>>, %arg6: memref<1x128xf32, #tpu.memory_space<vmem>>, %arg7: memref<3x128x256xf32, #tpu.memory_space<vmem>>, %arg8: memref<1x256xf32, #tpu.memory_space<vmem>>, %arg9: memref<3x128x128xf32, #tpu.memory_space<vmem>>, %arg10: memref<1x128xf32, #tpu.memory_space<vmem>>, %arg11: memref<3x128x128xf32, #tpu.memory_space<vmem>>, %arg12: memref<1x128xf32, #tpu.memory_space<vmem>>, %arg13: memref<3x128x256xf32, #tpu.memory_space<vmem>>, %arg14: memref<1x256xf32, #tpu.memory_space<vmem>>, %arg15: memref<1x128xf32, #tpu.memory_space<vmem>>, %arg16: memref<1x128xf32, #tpu.memory_space<vmem>>, %arg17: memref<1x128xf32, #tpu.memory_space<vmem>>, %arg18: memref<1x128xf32, #tpu.memory_space<vmem>>, %arg19: memref<4x128x128xf32, #tpu.memory_space<vmem>>, %arg20: memref<1x128xf32, #tpu.memory_space<vmem>>, %arg21: memref<2x128xf32, #tpu.memory_space<vmem>>, %arg22: memref<2x48x32xf32, #tpu.memory_space<vmem>>, %arg23: memref<2x32x128xf32, #tpu.memory_space<vmem>>, %arg24: memref<2x24x128xf32, #tpu.memory_space<vmem>>) attributes {dimension_semantics = [], scalar_prefetch = 0 : i64, scratch_operands = 3 : i64, tpu.core_type = #tpu.core_type<tc>} {
    %cst = arith.constant 0.000000e+00 : f32
    %0 = vector.broadcast %cst : f32 to vector<2x48x32xf32>
    %c0 = arith.constant 0 : index
    %c0_0 = arith.constant 0 : index
    %c0_1 = arith.constant 0 : index
    %1 = vector.load %arg22[%c0, %c0_0, %c0_1] : memref<2x48x32xf32, #tpu.memory_space<vmem>>, vector<2x48x32xf32>
    tpu.vector_store %arg22[%c0, %c0_0, %c0_1], %0 {strides = array<i32>} : memref<2x48x32xf32, #tpu.memory_space<vmem>>, vector<2x48x32xf32>,
    %cst_2 = arith.constant 0.000000e+00 : f32
    %2 = vector.broadcast %cst_2 : f32 to vector<2x32x128xf32>
    %c0_3 = arith.constant 0 : index
    %c0_4 = arith.constant 0 : index
    %c0_5 = arith.constant 0 : index
    %3 = vector.load %arg23[%c0_3, %c0_4, %c0_5] : memref<2x32x128xf32, #tpu.memory_space<vmem>>, vector<2x32x128xf32>
    tpu.vector_store %arg23[%c0_3, %c0_4, %c0_5], %2 {strides = array<i32>} : memref<2x32x128xf32, #tpu.memory_space<vmem>>, vector<2x32x128xf32>,
    %cst_6 = arith.constant 0.000000e+00 : f32
    %4 = vector.broadcast %cst_6 : f32 to vector<2x24x128xf32>
    %c0_7 = arith.constant 0 : index
    %c0_8 = arith.constant 0 : index
    %c0_9 = arith.constant 0 : index
    %5 = vector.load %arg24[%c0_7, %c0_8, %c0_9] : memref<2x24x128xf32, #tpu.memory_space<vmem>>, vector<2x24x128xf32>
    tpu.vector_store %arg24[%c0_7, %c0_8, %c0_9], %4 {strides = array<i32>} : memref<2x24x128xf32, #tpu.memory_space<vmem>>, vector<2x24x128xf32>,
    %c0_10 = arith.constant 0 : index
    %c0_11 = arith.constant 0 : index
    %6 = vector.load %arg0[%c0_10, %c0_11] : memref<64x32xf32, #tpu.memory_space<vmem>>, vector<64x32xf32>
    %7 = vector.shape_cast %6 : vector<64x32xf32> to vector<2x32x32xf32>
    %c0_12 = arith.constant 0 : index
    %c8 = arith.constant 8 : index
    %c0_13 = arith.constant 0 : index
    %8 = vector.load %arg22[%c0_12, %c8, %c0_13] : memref<2x48x32xf32, #tpu.memory_space<vmem>>, vector<2x32x32xf32>
    tpu.vector_store %arg22[%c0_12, %c8, %c0_13], %7 {strides = array<i32>} : memref<2x48x32xf32, #tpu.memory_space<vmem>>, vector<2x32x32xf32>,
    %cst_14 = arith.constant 0.000000e+00 : f32
    %9 = vector.broadcast %cst_14 : f32 to vector<64x256xf32>
    %c0_15 = arith.constant 0 : index
    %c6 = arith.constant 6 : index
    %c0_16 = arith.constant 0 : index
    %10 = vector.load %arg22[%c0_15, %c6, %c0_16] : memref<2x48x32xf32, #tpu.memory_space<vmem>>, vector<2x32x32xf32>
    %11 = vector.shape_cast %10 : vector<2x32x32xf32> to vector<64x32xf32>
    %c0_17 = arith.constant 0 : index
    %c0_18 = arith.constant 0 : index
    %c0_19 = arith.constant 0 : index
    %12 = vector.load %arg1[%c0_17, %c0_18, %c0_19] : memref<5x32x256xf32, #tpu.memory_space<vmem>>, vector<1x32x256xf32>
    %13 = vector.shape_cast %12 : vector<1x32x256xf32> to vector<32x256xf32>
    %cst_20 = arith.constant dense<0.000000e+00> : vector<64x256xf32>
    %14 = tpu.matmul %11, %13, %cst_20 {dimension_numbers = #tpu.dot_dimension_numbers<[1], [0], [0], [1], [0, 0, 1, 1], [], []>} : vector<64x32xf32>, vector<32x256xf32>, vector<64x256xf32> -> vector<64x256xf32>
    %15 = arith.addf %9, %14 : vector<64x256xf32>
    %c0_21 = arith.constant 0 : index
    %c7 = arith.constant 7 : index
    %c0_22 = arith.constant 0 : index
    %16 = vector.load %arg22[%c0_21, %c7, %c0_22] : memref<2x48x32xf32, #tpu.memory_space<vmem>>, vector<2x32x32xf32>
    %17 = vector.shape_cast %16 : vector<2x32x32xf32> to vector<64x32xf32>
    %c1 = arith.constant 1 : index
    %c0_23 = arith.constant 0 : index
    %c0_24 = arith.constant 0 : index
    %18 = vector.load %arg1[%c1, %c0_23, %c0_24] : memref<5x32x256xf32, #tpu.memory_space<vmem>>, vector<1x32x256xf32>
    %19 = vector.shape_cast %18 : vector<1x32x256xf32> to vector<32x256xf32>
    %cst_25 = arith.constant dense<0.000000e+00> : vector<64x256xf32>
    %20 = tpu.matmul %17, %19, %cst_25 {dimension_numbers = #tpu.dot_dimension_numbers<[1], [0], [0], [1], [0, 0, 1, 1], [], []>} : vector<64x32xf32>, vector<32x256xf32>, vector<64x256xf32> -> vector<64x256xf32>
    %21 = arith.addf %15, %20 : vector<64x256xf32>
    %c0_26 = arith.constant 0 : index
    %c8_27 = arith.constant 8 : index
    %c0_28 = arith.constant 0 : index
    %22 = vector.load %arg22[%c0_26, %c8_27, %c0_28] : memref<2x48x32xf32, #tpu.memory_space<vmem>>, vector<2x32x32xf32>
    %23 = vector.shape_cast %22 : vector<2x32x32xf32> to vector<64x32xf32>
    %c2 = arith.constant 2 : index
    %c0_29 = arith.constant 0 : index
    %c0_30 = arith.constant 0 : index
    %24 = vector.load %arg1[%c2, %c0_29, %c0_30] : memref<5x32x256xf32, #tpu.memory_space<vmem>>, vector<1x32x256xf32>
    %25 = vector.shape_cast %24 : vector<1x32x256xf32> to vector<32x256xf32>
    %cst_31 = arith.constant dense<0.000000e+00> : vector<64x256xf32>
    %26 = tpu.matmul %23, %25, %cst_31 {dimension_numbers = #tpu.dot_dimension_numbers<[1], [0], [0], [1], [0, 0, 1, 1], [], []>} : vector<64x32xf32>, vector<32x256xf32>, vector<64x256xf32> -> vector<64x256xf32>
    %27 = arith.addf %21, %26 : vector<64x256xf32>
    %c0_32 = arith.constant 0 : index
    %c9 = arith.constant 9 : index
    %c0_33 = arith.constant 0 : index
    %28 = vector.load %arg22[%c0_32, %c9, %c0_33] : memref<2x48x32xf32, #tpu.memory_space<vmem>>, vector<2x32x32xf32>
    %29 = vector.shape_cast %28 : vector<2x32x32xf32> to vector<64x32xf32>
    %c3 = arith.constant 3 : index
    %c0_34 = arith.constant 0 : index
    %c0_35 = arith.constant 0 : index
    %30 = vector.load %arg1[%c3, %c0_34, %c0_35] : memref<5x32x256xf32, #tpu.memory_space<vmem>>, vector<1x32x256xf32>
    %31 = vector.shape_cast %30 : vector<1x32x256xf32> to vector<32x256xf32>
    %cst_36 = arith.constant dense<0.000000e+00> : vector<64x256xf32>
    %32 = tpu.matmul %29, %31, %cst_36 {dimension_numbers = #tpu.dot_dimension_numbers<[1], [0], [0], [1], [0, 0, 1, 1], [], []>} : vector<64x32xf32>, vector<32x256xf32>, vector<64x256xf32> -> vector<64x256xf32>
    %33 = arith.addf %27, %32 : vector<64x256xf32>
    %c0_37 = arith.constant 0 : index
    %c10 = arith.constant 10 : index
    %c0_38 = arith.constant 0 : index
    %34 = vector.load %arg22[%c0_37, %c10, %c0_38] : memref<2x48x32xf32, #tpu.memory_space<vmem>>, vector<2x32x32xf32>
    %35 = vector.shape_cast %34 : vector<2x32x32xf32> to vector<64x32xf32>
    %c4 = arith.constant 4 : index
    %c0_39 = arith.constant 0 : index
    %c0_40 = arith.constant 0 : index
    %36 = vector.load %arg1[%c4, %c0_39, %c0_40] : memref<5x32x256xf32, #tpu.memory_space<vmem>>, vector<1x32x256xf32>
    %37 = vector.shape_cast %36 : vector<1x32x256xf32> to vector<32x256xf32>
    %cst_41 = arith.constant dense<0.000000e+00> : vector<64x256xf32>
    %38 = tpu.matmul %35, %37, %cst_41 {dimension_numbers = #tpu.dot_dimension_numbers<[1], [0], [0], [1], [0, 0, 1, 1], [], []>} : vector<64x32xf32>, vector<32x256xf32>, vector<64x256xf32> -> vector<64x256xf32>
    %39 = arith.addf %33, %38 : vector<64x256xf32>
    %c0_42 = arith.constant 0 : index
    %c0_43 = arith.constant 0 : index
    %40 = vector.load %arg2[%c0_42, %c0_43] : memref<1x256xf32, #tpu.memory_space<vmem>>, vector<1x256xf32>
    %41 = vector.broadcast %40 : vector<1x256xf32> to vector<64x256xf32>
    %42 = arith.addf %39, %41 : vector<64x256xf32>
    %cst_44 = arith.constant 0.000000e+00 : f32
    %43 = vector.broadcast %cst_44 : f32 to vector<64x256xf32>
    %44 = arith.maximumf %42, %43 : vector<64x256xf32>
    %45 = vector.extract_strided_slice %44 {offsets = [0, 0], sizes = [64, 128], strides = [1, 1]} : vector<64x256xf32> to vector<64x128xf32>
    %46 = vector.extract_strided_slice %44 {offsets = [0, 128], sizes = [64, 128], strides = [1, 1]} : vector<64x256xf32> to vector<64x128xf32>
    %47 = arith.maximumf %45, %46 : vector<64x128xf32>
    %48 = vector.shape_cast %47 : vector<64x128xf32> to vector<32x2x128xf32>
    %cst_45 = arith.constant dense<0xFF800000> : vector<32x128xf32>
    %49 = vector.multi_reduction <maximumf>, %48, %cst_45 [1] : vector<32x2x128xf32> to vector<32x128xf32>
    %50 = vector.shape_cast %49 : vector<32x128xf32> to vector<2x16x128xf32>
    %c0_46 = arith.constant 0 : index
    %c8_47 = arith.constant 8 : index
    %c0_48 = arith.constant 0 : index
    %51 = vector.load %arg23[%c0_46, %c8_47, %c0_48] : memref<2x32x128xf32, #tpu.memory_space<vmem>>, vector<2x16x128xf32>
    tpu.vector_store %arg23[%c0_46, %c8_47, %c0_48], %50 {strides = array<i32>} : memref<2x32x128xf32, #tpu.memory_space<vmem>>, vector<2x16x128xf32>,
    %cst_49 = arith.constant 0.000000e+00 : f32
    %52 = vector.broadcast %cst_49 : f32 to vector<32x128xf32>
    %c0_50 = arith.constant 0 : index
    %c7_51 = arith.constant 7 : index
    %c0_52 = arith.constant 0 : index
    %53 = vector.load %arg23[%c0_50, %c7_51, %c0_52] : memref<2x32x128xf32, #tpu.memory_space<vmem>>, vector<2x16x128xf32>
    %54 = vector.shape_cast %53 : vector<2x16x128xf32> to vector<32x128xf32>
    %c0_53 = arith.constant 0 : index
    %c0_54 = arith.constant 0 : index
    %c0_55 = arith.constant 0 : index
    %55 = vector.load %arg3[%c0_53, %c0_54, %c0_55] : memref<3x128x128xf32, #tpu.memory_space<vmem>>, vector<1x128x128xf32>
    %56 = vector.shape_cast %55 : vector<1x128x128xf32> to vector<128x128xf32>
    %cst_56 = arith.constant dense<0.000000e+00> : vector<32x128xf32>
    %57 = tpu.matmul %54, %56, %cst_56 {dimension_numbers = #tpu.dot_dimension_numbers<[1], [0], [0], [1], [0, 0, 1, 1], [], []>} : vector<32x128xf32>, vector<128x128xf32>, vector<32x128xf32> -> vector<32x128xf32>
    %58 = arith.addf %52, %57 : vector<32x128xf32>
    %c0_57 = arith.constant 0 : index
    %c8_58 = arith.constant 8 : index
    %c0_59 = arith.constant 0 : index
    %59 = vector.load %arg23[%c0_57, %c8_58, %c0_59] : memref<2x32x128xf32, #tpu.memory_space<vmem>>, vector<2x16x128xf32>
    %60 = vector.shape_cast %59 : vector<2x16x128xf32> to vector<32x128xf32>
    %c1_60 = arith.constant 1 : index
    %c0_61 = arith.constant 0 : index
    %c0_62 = arith.constant 0 : index
    %61 = vector.load %arg3[%c1_60, %c0_61, %c0_62] : memref<3x128x128xf32, #tpu.memory_space<vmem>>, vector<1x128x128xf32>
    %62 = vector.shape_cast %61 : vector<1x128x128xf32> to vector<128x128xf32>
    %cst_63 = arith.constant dense<0.000000e+00> : vector<32x128xf32>
    %63 = tpu.matmul %60, %62, %cst_63 {dimension_numbers = #tpu.dot_dimension_numbers<[1], [0], [0], [1], [0, 0, 1, 1], [], []>} : vector<32x128xf32>, vector<128x128xf32>, vector<32x128xf32> -> vector<32x128xf32>
    %64 = arith.addf %58, %63 : vector<32x128xf32>
    %c0_64 = arith.constant 0 : index
    %c9_65 = arith.constant 9 : index
    %c0_66 = arith.constant 0 : index
    %65 = vector.load %arg23[%c0_64, %c9_65, %c0_66] : memref<2x32x128xf32, #tpu.memory_space<vmem>>, vector<2x16x128xf32>
    %66 = vector.shape_cast %65 : vector<2x16x128xf32> to vector<32x128xf32>
    %c2_67 = arith.constant 2 : index
    %c0_68 = arith.constant 0 : index
    %c0_69 = arith.constant 0 : index
    %67 = vector.load %arg3[%c2_67, %c0_68, %c0_69] : memref<3x128x128xf32, #tpu.memory_space<vmem>>, vector<1x128x128xf32>
    %68 = vector.shape_cast %67 : vector<1x128x128xf32> to vector<128x128xf32>
    %cst_70 = arith.constant dense<0.000000e+00> : vector<32x128xf32>
    %69 = tpu.matmul %66, %68, %cst_70 {dimension_numbers = #tpu.dot_dimension_numbers<[1], [0], [0], [1], [0, 0, 1, 1], [], []>} : vector<32x128xf32>, vector<128x128xf32>, vector<32x128xf32> -> vector<32x128xf32>
    %70 = arith.addf %64, %69 : vector<32x128xf32>
    %c0_71 = arith.constant 0 : index
    %c0_72 = arith.constant 0 : index
    %71 = vector.load %arg4[%c0_71, %c0_72] : memref<1x128xf32, #tpu.memory_space<vmem>>, vector<1x128xf32>
    %72 = vector.broadcast %71 : vector<1x128xf32> to vector<32x128xf32>
    %73 = arith.addf %70, %72 : vector<32x128xf32>
    %cst_73 = arith.constant 0.000000e+00 : f32
    %74 = vector.broadcast %cst_73 : f32 to vector<32x128xf32>
    %75 = arith.maximumf %73, %74 : vector<32x128xf32>
    %76 = vector.shape_cast %75 : vector<32x128xf32> to vector<2x16x128xf32>
    %c0_74 = arith.constant 0 : index
    %c8_75 = arith.constant 8 : index
    %c0_76 = arith.constant 0 : index
    %77 = vector.load %arg23[%c0_74, %c8_75, %c0_76] : memref<2x32x128xf32, #tpu.memory_space<vmem>>, vector<2x16x128xf32>
    tpu.vector_store %arg23[%c0_74, %c8_75, %c0_76], %76 {strides = array<i32>} : memref<2x32x128xf32, #tpu.memory_space<vmem>>, vector<2x16x128xf32>,
    %cst_77 = arith.constant 0.000000e+00 : f32
    %78 = vector.broadcast %cst_77 : f32 to vector<32x128xf32>
    %c0_78 = arith.constant 0 : index
    %c7_79 = arith.constant 7 : index
    %c0_80 = arith.constant 0 : index
    %79 = vector.load %arg23[%c0_78, %c7_79, %c0_80] : memref<2x32x128xf32, #tpu.memory_space<vmem>>, vector<2x16x128xf32>
    %80 = vector.shape_cast %79 : vector<2x16x128xf32> to vector<32x128xf32>
    %c0_81 = arith.constant 0 : index
    %c0_82 = arith.constant 0 : index
    %c0_83 = arith.constant 0 : index
    %81 = vector.load %arg5[%c0_81, %c0_82, %c0_83] : memref<3x128x128xf32, #tpu.memory_space<vmem>>, vector<1x128x128xf32>
    %82 = vector.shape_cast %81 : vector<1x128x128xf32> to vector<128x128xf32>
    %cst_84 = arith.constant dense<0.000000e+00> : vector<32x128xf32>
    %83 = tpu.matmul %80, %82, %cst_84 {dimension_numbers = #tpu.dot_dimension_numbers<[1], [0], [0], [1], [0, 0, 1, 1], [], []>} : vector<32x128xf32>, vector<128x128xf32>, vector<32x128xf32> -> vector<32x128xf32>
    %84 = arith.addf %78, %83 : vector<32x128xf32>
    %c0_85 = arith.constant 0 : index
    %c8_86 = arith.constant 8 : index
    %c0_87 = arith.constant 0 : index
    %85 = vector.load %arg23[%c0_85, %c8_86, %c0_87] : memref<2x32x128xf32, #tpu.memory_space<vmem>>, vector<2x16x128xf32>
    %86 = vector.shape_cast %85 : vector<2x16x128xf32> to vector<32x128xf32>
    %c1_88 = arith.constant 1 : index
    %c0_89 = arith.constant 0 : index
    %c0_90 = arith.constant 0 : index
    %87 = vector.load %arg5[%c1_88, %c0_89, %c0_90] : memref<3x128x128xf32, #tpu.memory_space<vmem>>, vector<1x128x128xf32>
    %88 = vector.shape_cast %87 : vector<1x128x128xf32> to vector<128x128xf32>
    %cst_91 = arith.constant dense<0.000000e+00> : vector<32x128xf32>
    %89 = tpu.matmul %86, %88, %cst_91 {dimension_numbers = #tpu.dot_dimension_numbers<[1], [0], [0], [1], [0, 0, 1, 1], [], []>} : vector<32x128xf32>, vector<128x128xf32>, vector<32x128xf32> -> vector<32x128xf32>
    %90 = arith.addf %84, %89 : vector<32x128xf32>
    %c0_92 = arith.constant 0 : index
    %c9_93 = arith.constant 9 : index
    %c0_94 = arith.constant 0 : index
    %91 = vector.load %arg23[%c0_92, %c9_93, %c0_94] : memref<2x32x128xf32, #tpu.memory_space<vmem>>, vector<2x16x128xf32>
    %92 = vector.shape_cast %91 : vector<2x16x128xf32> to vector<32x128xf32>
    %c2_95 = arith.constant 2 : index
    %c0_96 = arith.constant 0 : index
    %c0_97 = arith.constant 0 : index
    %93 = vector.load %arg5[%c2_95, %c0_96, %c0_97] : memref<3x128x128xf32, #tpu.memory_space<vmem>>, vector<1x128x128xf32>
    %94 = vector.shape_cast %93 : vector<1x128x128xf32> to vector<128x128xf32>
    %cst_98 = arith.constant dense<0.000000e+00> : vector<32x128xf32>
    %95 = tpu.matmul %92, %94, %cst_98 {dimension_numbers = #tpu.dot_dimension_numbers<[1], [0], [0], [1], [0, 0, 1, 1], [], []>} : vector<32x128xf32>, vector<128x128xf32>, vector<32x128xf32> -> vector<32x128xf32>
    %96 = arith.addf %90, %95 : vector<32x128xf32>
    %c0_99 = arith.constant 0 : index
    %c0_100 = arith.constant 0 : index
    %97 = vector.load %arg6[%c0_99, %c0_100] : memref<1x128xf32, #tpu.memory_space<vmem>>, vector<1x128xf32>
    %98 = vector.broadcast %97 : vector<1x128xf32> to vector<32x128xf32>
    %99 = arith.addf %96, %98 : vector<32x128xf32>
    %cst_101 = arith.constant 0.000000e+00 : f32
    %100 = vector.broadcast %cst_101 : f32 to vector<32x128xf32>
    %101 = arith.maximumf %99, %100 : vector<32x128xf32>
    %102 = arith.addf %101, %49 : vector<32x128xf32>
    %c0_102 = arith.constant 0 : index
    %c0_103 = arith.constant 0 : index
    %103 = vector.load %arg15[%c0_102, %c0_103] : memref<1x128xf32, #tpu.memory_space<vmem>>, vector<1x128xf32>
    %104 = vector.broadcast %103 : vector<1x128xf32> to vector<32x128xf32>
    %105 = arith.mulf %102, %104 : vector<32x128xf32>
    %c0_104 = arith.constant 0 : index
    %c0_105 = arith.constant 0 : index
    %106 = vector.load %arg16[%c0_104, %c0_105] : memref<1x128xf32, #tpu.memory_space<vmem>>, vector<1x128xf32>
    %107 = vector.broadcast %106 : vector<1x128xf32> to vector<32x128xf32>
    %108 = arith.addf %105, %107 : vector<32x128xf32>
    %cst_106 = arith.constant 0.000000e+00 : f32
    %109 = vector.broadcast %cst_106 : f32 to vector<32x128xf32>
    %110 = arith.maximumf %108, %109 : vector<32x128xf32>
    %111 = vector.shape_cast %110 : vector<32x128xf32> to vector<2x16x128xf32>
    %c0_107 = arith.constant 0 : index
    %c8_108 = arith.constant 8 : index
    %c0_109 = arith.constant 0 : index
    %112 = vector.load %arg23[%c0_107, %c8_108, %c0_109] : memref<2x32x128xf32, #tpu.memory_space<vmem>>, vector<2x16x128xf32>
    tpu.vector_store %arg23[%c0_107, %c8_108, %c0_109], %111 {strides = array<i32>} : memref<2x32x128xf32, #tpu.memory_space<vmem>>, vector<2x16x128xf32>,
    %cst_110 = arith.constant 0.000000e+00 : f32
    %113 = vector.broadcast %cst_110 : f32 to vector<32x128xf32>
    %c0_111 = arith.constant 0 : index
    %c7_112 = arith.constant 7 : index
    %c0_113 = arith.constant 0 : index
    %114 = vector.load %arg23[%c0_111, %c7_112, %c0_113] : memref<2x32x128xf32, #tpu.memory_space<vmem>>, vector<2x16x128xf32>
    %115 = vector.shape_cast %114 : vector<2x16x128xf32> to vector<32x128xf32>
    %c0_114 = arith.constant 0 : index
    %c0_115 = arith.constant 0 : index
    %c0_116 = arith.constant 0 : index
    %116 = vector.load %arg3[%c0_114, %c0_115, %c0_116] : memref<3x128x128xf32, #tpu.memory_space<vmem>>, vector<1x128x128xf32>
    %117 = vector.shape_cast %116 : vector<1x128x128xf32> to vector<128x128xf32>
    %cst_117 = arith.constant dense<0.000000e+00> : vector<32x128xf32>
    %118 = tpu.matmul %115, %117, %cst_117 {dimension_numbers = #tpu.dot_dimension_numbers<[1], [0], [0], [1], [0, 0, 1, 1], [], []>} : vector<32x128xf32>, vector<128x128xf32>, vector<32x128xf32> -> vector<32x128xf32>
    %119 = arith.addf %113, %118 : vector<32x128xf32>
    %c0_118 = arith.constant 0 : index
    %c8_119 = arith.constant 8 : index
    %c0_120 = arith.constant 0 : index
    %120 = vector.load %arg23[%c0_118, %c8_119, %c0_120] : memref<2x32x128xf32, #tpu.memory_space<vmem>>, vector<2x16x128xf32>
    %121 = vector.shape_cast %120 : vector<2x16x128xf32> to vector<32x128xf32>
    %c1_121 = arith.constant 1 : index
    %c0_122 = arith.constant 0 : index
    %c0_123 = arith.constant 0 : index
    %122 = vector.load %arg3[%c1_121, %c0_122, %c0_123] : memref<3x128x128xf32, #tpu.memory_space<vmem>>, vector<1x128x128xf32>
    %123 = vector.shape_cast %122 : vector<1x128x128xf32> to vector<128x128xf32>
    %cst_124 = arith.constant dense<0.000000e+00> : vector<32x128xf32>
    %124 = tpu.matmul %121, %123, %cst_124 {dimension_numbers = #tpu.dot_dimension_numbers<[1], [0], [0], [1], [0, 0, 1, 1], [], []>} : vector<32x128xf32>, vector<128x128xf32>, vector<32x128xf32> -> vector<32x128xf32>
    %125 = arith.addf %119, %124 : vector<32x128xf32>
    %c0_125 = arith.constant 0 : index
    %c9_126 = arith.constant 9 : index
    %c0_127 = arith.constant 0 : index
    %126 = vector.load %arg23[%c0_125, %c9_126, %c0_127] : memref<2x32x128xf32, #tpu.memory_space<vmem>>, vector<2x16x128xf32>
    %127 = vector.shape_cast %126 : vector<2x16x128xf32> to vector<32x128xf32>
    %c2_128 = arith.constant 2 : index
    %c0_129 = arith.constant 0 : index
    %c0_130 = arith.constant 0 : index
    %128 = vector.load %arg3[%c2_128, %c0_129, %c0_130] : memref<3x128x128xf32, #tpu.memory_space<vmem>>, vector<1x128x128xf32>
    %129 = vector.shape_cast %128 : vector<1x128x128xf32> to vector<128x128xf32>
    %cst_131 = arith.constant dense<0.000000e+00> : vector<32x128xf32>
    %130 = tpu.matmul %127, %129, %cst_131 {dimension_numbers = #tpu.dot_dimension_numbers<[1], [0], [0], [1], [0, 0, 1, 1], [], []>} : vector<32x128xf32>, vector<128x128xf32>, vector<32x128xf32> -> vector<32x128xf32>
    %131 = arith.addf %125, %130 : vector<32x128xf32>
    %c0_132 = arith.constant 0 : index
    %c0_133 = arith.constant 0 : index
    %132 = vector.load %arg4[%c0_132, %c0_133] : memref<1x128xf32, #tpu.memory_space<vmem>>, vector<1x128xf32>
    %133 = vector.broadcast %132 : vector<1x128xf32> to vector<32x128xf32>
    %134 = arith.addf %131, %133 : vector<32x128xf32>
    %cst_134 = arith.constant 0.000000e+00 : f32
    %135 = vector.broadcast %cst_134 : f32 to vector<32x128xf32>
    %136 = arith.maximumf %134, %135 : vector<32x128xf32>
    %137 = vector.shape_cast %136 : vector<32x128xf32> to vector<2x16x128xf32>
    %c0_135 = arith.constant 0 : index
    %c8_136 = arith.constant 8 : index
    %c0_137 = arith.constant 0 : index
    %138 = vector.load %arg23[%c0_135, %c8_136, %c0_137] : memref<2x32x128xf32, #tpu.memory_space<vmem>>, vector<2x16x128xf32>
    tpu.vector_store %arg23[%c0_135, %c8_136, %c0_137], %137 {strides = array<i32>} : memref<2x32x128xf32, #tpu.memory_space<vmem>>, vector<2x16x128xf32>,
    %cst_138 = arith.constant 0.000000e+00 : f32
    %139 = vector.broadcast %cst_138 : f32 to vector<32x128xf32>
    %c0_139 = arith.constant 0 : index
    %c7_140 = arith.constant 7 : index
    %c0_141 = arith.constant 0 : index
    %140 = vector.load %arg23[%c0_139, %c7_140, %c0_141] : memref<2x32x128xf32, #tpu.memory_space<vmem>>, vector<2x16x128xf32>
    %141 = vector.shape_cast %140 : vector<2x16x128xf32> to vector<32x128xf32>
    %c0_142 = arith.constant 0 : index
    %c0_143 = arith.constant 0 : index
    %c0_144 = arith.constant 0 : index
    %142 = vector.load %arg5[%c0_142, %c0_143, %c0_144] : memref<3x128x128xf32, #tpu.memory_space<vmem>>, vector<1x128x128xf32>
    %143 = vector.shape_cast %142 : vector<1x128x128xf32> to vector<128x128xf32>
    %cst_145 = arith.constant dense<0.000000e+00> : vector<32x128xf32>
    %144 = tpu.matmul %141, %143, %cst_145 {dimension_numbers = #tpu.dot_dimension_numbers<[1], [0], [0], [1], [0, 0, 1, 1], [], []>} : vector<32x128xf32>, vector<128x128xf32>, vector<32x128xf32> -> vector<32x128xf32>
    %145 = arith.addf %139, %144 : vector<32x128xf32>
    %c0_146 = arith.constant 0 : index
    %c8_147 = arith.constant 8 : index
    %c0_148 = arith.constant 0 : index
    %146 = vector.load %arg23[%c0_146, %c8_147, %c0_148] : memref<2x32x128xf32, #tpu.memory_space<vmem>>, vector<2x16x128xf32>
    %147 = vector.shape_cast %146 : vector<2x16x128xf32> to vector<32x128xf32>
    %c1_149 = arith.constant 1 : index
    %c0_150 = arith.constant 0 : index
    %c0_151 = arith.constant 0 : index
    %148 = vector.load %arg5[%c1_149, %c0_150, %c0_151] : memref<3x128x128xf32, #tpu.memory_space<vmem>>, vector<1x128x128xf32>
    %149 = vector.shape_cast %148 : vector<1x128x128xf32> to vector<128x128xf32>
    %cst_152 = arith.constant dense<0.000000e+00> : vector<32x128xf32>
    %150 = tpu.matmul %147, %149, %cst_152 {dimension_numbers = #tpu.dot_dimension_numbers<[1], [0], [0], [1], [0, 0, 1, 1], [], []>} : vector<32x128xf32>, vector<128x128xf32>, vector<32x128xf32> -> vector<32x128xf32>
    %151 = arith.addf %145, %150 : vector<32x128xf32>
    %c0_153 = arith.constant 0 : index
    %c9_154 = arith.constant 9 : index
    %c0_155 = arith.constant 0 : index
    %152 = vector.load %arg23[%c0_153, %c9_154, %c0_155] : memref<2x32x128xf32, #tpu.memory_space<vmem>>, vector<2x16x128xf32>
    %153 = vector.shape_cast %152 : vector<2x16x128xf32> to vector<32x128xf32>
    %c2_156 = arith.constant 2 : index
    %c0_157 = arith.constant 0 : index
    %c0_158 = arith.constant 0 : index
    %154 = vector.load %arg5[%c2_156, %c0_157, %c0_158] : memref<3x128x128xf32, #tpu.memory_space<vmem>>, vector<1x128x128xf32>
    %155 = vector.shape_cast %154 : vector<1x128x128xf32> to vector<128x128xf32>
    %cst_159 = arith.constant dense<0.000000e+00> : vector<32x128xf32>
    %156 = tpu.matmul %153, %155, %cst_159 {dimension_numbers = #tpu.dot_dimension_numbers<[1], [0], [0], [1], [0, 0, 1, 1], [], []>} : vector<32x128xf32>, vector<128x128xf32>, vector<32x128xf32> -> vector<32x128xf32>
    %157 = arith.addf %151, %156 : vector<32x128xf32>
    %c0_160 = arith.constant 0 : index
    %c0_161 = arith.constant 0 : index
    %158 = vector.load %arg6[%c0_160, %c0_161] : memref<1x128xf32, #tpu.memory_space<vmem>>, vector<1x128xf32>
    %159 = vector.broadcast %158 : vector<1x128xf32> to vector<32x128xf32>
    %160 = arith.addf %157, %159 : vector<32x128xf32>
    %cst_162 = arith.constant 0.000000e+00 : f32
    %161 = vector.broadcast %cst_162 : f32 to vector<32x128xf32>
    %162 = arith.maximumf %160, %161 : vector<32x128xf32>
    %163 = arith.addf %162, %110 : vector<32x128xf32>
    %c0_163 = arith.constant 0 : index
    %c0_164 = arith.constant 0 : index
    %164 = vector.load %arg15[%c0_163, %c0_164] : memref<1x128xf32, #tpu.memory_space<vmem>>, vector<1x128xf32>
    %165 = vector.broadcast %164 : vector<1x128xf32> to vector<32x128xf32>
    %166 = arith.mulf %163, %165 : vector<32x128xf32>
    %c0_165 = arith.constant 0 : index
    %c0_166 = arith.constant 0 : index
    %167 = vector.load %arg16[%c0_165, %c0_166] : memref<1x128xf32, #tpu.memory_space<vmem>>, vector<1x128xf32>
    %168 = vector.broadcast %167 : vector<1x128xf32> to vector<32x128xf32>
    %169 = arith.addf %166, %168 : vector<32x128xf32>
    %cst_167 = arith.constant 0.000000e+00 : f32
    %170 = vector.broadcast %cst_167 : f32 to vector<32x128xf32>
    %171 = arith.maximumf %169, %170 : vector<32x128xf32>
    %172 = vector.shape_cast %171 : vector<32x128xf32> to vector<2x16x128xf32>
    %c0_168 = arith.constant 0 : index
    %c8_169 = arith.constant 8 : index
    %c0_170 = arith.constant 0 : index
    %173 = vector.load %arg23[%c0_168, %c8_169, %c0_170] : memref<2x32x128xf32, #tpu.memory_space<vmem>>, vector<2x16x128xf32>
    tpu.vector_store %arg23[%c0_168, %c8_169, %c0_170], %172 {strides = array<i32>} : memref<2x32x128xf32, #tpu.memory_space<vmem>>, vector<2x16x128xf32>,
    %cst_171 = arith.constant 0.000000e+00 : f32
    %174 = vector.broadcast %cst_171 : f32 to vector<32x256xf32>
    %c0_172 = arith.constant 0 : index
    %c7_173 = arith.constant 7 : index
    %c0_174 = arith.constant 0 : index
    %175 = vector.load %arg23[%c0_172, %c7_173, %c0_174] : memref<2x32x128xf32, #tpu.memory_space<vmem>>, vector<2x16x128xf32>
    %176 = vector.shape_cast %175 : vector<2x16x128xf32> to vector<32x128xf32>
    %c0_175 = arith.constant 0 : index
    %c0_176 = arith.constant 0 : index
    %c0_177 = arith.constant 0 : index
    %177 = vector.load %arg7[%c0_175, %c0_176, %c0_177] : memref<3x128x256xf32, #tpu.memory_space<vmem>>, vector<1x128x256xf32>
    %178 = vector.shape_cast %177 : vector<1x128x256xf32> to vector<128x256xf32>
    %cst_178 = arith.constant dense<0.000000e+00> : vector<32x256xf32>
    %179 = tpu.matmul %176, %178, %cst_178 {dimension_numbers = #tpu.dot_dimension_numbers<[1], [0], [0], [1], [0, 0, 1, 1], [], []>} : vector<32x128xf32>, vector<128x256xf32>, vector<32x256xf32> -> vector<32x256xf32>
    %180 = arith.addf %174, %179 : vector<32x256xf32>
    %c0_179 = arith.constant 0 : index
    %c8_180 = arith.constant 8 : index
    %c0_181 = arith.constant 0 : index
    %181 = vector.load %arg23[%c0_179, %c8_180, %c0_181] : memref<2x32x128xf32, #tpu.memory_space<vmem>>, vector<2x16x128xf32>
    %182 = vector.shape_cast %181 : vector<2x16x128xf32> to vector<32x128xf32>
    %c1_182 = arith.constant 1 : index
    %c0_183 = arith.constant 0 : index
    %c0_184 = arith.constant 0 : index
    %183 = vector.load %arg7[%c1_182, %c0_183, %c0_184] : memref<3x128x256xf32, #tpu.memory_space<vmem>>, vector<1x128x256xf32>
    %184 = vector.shape_cast %183 : vector<1x128x256xf32> to vector<128x256xf32>
    %cst_185 = arith.constant dense<0.000000e+00> : vector<32x256xf32>
    %185 = tpu.matmul %182, %184, %cst_185 {dimension_numbers = #tpu.dot_dimension_numbers<[1], [0], [0], [1], [0, 0, 1, 1], [], []>} : vector<32x128xf32>, vector<128x256xf32>, vector<32x256xf32> -> vector<32x256xf32>
    %186 = arith.addf %180, %185 : vector<32x256xf32>
    %c0_186 = arith.constant 0 : index
    %c9_187 = arith.constant 9 : index
    %c0_188 = arith.constant 0 : index
    %187 = vector.load %arg23[%c0_186, %c9_187, %c0_188] : memref<2x32x128xf32, #tpu.memory_space<vmem>>, vector<2x16x128xf32>
    %188 = vector.shape_cast %187 : vector<2x16x128xf32> to vector<32x128xf32>
    %c2_189 = arith.constant 2 : index
    %c0_190 = arith.constant 0 : index
    %c0_191 = arith.constant 0 : index
    %189 = vector.load %arg7[%c2_189, %c0_190, %c0_191] : memref<3x128x256xf32, #tpu.memory_space<vmem>>, vector<1x128x256xf32>
    %190 = vector.shape_cast %189 : vector<1x128x256xf32> to vector<128x256xf32>
    %cst_192 = arith.constant dense<0.000000e+00> : vector<32x256xf32>
    %191 = tpu.matmul %188, %190, %cst_192 {dimension_numbers = #tpu.dot_dimension_numbers<[1], [0], [0], [1], [0, 0, 1, 1], [], []>} : vector<32x128xf32>, vector<128x256xf32>, vector<32x256xf32> -> vector<32x256xf32>
    %192 = arith.addf %186, %191 : vector<32x256xf32>
    %c0_193 = arith.constant 0 : index
    %c0_194 = arith.constant 0 : index
    %193 = vector.load %arg8[%c0_193, %c0_194] : memref<1x256xf32, #tpu.memory_space<vmem>>, vector<1x256xf32>
    %194 = vector.broadcast %193 : vector<1x256xf32> to vector<32x256xf32>
    %195 = arith.addf %192, %194 : vector<32x256xf32>
    %cst_195 = arith.constant 0.000000e+00 : f32
    %196 = vector.broadcast %cst_195 : f32 to vector<32x256xf32>
    %197 = arith.maximumf %195, %196 : vector<32x256xf32>
    %198 = vector.extract_strided_slice %197 {offsets = [0, 0], sizes = [32, 128], strides = [1, 1]} : vector<32x256xf32> to vector<32x128xf32>
    %199 = vector.extract_strided_slice %197 {offsets = [0, 128], sizes = [32, 128], strides = [1, 1]} : vector<32x256xf32> to vector<32x128xf32>
    %200 = arith.maximumf %198, %199 : vector<32x128xf32>
    %201 = vector.shape_cast %200 : vector<32x128xf32> to vector<16x2x128xf32>
    %cst_196 = arith.constant dense<0xFF800000> : vector<16x128xf32>
    %202 = vector.multi_reduction <maximumf>, %201, %cst_196 [1] : vector<16x2x128xf32> to vector<16x128xf32>
    %203 = vector.shape_cast %202 : vector<16x128xf32> to vector<2x8x128xf32>
    %c0_197 = arith.constant 0 : index
    %c8_198 = arith.constant 8 : index
    %c0_199 = arith.constant 0 : index
    %204 = vector.load %arg24[%c0_197, %c8_198, %c0_199] : memref<2x24x128xf32, #tpu.memory_space<vmem>>, vector<2x8x128xf32>
    tpu.vector_store %arg24[%c0_197, %c8_198, %c0_199], %203 {strides = array<i32>} : memref<2x24x128xf32, #tpu.memory_space<vmem>>, vector<2x8x128xf32>,
    %cst_200 = arith.constant 0.000000e+00 : f32
    %205 = vector.broadcast %cst_200 : f32 to vector<16x128xf32>
    %c0_201 = arith.constant 0 : index
    %c7_202 = arith.constant 7 : index
    %c0_203 = arith.constant 0 : index
    %206 = vector.load %arg24[%c0_201, %c7_202, %c0_203] : memref<2x24x128xf32, #tpu.memory_space<vmem>>, vector<2x8x128xf32>
    %207 = vector.shape_cast %206 : vector<2x8x128xf32> to vector<16x128xf32>
    %c0_204 = arith.constant 0 : index
    %c0_205 = arith.constant 0 : index
    %c0_206 = arith.constant 0 : index
    %208 = vector.load %arg9[%c0_204, %c0_205, %c0_206] : memref<3x128x128xf32, #tpu.memory_space<vmem>>, vector<1x128x128xf32>
    %209 = vector.shape_cast %208 : vector<1x128x128xf32> to vector<128x128xf32>
    %cst_207 = arith.constant dense<0.000000e+00> : vector<16x128xf32>
    %210 = tpu.matmul %207, %209, %cst_207 {dimension_numbers = #tpu.dot_dimension_numbers<[1], [0], [0], [1], [0, 0, 1, 1], [], []>} : vector<16x128xf32>, vector<128x128xf32>, vector<16x128xf32> -> vector<16x128xf32>
    %211 = arith.addf %205, %210 : vector<16x128xf32>
    %c0_208 = arith.constant 0 : index
    %c8_209 = arith.constant 8 : index
    %c0_210 = arith.constant 0 : index
    %212 = vector.load %arg24[%c0_208, %c8_209, %c0_210] : memref<2x24x128xf32, #tpu.memory_space<vmem>>, vector<2x8x128xf32>
    %213 = vector.shape_cast %212 : vector<2x8x128xf32> to vector<16x128xf32>
    %c1_211 = arith.constant 1 : index
    %c0_212 = arith.constant 0 : index
    %c0_213 = arith.constant 0 : index
    %214 = vector.load %arg9[%c1_211, %c0_212, %c0_213] : memref<3x128x128xf32, #tpu.memory_space<vmem>>, vector<1x128x128xf32>
    %215 = vector.shape_cast %214 : vector<1x128x128xf32> to vector<128x128xf32>
    %cst_214 = arith.constant dense<0.000000e+00> : vector<16x128xf32>
    %216 = tpu.matmul %213, %215, %cst_214 {dimension_numbers = #tpu.dot_dimension_numbers<[1], [0], [0], [1], [0, 0, 1, 1], [], []>} : vector<16x128xf32>, vector<128x128xf32>, vector<16x128xf32> -> vector<16x128xf32>
    %217 = arith.addf %211, %216 : vector<16x128xf32>
    %c0_215 = arith.constant 0 : index
    %c9_216 = arith.constant 9 : index
    %c0_217 = arith.constant 0 : index
    %218 = vector.load %arg24[%c0_215, %c9_216, %c0_217] : memref<2x24x128xf32, #tpu.memory_space<vmem>>, vector<2x8x128xf32>
    %219 = vector.shape_cast %218 : vector<2x8x128xf32> to vector<16x128xf32>
    %c2_218 = arith.constant 2 : index
    %c0_219 = arith.constant 0 : index
    %c0_220 = arith.constant 0 : index
    %220 = vector.load %arg9[%c2_218, %c0_219, %c0_220] : memref<3x128x128xf32, #tpu.memory_space<vmem>>, vector<1x128x128xf32>
    %221 = vector.shape_cast %220 : vector<1x128x128xf32> to vector<128x128xf32>
    %cst_221 = arith.constant dense<0.000000e+00> : vector<16x128xf32>
    %222 = tpu.matmul %219, %221, %cst_221 {dimension_numbers = #tpu.dot_dimension_numbers<[1], [0], [0], [1], [0, 0, 1, 1], [], []>} : vector<16x128xf32>, vector<128x128xf32>, vector<16x128xf32> -> vector<16x128xf32>
    %223 = arith.addf %217, %222 : vector<16x128xf32>
    %c0_222 = arith.constant 0 : index
    %c0_223 = arith.constant 0 : index
    %224 = vector.load %arg10[%c0_222, %c0_223] : memref<1x128xf32, #tpu.memory_space<vmem>>, vector<1x128xf32>
    %225 = vector.broadcast %224 : vector<1x128xf32> to vector<16x128xf32>
    %226 = arith.addf %223, %225 : vector<16x128xf32>
    %cst_224 = arith.constant 0.000000e+00 : f32
    %227 = vector.broadcast %cst_224 : f32 to vector<16x128xf32>
    %228 = arith.maximumf %226, %227 : vector<16x128xf32>
    %229 = vector.shape_cast %228 : vector<16x128xf32> to vector<2x8x128xf32>
    %c0_225 = arith.constant 0 : index
    %c8_226 = arith.constant 8 : index
    %c0_227 = arith.constant 0 : index
    %230 = vector.load %arg24[%c0_225, %c8_226, %c0_227] : memref<2x24x128xf32, #tpu.memory_space<vmem>>, vector<2x8x128xf32>
    tpu.vector_store %arg24[%c0_225, %c8_226, %c0_227], %229 {strides = array<i32>} : memref<2x24x128xf32, #tpu.memory_space<vmem>>, vector<2x8x128xf32>,
    %cst_228 = arith.constant 0.000000e+00 : f32
    %231 = vector.broadcast %cst_228 : f32 to vector<16x128xf32>
    %c0_229 = arith.constant 0 : index
    %c7_230 = arith.constant 7 : index
    %c0_231 = arith.constant 0 : index
    %232 = vector.load %arg24[%c0_229, %c7_230, %c0_231] : memref<2x24x128xf32, #tpu.memory_space<vmem>>, vector<2x8x128xf32>
    %233 = vector.shape_cast %232 : vector<2x8x128xf32> to vector<16x128xf32>
    %c0_232 = arith.constant 0 : index
    %c0_233 = arith.constant 0 : index
    %c0_234 = arith.constant 0 : index
    %234 = vector.load %arg11[%c0_232, %c0_233, %c0_234] : memref<3x128x128xf32, #tpu.memory_space<vmem>>, vector<1x128x128xf32>
    %235 = vector.shape_cast %234 : vector<1x128x128xf32> to vector<128x128xf32>
    %cst_235 = arith.constant dense<0.000000e+00> : vector<16x128xf32>
    %236 = tpu.matmul %233, %235, %cst_235 {dimension_numbers = #tpu.dot_dimension_numbers<[1], [0], [0], [1], [0, 0, 1, 1], [], []>} : vector<16x128xf32>, vector<128x128xf32>, vector<16x128xf32> -> vector<16x128xf32>
    %237 = arith.addf %231, %236 : vector<16x128xf32>
    %c0_236 = arith.constant 0 : index
    %c8_237 = arith.constant 8 : index
    %c0_238 = arith.constant 0 : index
    %238 = vector.load %arg24[%c0_236, %c8_237, %c0_238] : memref<2x24x128xf32, #tpu.memory_space<vmem>>, vector<2x8x128xf32>
    %239 = vector.shape_cast %238 : vector<2x8x128xf32> to vector<16x128xf32>
    %c1_239 = arith.constant 1 : index
    %c0_240 = arith.constant 0 : index
    %c0_241 = arith.constant 0 : index
    %240 = vector.load %arg11[%c1_239, %c0_240, %c0_241] : memref<3x128x128xf32, #tpu.memory_space<vmem>>, vector<1x128x128xf32>
    %241 = vector.shape_cast %240 : vector<1x128x128xf32> to vector<128x128xf32>
    %cst_242 = arith.constant dense<0.000000e+00> : vector<16x128xf32>
    %242 = tpu.matmul %239, %241, %cst_242 {dimension_numbers = #tpu.dot_dimension_numbers<[1], [0], [0], [1], [0, 0, 1, 1], [], []>} : vector<16x128xf32>, vector<128x128xf32>, vector<16x128xf32> -> vector<16x128xf32>
    %243 = arith.addf %237, %242 : vector<16x128xf32>
    %c0_243 = arith.constant 0 : index
    %c9_244 = arith.constant 9 : index
    %c0_245 = arith.constant 0 : index
    %244 = vector.load %arg24[%c0_243, %c9_244, %c0_245] : memref<2x24x128xf32, #tpu.memory_space<vmem>>, vector<2x8x128xf32>
    %245 = vector.shape_cast %244 : vector<2x8x128xf32> to vector<16x128xf32>
    %c2_246 = arith.constant 2 : index
    %c0_247 = arith.constant 0 : index
    %c0_248 = arith.constant 0 : index
    %246 = vector.load %arg11[%c2_246, %c0_247, %c0_248] : memref<3x128x128xf32, #tpu.memory_space<vmem>>, vector<1x128x128xf32>
    %247 = vector.shape_cast %246 : vector<1x128x128xf32> to vector<128x128xf32>
    %cst_249 = arith.constant dense<0.000000e+00> : vector<16x128xf32>
    %248 = tpu.matmul %245, %247, %cst_249 {dimension_numbers = #tpu.dot_dimension_numbers<[1], [0], [0], [1], [0, 0, 1, 1], [], []>} : vector<16x128xf32>, vector<128x128xf32>, vector<16x128xf32> -> vector<16x128xf32>
    %249 = arith.addf %243, %248 : vector<16x128xf32>
    %c0_250 = arith.constant 0 : index
    %c0_251 = arith.constant 0 : index
    %250 = vector.load %arg12[%c0_250, %c0_251] : memref<1x128xf32, #tpu.memory_space<vmem>>, vector<1x128xf32>
    %251 = vector.broadcast %250 : vector<1x128xf32> to vector<16x128xf32>
    %252 = arith.addf %249, %251 : vector<16x128xf32>
    %cst_252 = arith.constant 0.000000e+00 : f32
    %253 = vector.broadcast %cst_252 : f32 to vector<16x128xf32>
    %254 = arith.maximumf %252, %253 : vector<16x128xf32>
    %255 = arith.addf %254, %202 : vector<16x128xf32>
    %c0_253 = arith.constant 0 : index
    %c0_254 = arith.constant 0 : index
    %256 = vector.load %arg17[%c0_253, %c0_254] : memref<1x128xf32, #tpu.memory_space<vmem>>, vector<1x128xf32>
    %257 = vector.broadcast %256 : vector<1x128xf32> to vector<16x128xf32>
    %258 = arith.mulf %255, %257 : vector<16x128xf32>
    %c0_255 = arith.constant 0 : index
    %c0_256 = arith.constant 0 : index
    %259 = vector.load %arg18[%c0_255, %c0_256] : memref<1x128xf32, #tpu.memory_space<vmem>>, vector<1x128xf32>
    %260 = vector.broadcast %259 : vector<1x128xf32> to vector<16x128xf32>
    %261 = arith.addf %258, %260 : vector<16x128xf32>
    %cst_257 = arith.constant 0.000000e+00 : f32
    %262 = vector.broadcast %cst_257 : f32 to vector<16x128xf32>
    %263 = arith.maximumf %261, %262 : vector<16x128xf32>
    %264 = vector.shape_cast %263 : vector<16x128xf32> to vector<2x8x128xf32>
    %c0_258 = arith.constant 0 : index
    %c8_259 = arith.constant 8 : index
    %c0_260 = arith.constant 0 : index
    %265 = vector.load %arg24[%c0_258, %c8_259, %c0_260] : memref<2x24x128xf32, #tpu.memory_space<vmem>>, vector<2x8x128xf32>
    tpu.vector_store %arg24[%c0_258, %c8_259, %c0_260], %264 {strides = array<i32>} : memref<2x24x128xf32, #tpu.memory_space<vmem>>, vector<2x8x128xf32>,
    %cst_261 = arith.constant 0.000000e+00 : f32
    %266 = vector.broadcast %cst_261 : f32 to vector<16x256xf32>
    %c0_262 = arith.constant 0 : index
    %c7_263 = arith.constant 7 : index
    %c0_264 = arith.constant 0 : index
    %267 = vector.load %arg24[%c0_262, %c7_263, %c0_264] : memref<2x24x128xf32, #tpu.memory_space<vmem>>, vector<2x8x128xf32>
    %268 = vector.shape_cast %267 : vector<2x8x128xf32> to vector<16x128xf32>
    %c0_265 = arith.constant 0 : index
    %c0_266 = arith.constant 0 : index
    %c0_267 = arith.constant 0 : index
    %269 = vector.load %arg13[%c0_265, %c0_266, %c0_267] : memref<3x128x256xf32, #tpu.memory_space<vmem>>, vector<1x128x256xf32>
    %270 = vector.shape_cast %269 : vector<1x128x256xf32> to vector<128x256xf32>
    %cst_268 = arith.constant dense<0.000000e+00> : vector<16x256xf32>
    %271 = tpu.matmul %268, %270, %cst_268 {dimension_numbers = #tpu.dot_dimension_numbers<[1], [0], [0], [1], [0, 0, 1, 1], [], []>} : vector<16x128xf32>, vector<128x256xf32>, vector<16x256xf32> -> vector<16x256xf32>
    %272 = arith.addf %266, %271 : vector<16x256xf32>
    %c0_269 = arith.constant 0 : index
    %c8_270 = arith.constant 8 : index
    %c0_271 = arith.constant 0 : index
    %273 = vector.load %arg24[%c0_269, %c8_270, %c0_271] : memref<2x24x128xf32, #tpu.memory_space<vmem>>, vector<2x8x128xf32>
    %274 = vector.shape_cast %273 : vector<2x8x128xf32> to vector<16x128xf32>
    %c1_272 = arith.constant 1 : index
    %c0_273 = arith.constant 0 : index
    %c0_274 = arith.constant 0 : index
    %275 = vector.load %arg13[%c1_272, %c0_273, %c0_274] : memref<3x128x256xf32, #tpu.memory_space<vmem>>, vector<1x128x256xf32>
    %276 = vector.shape_cast %275 : vector<1x128x256xf32> to vector<128x256xf32>
    %cst_275 = arith.constant dense<0.000000e+00> : vector<16x256xf32>
    %277 = tpu.matmul %274, %276, %cst_275 {dimension_numbers = #tpu.dot_dimension_numbers<[1], [0], [0], [1], [0, 0, 1, 1], [], []>} : vector<16x128xf32>, vector<128x256xf32>, vector<16x256xf32> -> vector<16x256xf32>
    %278 = arith.addf %272, %277 : vector<16x256xf32>
    %c0_276 = arith.constant 0 : index
    %c9_277 = arith.constant 9 : index
    %c0_278 = arith.constant 0 : index
    %279 = vector.load %arg24[%c0_276, %c9_277, %c0_278] : memref<2x24x128xf32, #tpu.memory_space<vmem>>, vector<2x8x128xf32>
    %280 = vector.shape_cast %279 : vector<2x8x128xf32> to vector<16x128xf32>
    %c2_279 = arith.constant 2 : index
    %c0_280 = arith.constant 0 : index
    %c0_281 = arith.constant 0 : index
    %281 = vector.load %arg13[%c2_279, %c0_280, %c0_281] : memref<3x128x256xf32, #tpu.memory_space<vmem>>, vector<1x128x256xf32>
    %282 = vector.shape_cast %281 : vector<1x128x256xf32> to vector<128x256xf32>
    %cst_282 = arith.constant dense<0.000000e+00> : vector<16x256xf32>
    %283 = tpu.matmul %280, %282, %cst_282 {dimension_numbers = #tpu.dot_dimension_numbers<[1], [0], [0], [1], [0, 0, 1, 1], [], []>} : vector<16x128xf32>, vector<128x256xf32>, vector<16x256xf32> -> vector<16x256xf32>
    %284 = arith.addf %278, %283 : vector<16x256xf32>
    %c0_283 = arith.constant 0 : index
    %c0_284 = arith.constant 0 : index
    %285 = vector.load %arg14[%c0_283, %c0_284] : memref<1x256xf32, #tpu.memory_space<vmem>>, vector<1x256xf32>
    %286 = vector.broadcast %285 : vector<1x256xf32> to vector<16x256xf32>
    %287 = arith.addf %284, %286 : vector<16x256xf32>
    %cst_285 = arith.constant 0.000000e+00 : f32
    %288 = vector.broadcast %cst_285 : f32 to vector<16x256xf32>
    %289 = arith.maximumf %287, %288 : vector<16x256xf32>
    %290 = vector.extract_strided_slice %289 {offsets = [0, 0], sizes = [16, 128], strides = [1, 1]} : vector<16x256xf32> to vector<16x128xf32>
    %291 = vector.extract_strided_slice %289 {offsets = [0, 128], sizes = [16, 128], strides = [1, 1]} : vector<16x256xf32> to vector<16x128xf32>
    %292 = arith.maximumf %290, %291 : vector<16x128xf32>
    %293 = vector.shape_cast %292 : vector<16x128xf32> to vector<8x2x128xf32>
    %cst_286 = arith.constant dense<0xFF800000> : vector<8x128xf32>
    %294 = vector.multi_reduction <maximumf>, %293, %cst_286 [1] : vector<8x2x128xf32> to vector<8x128xf32>
    %295 = vector.shape_cast %294 : vector<8x128xf32> to vector<2x4x128xf32>
    %cst_287 = arith.constant 0.000000e+00 : f32
    %296 = vector.broadcast %cst_287 : f32 to vector<2x128xf32>
    %297 = vector.extract_strided_slice %295 {offsets = [0, 0, 0], sizes = [2, 1, 128], strides = [1, 1, 1]} : vector<2x4x128xf32> to vector<2x1x128xf32>
    %298 = vector.shape_cast %297 : vector<2x1x128xf32> to vector<2x128xf32>
    %c0_288 = arith.constant 0 : index
    %c0_289 = arith.constant 0 : index
    %c0_290 = arith.constant 0 : index
    %299 = vector.load %arg19[%c0_288, %c0_289, %c0_290] : memref<4x128x128xf32, #tpu.memory_space<vmem>>, vector<1x128x128xf32>
    %300 = vector.shape_cast %299 : vector<1x128x128xf32> to vector<128x128xf32>
    %cst_291 = arith.constant dense<0.000000e+00> : vector<2x128xf32>
    %301 = tpu.matmul %298, %300, %cst_291 {dimension_numbers = #tpu.dot_dimension_numbers<[1], [0], [0], [1], [0, 0, 1, 1], [], []>} : vector<2x128xf32>, vector<128x128xf32>, vector<2x128xf32> -> vector<2x128xf32>
    %302 = arith.addf %296, %301 : vector<2x128xf32>
    %303 = vector.extract_strided_slice %295 {offsets = [0, 1, 0], sizes = [2, 1, 128], strides = [1, 1, 1]} : vector<2x4x128xf32> to vector<2x1x128xf32>
    %304 = vector.shape_cast %303 : vector<2x1x128xf32> to vector<2x128xf32>
    %c1_292 = arith.constant 1 : index
    %c0_293 = arith.constant 0 : index
    %c0_294 = arith.constant 0 : index
    %305 = vector.load %arg19[%c1_292, %c0_293, %c0_294] : memref<4x128x128xf32, #tpu.memory_space<vmem>>, vector<1x128x128xf32>
    %306 = vector.shape_cast %305 : vector<1x128x128xf32> to vector<128x128xf32>
    %cst_295 = arith.constant dense<0.000000e+00> : vector<2x128xf32>
    %307 = tpu.matmul %304, %306, %cst_295 {dimension_numbers = #tpu.dot_dimension_numbers<[1], [0], [0], [1], [0, 0, 1, 1], [], []>} : vector<2x128xf32>, vector<128x128xf32>, vector<2x128xf32> -> vector<2x128xf32>
    %308 = arith.addf %302, %307 : vector<2x128xf32>
    %309 = vector.extract_strided_slice %295 {offsets = [0, 2, 0], sizes = [2, 1, 128], strides = [1, 1, 1]} : vector<2x4x128xf32> to vector<2x1x128xf32>
    %310 = vector.shape_cast %309 : vector<2x1x128xf32> to vector<2x128xf32>
    %c2_296 = arith.constant 2 : index
    %c0_297 = arith.constant 0 : index
    %c0_298 = arith.constant 0 : index
    %311 = vector.load %arg19[%c2_296, %c0_297, %c0_298] : memref<4x128x128xf32, #tpu.memory_space<vmem>>, vector<1x128x128xf32>
    %312 = vector.shape_cast %311 : vector<1x128x128xf32> to vector<128x128xf32>
    %cst_299 = arith.constant dense<0.000000e+00> : vector<2x128xf32>
    %313 = tpu.matmul %310, %312, %cst_299 {dimension_numbers = #tpu.dot_dimension_numbers<[1], [0], [0], [1], [0, 0, 1, 1], [], []>} : vector<2x128xf32>, vector<128x128xf32>, vector<2x128xf32> -> vector<2x128xf32>
    %314 = arith.addf %308, %313 : vector<2x128xf32>
    %315 = vector.extract_strided_slice %295 {offsets = [0, 3, 0], sizes = [2, 1, 128], strides = [1, 1, 1]} : vector<2x4x128xf32> to vector<2x1x128xf32>
    %316 = vector.shape_cast %315 : vector<2x1x128xf32> to vector<2x128xf32>
    %c3_300 = arith.constant 3 : index
    %c0_301 = arith.constant 0 : index
    %c0_302 = arith.constant 0 : index
    %317 = vector.load %arg19[%c3_300, %c0_301, %c0_302] : memref<4x128x128xf32, #tpu.memory_space<vmem>>, vector<1x128x128xf32>
    %318 = vector.shape_cast %317 : vector<1x128x128xf32> to vector<128x128xf32>
    %cst_303 = arith.constant dense<0.000000e+00> : vector<2x128xf32>
    %319 = tpu.matmul %316, %318, %cst_303 {dimension_numbers = #tpu.dot_dimension_numbers<[1], [0], [0], [1], [0, 0, 1, 1], [], []>} : vector<2x128xf32>, vector<128x128xf32>, vector<2x128xf32> -> vector<2x128xf32>
    %320 = arith.addf %314, %319 : vector<2x128xf32>
    %c0_304 = arith.constant 0 : index
    %c0_305 = arith.constant 0 : index
    %321 = vector.load %arg20[%c0_304, %c0_305] : memref<1x128xf32, #tpu.memory_space<vmem>>, vector<1x128xf32>
    %322 = vector.broadcast %321 : vector<1x128xf32> to vector<2x128xf32>
    %323 = arith.addf %320, %322 : vector<2x128xf32>
    %cst_306 = arith.constant 0.000000e+00 : f32
    %324 = vector.broadcast %cst_306 : f32 to vector<2x128xf32>
    %325 = arith.maximumf %323, %324 : vector<2x128xf32>
    %c0_307 = arith.constant 0 : index
    %c0_308 = arith.constant 0 : index
    %326 = vector.load %arg21[%c0_307, %c0_308] : memref<2x128xf32, #tpu.memory_space<vmem>>, vector<2x128xf32>
    tpu.vector_store %arg21[%c0_307, %c0_308], %325 {strides = array<i32>} : memref<2x128xf32, #tpu.memory_space<vmem>>, vector<2x128xf32>,
    return
  }
}

</mosaic_0001>

<bundles_post_ra>
// kernel: backbone02_forward.1
= control target key start
LH: loop header
LB: loop body
LE: loop exit
PB: predicated region body
PF: predicated region fallthrough
CT: control target
= control target key end

     0   :  { %s8715_s0 = inlined_call_operand.hbm [shape: f32[64,32], index: 0, kind: input, shape index: {}]   ;;  %s8716_s1 = inlined_call_operand.hbm [shape: f32[5,32,256], index: 1, kind: input, shape index: {}]   ;;  %s8717_s2 = inlined_call_operand.vmem [shape: f32[1,256], index: 2, kind: input, shape index: {}]   ;;  %s8718_s3 = inlined_call_operand.hbm [shape: f32[3,128,128], index: 3, kind: input, shape index: {}]   ;;  %s8719_s4 = inlined_call_operand.vmem [shape: f32[1,128], index: 4, kind: input, shape index: {}]   ;;  %s8720_s5 = inlined_call_operand.hbm [shape: f32[3,128,128], index: 5, kind: input, shape index: {}]   ;;  %s8721_s6 = inlined_call_operand.vmem [shape: f32[1,128], index: 6, kind: input, shape index: {}]   ;;  %s8722_s7 = inlined_call_operand.hbm [shape: f32[3,128,256], index: 7, kind: input, shape index: {}]   ;;  %s8723_s8 = inlined_call_operand.vmem [shape: f32[1,256], index: 8, kind: input, shape index: {}]   ;;  %s8724_s9 = inlined_call_operand.hbm [shape: f32[3,128,128], index: 9, kind: input, shape index: {}]   ;;  %s8725_s10 = inlined_call_operand.vmem [shape: f32[1,128], index: 10, kind: input, shape index: {}]   ;;  %s8726_s11 = inlined_call_operand.hbm [shape: f32[3,128,128], index: 11, kind: input, shape index: {}]   ;;  %s8727_s12 = inlined_call_operand.vmem [shape: f32[1,128], index: 12, kind: input, shape index: {}]   ;;  %s8728_s13 = inlined_call_operand.hbm [shape: f32[3,128,256], index: 13, kind: input, shape index: {}]   ;;  %s8729_s14 = inlined_call_operand.vmem [shape: f32[1,256], index: 14, kind: input, shape index: {}]   ;;  %s8730_s15 = inlined_call_operand.vmem [shape: f32[1,128], index: 15, kind: input, shape index: {}]   ;;  %s8731_s16 = inlined_call_operand.vmem [shape: f32[1,128], index: 16, kind: input, shape index: {}]   ;;  %s8732_s17 = inlined_call_operand.vmem [shape: f32[1,128], index: 17, kind: input, shape index: {}]   ;;  %s8733_s18 = inlined_call_operand.vmem [shape: f32[1,128], index: 18, kind: input, shape index: {}]   ;;  %s8734_s19 = inlined_call_operand.hbm [shape: f32[4,128,128], index: 19, kind: input, shape index: {}]   ;;  %s8735_s20 = inlined_call_operand.vmem [shape: f32[1,128], index: 20, kind: input, shape index: {}]   ;;  %s8736_s21 = inlined_call_operand.hbm [shape: f32[2,128], index: 21, kind: output, shape index: {}]  }
   0x1   :  { %8742 = sst [smem:[#allocation27_spill]] %s8715_s0 }
   0x2   :  { %8743 = sst [smem:[#allocation28_spill]] %s8716_s1 }
   0x3   :  { %8744 = sst [smem:[#allocation29_spill]] %s8717_s2 }
   0x4   :  { %8745 = sst [smem:[#allocation30_spill]] %s8718_s3 }
   0x5   :  { %8746 = sst [smem:[#allocation31_spill]] %s8719_s4 }
   0x6   :  { %8747 = sst [smem:[#allocation32_spill]] %s8720_s5 }
   0x7   :  { %8748 = sst [smem:[#allocation33_spill]] %s8729_s14 }
   0x8   :  { %8749 = sst [smem:[#allocation34_spill]] %s8735_s20 }
   0x9   :  { %8750 = sst [smem:[#allocation35_spill]] %s8736_s21 }
   0xa   :  { %26 = vsyncpa [#allocation6], 0 }
   0xb   :  { %27 = vsyncpa [#allocation9], 0 }
   0xc   :  { %28 = vsyncpa [#allocation12], 0 }
   0xd   :  { %29 = vsyncpa [#allocation15], 0 }
   0xe   :  { %30 = vsyncpa [#allocation18], 0 }
   0xf   :  { %31 = vsyncpa [#allocation7], 0  ;;  %s7675_s2 = smov [#allocation8]   ;;  %s8751_s3 = sld [smem:[#allocation28_spill]] }
  0x10   :  { %s49_s25 = sshll.u32 %s7675_s2, 4  ;;  %s50_s25 = int_to_ptr.vmem [resolvable:$true] %s49_s25 }
  0x15   :  { %s7443_s28 = scalar_lea.hbm %s8751_s3, 5120 }
  0x16   :  { %p7444_p0 = scmp.ne.s32.totalorder %s8751_s3, %s7443_s28  ;;  %p7447_p1 = scmp.lt.u32.totalorder %s7443_s28, %s8751_s3 }
  0x18   :  { %p7449_p2 = pnand %p7447_p1, %p7444_p0 }
  0x1a   :  { %7452 = shalt.err (!%p7449_p2)
}
  0x1b   :  { %s7453_s5 = scalar_lea.vmem %s50_s25, 5120  ;;  %p7458_p4 = scmp.lt.s32.totalorder %s50_s25, %s50_s25 }
  0x1c   :  { %p7454_p3 = scmp.ne.s32.totalorder %s50_s25, %s7453_s5  ;;  %p7459_p5 = scmp.lt.s32.totalorder %s7453_s5, %s7453_s5 }
  0x1e   :  { %p7460_p6 = por %p7459_p5, %p7458_p4 }
  0x20   :  { %p7461_p7 = pnand %p7460_p6, %p7454_p3 }
  0x22   :  { %7464 = shalt.err (!%p7461_p7)
}
  0x23   :  { %s7676_s22 = smov 256   ;;  %s7677_s23 = smov 16  }
  0x24   :  { %55 = dma.hbm_to_vmem [thread:$0]  %s8751_s3, 5120, %s50_s25, [#allocation9], %s7676_s22, %s7676_s22, %s7677_s23  }
  0x25   :  { %s7678_s2 = smov [#allocation11]   ;;  %s7679_s27 = smov [#allocation14]  }
  0x26   :  { %s77_s26 = sshll.u32 %s7678_s2, 4  ;;  %s105_s28 = sshll.u32 %s7679_s27, 4  ;;  %s78_s26 = int_to_ptr.vmem [resolvable:$true] %s77_s26  ;;  %s106_s28 = int_to_ptr.vmem [resolvable:$true] %s105_s28 }
  0x27   :  { %s8752_s4 = sld [smem:[#allocation32_spill]] }
  0x2d   :  { %s7465_s30 = scalar_lea.hbm %s8752_s4, 6144 }
  0x2e   :  { %p7466_p8 = scmp.ne.s32.totalorder %s8752_s4, %s7465_s30  ;;  %p7469_p9 = scmp.lt.u32.totalorder %s7465_s30, %s8752_s4 }
  0x30   :  { %p7471_p10 = pnand %p7469_p9, %p7466_p8 }
  0x32   :  { %7474 = shalt.err (!%p7471_p10)
}
  0x33   :  { %s7475_s25 = scalar_lea.vmem %s78_s26, 6144  ;;  %p7480_p12 = scmp.lt.s32.totalorder %s78_s26, %s78_s26 }
  0x34   :  { %p7476_p11 = scmp.ne.s32.totalorder %s78_s26, %s7475_s25  ;;  %p7481_p13 = scmp.lt.s32.totalorder %s7475_s25, %s7475_s25 }
  0x36   :  { %p7482_p0 = por %p7481_p13, %p7480_p12 }
  0x38   :  { %p7483_p1 = pnand %p7482_p0, %p7476_p11 }
  0x3a   :  { %7486 = shalt.err (!%p7483_p1)
}
  0x3b   :  { %s7680_s3 = smov 128   ;;  %s7681_s1 = smov 8  }
  0x3c   :  { %83 = dma.hbm_to_vmem [thread:$0]  %s8752_s4, 6144, %s78_s26, [#allocation12], %s7680_s3, %s7680_s3, %s7681_s1  }
  0x3d   :  { %s7487_s2 = scalar_lea.hbm %s8724_s9, 6144 }
  0x3e   :  { %p7488_p2 = scmp.ne.s32.totalorder %s8724_s9, %s7487_s2  ;;  %p7491_p3 = scmp.lt.u32.totalorder %s7487_s2, %s8724_s9 }
  0x40   :  { %p7493_p4 = pnand %p7491_p3, %p7488_p2 }
  0x42   :  { %7496 = shalt.err (!%p7493_p4)
}
  0x43   :  { %s7497_s5 = scalar_lea.vmem %s106_s28, 6144  ;;  %p7502_p6 = scmp.lt.s32.totalorder %s106_s28, %s106_s28 }
  0x44   :  { %p7498_p5 = scmp.ne.s32.totalorder %s106_s28, %s7497_s5  ;;  %p7503_p7 = scmp.lt.s32.totalorder %s7497_s5, %s7497_s5 }
  0x46   :  { %p7504_p8 = por %p7503_p7, %p7502_p6 }
  0x48   :  { %p7505_p9 = pnand %p7504_p8, %p7498_p5 }
  0x4a   :  { %7508 = shalt.err (!%p7505_p9)
}
  0x4b   :  { %111 = dma.hbm_to_vmem [thread:$0]  %s8724_s9, 6144, %s106_s28, [#allocation15], %s7680_s3, %s7680_s3, %s7681_s1  }
  0x4c   :  { %s7682_s25 = smov [#allocation17]   ;;  %s7683_s24 = smov [#allocation5]  }
  0x4d   :  { %s133_s21 = sshll.u32 %s7682_s25, 4  ;;  %s37_s14 = sshll.u32 %s7683_s24, 4  ;;  %s134_s21 = int_to_ptr.vmem [resolvable:$true] %s133_s21  ;;  %s38_s14 = int_to_ptr.vmem [resolvable:$true] %s37_s14 }
  0x4e   :  { %s7509_s27 = scalar_lea.hbm %s8728_s13, 12288 }
  0x4f   :  { %p7510_p10 = scmp.ne.s32.totalorder %s8728_s13, %s7509_s27  ;;  %p7513_p11 = scmp.lt.u32.totalorder %s7509_s27, %s8728_s13 }
  0x51   :  { %p7515_p12 = pnand %p7513_p11, %p7510_p10 }
  0x53   :  { %7518 = shalt.err (!%p7515_p12)
}
  0x54   :  { %s7519_s9 = scalar_lea.vmem %s134_s21, 12288  ;;  %p7524_p0 = scmp.lt.s32.totalorder %s134_s21, %s134_s21 }
  0x55   :  { %p7520_p13 = scmp.ne.s32.totalorder %s134_s21, %s7519_s9  ;;  %p7525_p1 = scmp.lt.s32.totalorder %s7519_s9, %s7519_s9 }
  0x57   :  { %p7526_p2 = por %p7525_p1, %p7524_p0 }
  0x59   :  { %p7527_p3 = pnand %p7526_p2, %p7520_p13 }
  0x5b   :  { %7530 = shalt.err (!%p7527_p3)
}
  0x5c   :  { %139 = dma.hbm_to_vmem [thread:$0]  %s8728_s13, 12288, %s134_s21, [#allocation18], %s7676_s22, %s7676_s22, %s7677_s23  }
  0x5d   :  { %s8753_s24 = sld [smem:[#allocation27_spill]] }
  0x63   :  { %s7531_s20 = scalar_lea.hbm %s8753_s24, 1024 }
  0x64   :  { %p7532_p4 = scmp.ne.s32.totalorder %s8753_s24, %s7531_s20  ;;  %p7535_p5 = scmp.lt.u32.totalorder %s7531_s20, %s8753_s24 }
  0x66   :  { %p7537_p6 = pnand %p7535_p5, %p7532_p4 }
  0x68   :  { %7540 = shalt.err (!%p7537_p6)
}
  0x69   :  { %s7541_s30 = scalar_lea.vmem %s38_s14, 1024  ;;  %p7546_p8 = scmp.lt.s32.totalorder %s38_s14, %s38_s14 }
  0x6a   :  { %p7542_p7 = scmp.ne.s32.totalorder %s38_s14, %s7541_s30  ;;  %p7547_p9 = scmp.lt.s32.totalorder %s7541_s30, %s7541_s30 }
  0x6c   :  { %p7548_p10 = por %p7547_p9, %p7546_p8 }
  0x6e   :  { %p7549_p11 = pnand %p7548_p10, %p7542_p7 }
  0x70   :  { %7552 = shalt.err (!%p7549_p11)
}
  0x71   :  { %43 = dma.hbm_to_vmem [thread:$0]  %s8753_s24, 1024, %s38_s14, [#allocation6], %s7680_s3, %s7680_s3, %s7681_s1  }
  0x72   :  { %s7684_s5 = smov [#allocation10]   ;;  %s7685_s28 = smov [#allocation13]  }
  0x73   :  { %s63_s9 = sshll.u32 %s7684_s5, 4  ;;  %s91_s26 = sshll.u32 %s7685_s28, 4  ;;  %s64_s9 = int_to_ptr.vmem [resolvable:$true] %s63_s9  ;;  %s92_s26 = int_to_ptr.vmem [resolvable:$true] %s91_s26 }
  0x74   :  { %s8754_s20 = sld [smem:[#allocation30_spill]] }
  0x7a   :  { %s7553_s2 = scalar_lea.hbm %s8754_s20, 6144 }
  0x7b   :  { %p7554_p12 = scmp.ne.s32.totalorder %s8754_s20, %s7553_s2  ;;  %p7557_p13 = scmp.lt.u32.totalorder %s7553_s2, %s8754_s20 }
  0x7d   :  { %p7559_p0 = pnand %p7557_p13, %p7554_p12 }
  0x7f   :  { %7562 = shalt.err (!%p7559_p0)
}
  0x80   :  { %s7563_s14 = scalar_lea.vmem %s64_s9, 6144  ;;  %p7568_p2 = scmp.lt.s32.totalorder %s64_s9, %s64_s9 }
  0x81   :  { %p7564_p1 = scmp.ne.s32.totalorder %s64_s9, %s7563_s14  ;;  %p7569_p3 = scmp.lt.s32.totalorder %s7563_s14, %s7563_s14 }
  0x83   :  { %p7570_p4 = por %p7569_p3, %p7568_p2 }
  0x85   :  { %p7571_p5 = pnand %p7570_p4, %p7564_p1 }
  0x87   :  { %7574 = shalt.err (!%p7571_p5)
}
  0x88   :  { %69 = dma.hbm_to_vmem [thread:$0]  %s8754_s20, 6144, %s64_s9, [#allocation9], %s7680_s3, %s7680_s3, %s7681_s1  }
  0x89   :  { %s7575_s28 = scalar_lea.hbm %s8722_s7, 12288 }
  0x8a   :  { %p7576_p6 = scmp.ne.s32.totalorder %s8722_s7, %s7575_s28  ;;  %p7579_p7 = scmp.lt.u32.totalorder %s7575_s28, %s8722_s7 }
  0x8c   :  { %p7581_p8 = pnand %p7579_p7, %p7576_p6 }
  0x8e   :  { %7584 = shalt.err (!%p7581_p8)
}
  0x8f   :  { %s7585_s29 = scalar_lea.vmem %s92_s26, 12288  ;;  %p7590_p10 = scmp.lt.s32.totalorder %s92_s26, %s92_s26 }
  0x90   :  { %p7586_p9 = scmp.ne.s32.totalorder %s92_s26, %s7585_s29  ;;  %p7591_p11 = scmp.lt.s32.totalorder %s7585_s29, %s7585_s29 }
  0x92   :  { %p7592_p12 = por %p7591_p11, %p7590_p10 }
  0x94   :  { %p7593_p13 = pnand %p7592_p12, %p7586_p9 }
  0x96   :  { %7596 = shalt.err (!%p7593_p13)
}
  0x97   :  { %97 = dma.hbm_to_vmem [thread:$0]  %s8722_s7, 12288, %s92_s26, [#allocation12], %s7676_s22, %s7676_s22, %s7677_s23  }
  0x98   :  { %s7686_s0 = smov [#allocation16]   ;;  %s7687_s14 = smov [#allocation19]  }
  0x99   :  { %s119_s30 = sshll.u32 %s7686_s0, 4  ;;  %s155_s24 = sshll.u32 %s7687_s14, 4  ;;  %s120_s30 = int_to_ptr.vmem [resolvable:$true] %s119_s30  ;;  %s156_s24 = int_to_ptr.vmem [resolvable:$true] %s155_s24 }
  0x9a   :  { %s7597_s5 = scalar_lea.hbm %s8726_s11, 6144 }
  0x9b   :  { %p7598_p0 = scmp.ne.s32.totalorder %s8726_s11, %s7597_s5  ;;  %p7601_p1 = scmp.lt.u32.totalorder %s7597_s5, %s8726_s11 }
  0x9d   :  { %p7603_p2 = pnand %p7601_p1, %p7598_p0 }
  0x9f   :  { %7606 = shalt.err (!%p7603_p2)
}
  0xa0   :  { %s7607_s7 = scalar_lea.vmem %s120_s30, 6144  ;;  %p7612_p4 = scmp.lt.s32.totalorder %s120_s30, %s120_s30 }
  0xa1   :  { %p7608_p3 = scmp.ne.s32.totalorder %s120_s30, %s7607_s7  ;;  %p7613_p5 = scmp.lt.s32.totalorder %s7607_s7, %s7607_s7 }
  0xa3   :  { %p7614_p6 = por %p7613_p5, %p7612_p4 }
  0xa5   :  { %p7615_p7 = pnand %p7614_p6, %p7608_p3 }
  0xa7   :  { %7618 = shalt.err (!%p7615_p7)
}
  0xa8   :  { %125 = dma.hbm_to_vmem [thread:$0]  %s8726_s11, 6144, %s120_s30, [#allocation15], %s7680_s3, %s7680_s3, %s7681_s1  }
  0xa9   :  { %s7619_s29 = scalar_lea.hbm %s8734_s19, 8192 }
  0xaa   :  { %p7620_p8 = scmp.ne.s32.totalorder %s8734_s19, %s7619_s29  ;;  %p7623_p9 = scmp.lt.u32.totalorder %s7619_s29, %s8734_s19 }
  0xac   :  { %p7625_p10 = pnand %p7623_p9, %p7620_p8 }
  0xae   :  { %7628 = shalt.err (!%p7625_p10)
}
  0xaf   :  { %s7629_s13 = scalar_lea.vmem %s156_s24, 8192  ;;  %p7634_p12 = scmp.lt.s32.totalorder %s156_s24, %s156_s24 }
  0xb0   :  { %p7630_p11 = scmp.ne.s32.totalorder %s156_s24, %s7629_s13  ;;  %p7635_p13 = scmp.lt.s32.totalorder %s7629_s13, %s7629_s13 }
  0xb2   :  { %p7636_p0 = por %p7635_p13, %p7634_p12 }
  0xb4   :  { %p7637_p1 = pnand %p7636_p0, %p7630_p11 }
  0xb6   :  { %7640 = shalt.err (!%p7637_p1)
}
  0xb7   :  { %161 = dma.hbm_to_vmem [thread:$0]  %s8734_s19, 8192, %s156_s24, [#allocation18], %s7680_s3, %s7680_s3, %s7681_s1  }
  0xb8   :  { %7663 = dma.done.wait [#allocation6], 1024  }
  0xb9   :  { %7664 = vsyncadd [#allocation6], 4294966272 }
  0xba   :  { %7665 = dma.done.wait [#allocation9], 11264  }
  0xbb   :  { %7666 = vsyncadd [#allocation9], 4294956032 }
  0xbc   :  { %7667 = dma.done.wait [#allocation12], 18432  }
  0xbd   :  { %7668 = vsyncadd [#allocation12], 4294948864 }
  0xbe   :  { %7669 = dma.done.wait [#allocation15], 12288  }
  0xbf   :  { %7670 = vsyncadd [#allocation15], 4294955008 }
  0xc0   :  { %7671 = dma.done.wait [#allocation18], 20480  }
  0xc1   :  { %7672 = vsyncadd [#allocation18], 4294946816  ;;  %vm191_vm0 = vcmask 261120   ;;  %v7688_v0 = vmov 0.0   ;;  %v260_v1 = vld [vmem:[#allocation8 + $0x48] sm:$0xff]  ;;  %v262_v2 = vld [vmem:[#allocation8 + $0x58] sm:$0xff] }
  0xc2   :  { %355 = vmatprep.mubr.f32.mxu0 %v7688_v0  ;;  %204 = vst [vmem:[#allocation3] sm:$0xff] %v7688_v0  ;;  %207 = vst [vmem:[#allocation3 + $0x18] sm:$0xff] %v7688_v0  ;;  %v259_v3 = vld [vmem:[#allocation8 + $0x40] sm:$0xff]  ;;  %v6390_v4 = vpack.c.bf16 %v262_v2, %v260_v1  ;;  %v261_v5 = vld [vmem:[#allocation8 + $0x50] sm:$0xff]  ;;  %s8755_s1 = sld [smem:[#allocation29_spill]]  ;;  %vm1279_vm1 = vcmask 1041408  }
  0xc3   :  { %208 = vst [vmem:[#allocation3 + $0x20] sm:$0xff] %v7688_v0  ;;  %211 = vst [vmem:[#allocation3 + $0x38] sm:$0xff] %v7688_v0  ;;  %v264_v6 = vld [vmem:[#allocation8 + $0x68] sm:$0xff]  ;;  %v266_v7 = vld [vmem:[#allocation8 + $0x78] sm:$0xff]  ;;  %v6392_v8 = vpack.c.bf16 %v261_v5, %v259_v3  ;;  %vm1536_vm2 = vcmask 1041409   ;;  %vm1538_vm3 = vcmask 1042434  }
  0xc4   :  { %212 = vst [vmem:[#allocation4] sm:$0xff] %v7688_v0  ;;  %214 = vst [vmem:[#allocation4 + $0x10] sm:$0xff] %v7688_v0  ;;  %v6394_v9 = vpack.c.bf16 %v266_v7, %v264_v6  ;;  %v263_v10 = vld [vmem:[#allocation8 + $0x60] sm:$0xff]  ;;  %v265_v11 = vld [vmem:[#allocation8 + $0x70] sm:$0xff]  ;;  %6391 = vmatprep.subr.bf16.mxu0 %v6390_v4  ;;  %vm1540_vm4 = vcmask 1043459   ;;  %vm1542_vm5 = vcmask 1044484  }
  0xc5   :  { %215 = vst [vmem:[#allocation4 + $0x18] sm:$0xff] %v7688_v0  ;;  %217 = vst [vmem:[#allocation4 + $0x28] sm:$0xff] %v7688_v0  ;;  %v218_v12 = vld [vmem:[#allocation5] sm:$0xff]  ;;  %v243_v13 = vld [vmem:[#allocation8 + $0x8] sm:$0xff]  ;;  %6393 = vmatpush1.bf16.msra.mxu0 %v6392_v8  ;;  %v6396_v15 = vpack.c.bf16 %v265_v11, %v263_v10  ;;  %vm1544_vm6 = vcmask 1045509   ;;  %vm1546_vm7 = vcmask 1046534  }
  0xc6   :  { %192 = vst.msk [vmem:[#allocation2] sm:$0xff] %vm191_vm0, %v7688_v0  ;;  %193 = vst.msk [vmem:[#allocation2 + $0x8] sm:$0xff] %vm191_vm0, %v7688_v0  ;;  %v245_v14 = vld [vmem:[#allocation8 + $0x18] sm:$0xff]  ;;  %v242_v16 = vld [vmem:[#allocation8] sm:$0xff]  ;;  %6395 = vmatprep.subr.bf16.mxu0 %v6394_v9  ;;  %vm1548_vm8 = vcmask 1047559   ;;  %s8756_s5 = sld [smem:[#allocation31_spill]] }
  0xc7   :  { %194 = vst.msk [vmem:[#allocation2 + $0x10] sm:$0xff] %vm191_vm0, %v7688_v0  ;;  %195 = vst.msk [vmem:[#allocation2 + $0x18] sm:$0xff] %vm191_vm0, %v7688_v0  ;;  %v219_v17 = vld [vmem:[#allocation5 + $0x8] sm:$0xff]  ;;  %v220_v18 = vld [vmem:[#allocation5 + $0x10] sm:$0xff]  ;;  %v6398_v19 = vpack.c.bf16 %v245_v14, %v243_v13  ;;  %vm7691_vm9 = vmmov 0   ;;  %s8758_s14 = sld [smem:[#allocation34_spill]] }
  0xc8   :  { %196 = vst.msk [vmem:[#allocation2 + $0x20] sm:$0xff] %vm191_vm0, %v7688_v0  ;;  %197 = vst.msk [vmem:[#allocation2 + $0x28] sm:$0xff] %vm191_vm0, %v7688_v0  ;;  %v244_v20 = vld [vmem:[#allocation8 + $0x10] sm:$0xff]  ;;  %v221_v21 = vld [vmem:[#allocation5 + $0x18] sm:$0xff]  ;;  %s7692_s13 = smov [#allocation20]  }
  0xc9   :  { %198 = vst.msk [vmem:[#allocation2 + $0x30] sm:$0xff] %vm191_vm0, %v7688_v0  ;;  %199 = vst.msk [vmem:[#allocation2 + $0x38] sm:$0xff] %vm191_vm0, %v7688_v0  ;;  %v222_v22 = vld [vmem:[#allocation5 + $0x20] sm:$0xff]  ;;  %v247_v23 = vld [vmem:[#allocation8 + $0x28] sm:$0xff]  ;;  %6397 = vmatpush1.bf16.msra.mxu0 %v6396_v15  ;;  %v6400_v28 = vpack.c.bf16 %v244_v20, %v242_v16  ;;  %s5102_s11 = sshll.u32 %s7692_s13, 4  ;;  %s5103_s11 = int_to_ptr.vmem [resolvable:$true] %s5102_s11 }
  0xca   :  { %200 = vst.msk [vmem:[#allocation2 + $0x40] sm:$0xff] %vm191_vm0, %v7688_v0  ;;  %201 = vst.msk [vmem:[#allocation2 + $0x48] sm:$0xff] %vm191_vm0, %v7688_v0  ;;  %v249_v24 = vld [vmem:[#allocation8 + $0x38] sm:$0xff]  ;;  %v223_v25 = vld [vmem:[#allocation5 + $0x28] sm:$0xff]  ;;  %6399 = vmatprep.subr.bf16.mxu0 %v6398_v19  ;;  %s7641_s30 = scalar_lea.vmem %s5103_s11, 32  ;;  %p7646_p3 = scmp.lt.s32.totalorder %s5103_s11, %s5103_s11 }
  0xcb   :  { %202 = vst.msk [vmem:[#allocation2 + $0x50] sm:$0xff] %vm191_vm0, %v7688_v0  ;;  %203 = vst.msk [vmem:[#allocation2 + $0x58] sm:$0xff] %vm191_vm0, %v7688_v0  ;;  %v224_v26 = vld [vmem:[#allocation5 + $0x30] sm:$0xff]  ;;  %v225_v27 = vld [vmem:[#allocation5 + $0x38] sm:$0xff]  ;;  %v6402_v29 = vpack.c.bf16 %v249_v24, %v247_v23  ;;  %p7642_p2 = scmp.ne.s32.totalorder %s5103_s11, %s7641_s30  ;;  %p7647_p4 = scmp.lt.s32.totalorder %s7641_s30, %s7641_s30 }
  0xcc   :  { %226 = vst.msk [vmem:[#allocation2 + $0x8] sm:$0xff] %vm191_vm0, %v218_v12  ;;  %227 = vst.msk [vmem:[#allocation2 + $0x10] sm:$0xff] %vm191_vm0, %v219_v17  ;;  %v246_v30 = vld [vmem:[#allocation8 + $0x20] sm:$0xff]  ;;  %v248_v31 = vld [vmem:[#allocation8 + $0x30] sm:$0xff] }
  0xcd   :  { %228 = vst.msk [vmem:[#allocation2 + $0x18] sm:$0xff] %vm191_vm0, %v220_v18  ;;  %229 = vst.msk [vmem:[#allocation2 + $0x20] sm:$0xff] %vm191_vm0, %v221_v21  ;;  %v551_v33 = vld [vmem:[#allocation8 + $0x88] sm:$0xff]  ;;  %v553_v34 = vld [vmem:[#allocation8 + $0x98] sm:$0xff]  ;;  %v6404_v36 = vpack.c.bf16 %v248_v31, %v246_v30  ;;  %p7648_p5 = por %p7647_p4, %p7646_p3 }
  0xce   :  { %230 = vst.msk [vmem:[#allocation2 + $0x38] sm:$0xff] %vm191_vm0, %v222_v22  ;;  %231 = vst.msk [vmem:[#allocation2 + $0x40] sm:$0xff] %vm191_vm0, %v223_v25  ;;  %v6406_v37 = vpack.c.bf16 %v553_v34, %v551_v33  ;;  %v550_v44 = vld [vmem:[#allocation8 + $0x80] sm:$0xff]  ;;  %v552_v45 = vld [vmem:[#allocation8 + $0x90] sm:$0xff] }
  0xcf   :  { %232 = vst.msk [vmem:[#allocation2 + $0x48] sm:$0xff] %vm191_vm0, %v224_v26  ;;  %233 = vst.msk [vmem:[#allocation2 + $0x50] sm:$0xff] %vm191_vm0, %v225_v27  ;;  %v555_v46 = vld [vmem:[#allocation8 + $0xa8] sm:$0xff]  ;;  %v557_v47 = vld [vmem:[#allocation8 + $0xb8] sm:$0xff]  ;;  %v6408_v49 = vpack.c.bf16 %v552_v45, %v550_v44  ;;  %p7649_p6 = pnand %p7648_p5, %p7642_p2 }
  0xd0   :  { %v6410_v50 = vpack.c.bf16 %v557_v47, %v555_v46  ;;  %v554_v51 = vld [vmem:[#allocation8 + $0xa0] sm:$0xff]  ;;  %v556_v52 = vld [vmem:[#allocation8 + $0xb0] sm:$0xff]  ;;  %v721_v53 = vld [vmem:[#allocation8 + $0xc8] sm:$0xff] }
  0xd1   :  { %v723_v54 = vld [vmem:[#allocation8 + $0xd8] sm:$0xff]  ;;  %v6412_v56 = vpack.c.bf16 %v556_v52, %v554_v51  ;;  %v720_v1 = vld [vmem:[#allocation8 + $0xc0] sm:$0xff]  ;;  %v722_v2 = vld [vmem:[#allocation8 + $0xd0] sm:$0xff] }
  0xd2   :  { %v6414_v57 = vpack.c.bf16 %v723_v54, %v721_v53  ;;  %v725_v3 = vld [vmem:[#allocation8 + $0xe8] sm:$0xff]  ;;  %v727_v4 = vld [vmem:[#allocation8 + $0xf8] sm:$0xff]  ;;  %v6416_v6 = vpack.c.bf16 %v722_v2, %v720_v1  ;;  %v724_v8 = vld [vmem:[#allocation8 + $0xe0] sm:$0xff] }
  0xd3   :  { %v250_v32 = vld [vmem:[#allocation2 + $0x7] sm:$0xff]  ;;  %v251_v35 = vld [vmem:[#allocation2 + $0xf] sm:$0xff]  ;;  %v6418_v7 = vpack.c.bf16 %v727_v4, %v725_v3  ;;  %v891_v10 = vld [vmem:[#allocation8 + $0x108] sm:$0xff] }
  0xd4   :  { %5115 = vmatmul.mubr.msk.f32.vlgmr.msra.gmra.mrb[0].mxu0 %vm191_vm0, %v250_v32  ;;  %v252_v38 = vld [vmem:[#allocation2 + $0x17] sm:$0xff]  ;;  %v253_v39 = vld [vmem:[#allocation2 + $0x1f] sm:$0xff]  ;;  %v235_v55 = vld [vmem:[#allocation2 + $0xe] sm:$0xff] }
  0xd5   :  { %6401 = vmatpush1.bf16.msra.mxu0 %v6400_v28  ;;  %361 = vmatprep.mubr.f32.mxu0 %v7688_v0  ;;  %v254_v40 = vld [vmem:[#allocation2 + $0x37] sm:$0xff]  ;;  %v255_v41 = vld [vmem:[#allocation2 + $0x3f] sm:$0xff]  ;;  %v541_v5 = vld [vmem:[#allocation2 + $0x8] sm:$0xff] }
  0xd6   :  { %6403 = vmatprep.subr.bf16.mxu0 %v6402_v29  ;;  %v256_v42 = vld [vmem:[#allocation2 + $0x47] sm:$0xff]  ;;  %v257_v43 = vld [vmem:[#allocation2 + $0x4f] sm:$0xff]  ;;  %v237_v59 = vld [vmem:[#allocation2 + $0x1e] sm:$0xff] }
  0xd7   :  { %v234_v48 = vld [vmem:[#allocation2 + $0x6] sm:$0xff]  ;;  %v236_v58 = vld [vmem:[#allocation2 + $0x16] sm:$0xff]  ;;  %v239_v61 = vld [vmem:[#allocation2 + $0x3e] sm:$0xff] }
  0xd8   :  { %5116 = vmatmul.mubr.msk.f32.gmra.mrb[2].mxu0 %vm191_vm0, %v251_v35  ;;  %v238_v60 = vld [vmem:[#allocation2 + $0x36] sm:$0xff]  ;;  %v240_v62 = vld [vmem:[#allocation2 + $0x46] sm:$0xff]  ;;  %v241_v63 = vld [vmem:[#allocation2 + $0x4e] sm:$0xff] }
  0xd9   :  { %367 = vmatprep.mubr.f32.mxu0 %v7688_v0  ;;  %6405 = vmatpush1.bf16.msra.mxu0 %v6404_v36  ;;  %v726_v9 = vld [vmem:[#allocation8 + $0xf0] sm:$0xff]  ;;  %v893_v11 = vld [vmem:[#allocation8 + $0x118] sm:$0xff]  ;;  %v542_v12 = vld [vmem:[#allocation2 + $0x10] sm:$0xff] }
  0xda   :  { %6407 = vmatprep.subr.bf16.mxu0 %v6406_v37  ;;  %v6420_v13 = vpack.c.bf16 %v726_v9, %v724_v8  ;;  %v6422_v14 = vpack.c.bf16 %v893_v11, %v891_v10  ;;  %v543_v15 = vld [vmem:[#allocation2 + $0x18] sm:$0xff]  ;;  %v544_v16 = vld [vmem:[#allocation2 + $0x20] sm:$0xff]  ;;  %v547_v19 = vld [vmem:[#allocation2 + $0x48] sm:$0xff]  ;;  %v1053_v9 = vlaneseq }
  0xdb   :  { %v545_v17 = vld [vmem:[#allocation2 + $0x38] sm:$0xff]  ;;  %v546_v18 = vld [vmem:[#allocation2 + $0x40] sm:$0xff]  ;;  %v548_v20 = vld [vmem:[#allocation2 + $0x50] sm:$0xff] }
  0xdc   :  { %5117 = vmatmul.mubr.msk.f32.gmra.mrb[4].mxu0 %vm191_vm0, %v252_v38  ;;  %v890_v21 = vld [vmem:[#allocation8 + $0x100] sm:$0xff]  ;;  %v892_v22 = vld [vmem:[#allocation8 + $0x110] sm:$0xff]  ;;  %v895_v23 = vld [vmem:[#allocation8 + $0x128] sm:$0xff]  ;;  %v1054_v10 = vshrl.u32 %v1053_v9, 7 }
  0xdd   :  { %373 = vmatprep.mubr.f32.mxu0 %v7688_v0  ;;  %v897_v24 = vld [vmem:[#allocation8 + $0x138] sm:$0xff]  ;;  %v6424_v26 = vpack.c.bf16 %v892_v22, %v890_v21  ;;  %v894_v28 = vld [vmem:[#allocation8 + $0x120] sm:$0xff]  ;;  %v896_v29 = vld [vmem:[#allocation8 + $0x130] sm:$0xff] }
  0xde   :  { %v711_v25 = vld [vmem:[#allocation2 + $0x9] sm:$0xff]  ;;  %v6426_v27 = vpack.c.bf16 %v897_v24, %v895_v23  ;;  %v712_v30 = vld [vmem:[#allocation2 + $0x11] sm:$0xff]  ;;  %v6428_v31 = vpack.c.bf16 %v896_v29, %v894_v28  ;;  %v713_v32 = vld [vmem:[#allocation2 + $0x19] sm:$0xff]  ;;  %v8062_v11 = vsub.s32 0, %v1054_v10 }
  0xdf   :  { %v714_v33 = vld [vmem:[#allocation2 + $0x21] sm:$0xff]  ;;  %v715_v34 = vld [vmem:[#allocation2 + $0x39] sm:$0xff]  ;;  %v717_v36 = vld [vmem:[#allocation2 + $0x49] sm:$0xff] }
  0xe0   :  { %5118 = vmatmul.mubr.msk.f32.gmra.mrb[6].mxu0 %vm191_vm0, %v253_v39  ;;  %v716_v35 = vld [vmem:[#allocation2 + $0x41] sm:$0xff]  ;;  %v718_v37 = vld [vmem:[#allocation2 + $0x51] sm:$0xff] }
  0xe1   :  { %379 = vmatprep.mubr.f32.mxu0 %v7688_v0  ;;  %v881_v38 = vld [vmem:[#allocation2 + $0xa] sm:$0xff]  ;;  %v882_v39 = vld [vmem:[#allocation2 + $0x12] sm:$0xff]  ;;  %v1610_v54 = vld [vmem:[#allocation10 + $0xb0] sm:$0xff] }
  0xe2   :  { %v887_v44 = vld [vmem:[#allocation2 + $0x4a] sm:$0xff]  ;;  %v888_v45 = vld [vmem:[#allocation2 + $0x52] sm:$0xff]  ;;  %v1618_v3 = vld [vmem:[#allocation10 + $0xf0] sm:$0xff] }
  0xe3   :  { %v1604_v46 = vld [vmem:[#allocation10 + $0x80] sm:$0xff]  ;;  %v1605_v47 = vld [vmem:[#allocation10 + $0x88] sm:$0xff]  ;;  %v1619_v4 = vld [vmem:[#allocation10 + $0xf8] sm:$0xff] }
  0xe4   :  { %5119 = vmatmul.mubr.msk.f32.gmra.mrb[8].mxu0 %vm191_vm0, %v254_v40  ;;  %v883_v40 = vld [vmem:[#allocation2 + $0x1a] sm:$0xff]  ;;  %v1608_v52 = vld [vmem:[#allocation10 + $0xa0] sm:$0xff] }
  0xe5   :  { %385 = vmatprep.mubr.f32.mxu0 %v7688_v0  ;;  %v1609_v53 = vld [vmem:[#allocation10 + $0xa8] sm:$0xff]  ;;  %v1585_v29 = vld [vmem:[#allocation10 + $0x10] sm:$0xff] }
  0xe6   :  { %v1617_v1 = vld [vmem:[#allocation10 + $0xe8] sm:$0xff] }
  0xe8   :  { %5120 = vmatmul.mubr.msk.f32.gmra.mrb[10].mxu0 %vm191_vm0, %v255_v41  ;;  %v884_v41 = vld [vmem:[#allocation2 + $0x22] sm:$0xff] }
  0xe9   :  { %391 = vmatprep.mubr.f32.mxu0 %v7688_v0 }
  0xec   :  { %5121 = vmatmul.mubr.msk.f32.gmra.mrb[12].mxu0 %vm191_vm0, %v256_v42  ;;  %v885_v42 = vld [vmem:[#allocation2 + $0x3a] sm:$0xff] }
  0xed   :  { %397 = vmatprep.mubr.f32.mxu0 %v7688_v0 }
  0xf0   :  { %5122 = vmatmul.mubr.msk.f32.gmra.mrb[14].mxu0 %vm191_vm0, %v257_v43  ;;  %v886_v43 = vld [vmem:[#allocation2 + $0x42] sm:$0xff] }
  0xf1   :  { %492 = vmatprep.mubr.f32.mxu0 %v7688_v0 }
  0xf4   :  { %5123 = vmatmul.mubr.msk.f32.vlgmr.msra.gmra.mrb[0].mxu0 %vm191_vm0, %v234_v48  ;;  %v6430_v48 = vpack.c.bf16 %v1605_v47, %v1604_v46 }
  0xf5   :  { %6409 = vmatpush1.bf16.msra.mxu0 %v6408_v49  ;;  %498 = vmatprep.mubr.f32.mxu0 %v7688_v0  ;;  %v1606_v49 = vld [vmem:[#allocation10 + $0x90] sm:$0xff] }
  0xf6   :  { %6411 = vmatprep.subr.bf16.mxu0 %v6410_v50  ;;  %6431 = vmatprep.subr.bf16.mxu1 %v6430_v48  ;;  %v1607_v50 = vld [vmem:[#allocation10 + $0x98] sm:$0xff] }
  0xf7   :  { %6433 = vmatpush3.bf16.msra.mxu1 %v6430_v48  ;;  %v6434_v51 = vpack.c.bf16 %v1607_v50, %v1606_v49 }
  0xf8   :  { %5124 = vmatmul.mubr.msk.f32.gmra.mrb[2].mxu0 %vm191_vm0, %v235_v55  ;;  %v1611_v55 = vld [vmem:[#allocation10 + $0xb8] sm:$0xff] }
  0xf9   :  { %504 = vmatprep.mubr.f32.mxu0 %v7688_v0  ;;  %6413 = vmatpush1.bf16.msra.mxu0 %v6412_v56  ;;  %v6442_v56 = vpack.c.bf16 %v1611_v55, %v1610_v54 }
  0xfa   :  { %6415 = vmatprep.subr.bf16.mxu0 %v6414_v57  ;;  %6435 = vmatprep.subr.bf16.mxu1 %v6434_v51  ;;  %v1612_v57 = vld [vmem:[#allocation10 + $0xc0] sm:$0xff] }
  0xfb   :  { %6437 = vmatpush3.bf16.msra.mxu1 %v6434_v51 }
  0xfc   :  { %5125 = vmatmul.mubr.msk.f32.gmra.mrb[4].mxu0 %vm191_vm0, %v236_v58  ;;  %v1613_v58 = vld [vmem:[#allocation10 + $0xc8] sm:$0xff] }
  0xfd   :  { %510 = vmatprep.mubr.f32.mxu0 %v7688_v0 }
 0x100   :  { %5126 = vmatmul.mubr.msk.f32.gmra.mrb[6].mxu0 %vm191_vm0, %v237_v59  ;;  %v6446_v59 = vpack.c.bf16 %v1613_v58, %v1612_v57 }
 0x101   :  { %516 = vmatprep.mubr.f32.mxu0 %v7688_v0 }
 0x104   :  { %5127 = vmatmul.mubr.msk.f32.gmra.mrb[8].mxu0 %vm191_vm0, %v238_v60  ;;  %v1614_v60 = vld [vmem:[#allocation10 + $0xd0] sm:$0xff] }
 0x105   :  { %522 = vmatprep.mubr.f32.mxu0 %v7688_v0 }
 0x108   :  { %5128 = vmatmul.mubr.msk.f32.gmra.mrb[10].mxu0 %vm191_vm0, %v239_v61  ;;  %v1615_v61 = vld [vmem:[#allocation10 + $0xd8] sm:$0xff] }
 0x109   :  { %528 = vmatprep.mubr.f32.mxu0 %v7688_v0 }
 0x10c   :  { %5129 = vmatmul.mubr.msk.f32.gmra.mrb[12].mxu0 %vm191_vm0, %v240_v62  ;;  %v6450_v62 = vpack.c.bf16 %v1615_v61, %v1614_v60 }
 0x10d   :  { %534 = vmatprep.mubr.f32.mxu0 %v7688_v0 }
 0x110   :  { %5130 = vmatmul.mubr.msk.f32.gmra.mrb[14].mxu0 %vm191_vm0, %v241_v63  ;;  %v1616_v63 = vld [vmem:[#allocation10 + $0xe0] sm:$0xff] }
 0x111   :  { %646 = vmatprep.mubr.f32.mxu0 %v7688_v0  ;;  %v6454_v2 = vpack.c.bf16 %v1617_v1, %v1616_v63 }
 0x114   :  { %5131 = vmatmul.mubr.msk.f32.vlgmr.msra.gmra.mrb[0].mxu0 %vm191_vm0, %v541_v5  ;;  %v6458_v5 = vpack.c.bf16 %v1619_v4, %v1618_v3 }
 0x115   :  { %6417 = vmatpush1.bf16.msra.mxu0 %v6416_v6  ;;  %652 = vmatprep.mubr.f32.mxu0 %v7688_v0  ;;  %v1583_v6 = vld [vmem:[#allocation10] sm:$0xff] }
 0x116   :  { %6419 = vmatprep.subr.bf16.mxu0 %v6418_v7  ;;  %v1584_v7 = vld [vmem:[#allocation10 + $0x8] sm:$0xff] }
 0x117   :  { %v8058_v8 = vpack.c.bf16 %v1584_v7, %v1583_v6 }
 0x118   :  { %5132 = vmatmul.mubr.msk.f32.gmra.mrb[2].mxu0 %vm191_vm0, %v542_v12  ;;  %v1051_v12 = vld [vmem:[%s8755_s1] sm:$0x3] }
 0x119   :  { %658 = vmatprep.mubr.f32.mxu0 %v7688_v0  ;;  %6421 = vmatpush1.bf16.msra.mxu0 %v6420_v13  ;;  %v8067_v13 = vsub.s32 1, %v1054_v10 }
 0x11a   :  { %6423 = vmatprep.subr.bf16.mxu0 %v6422_v14  ;;  %v7689_v14 = vmov 1983009808  }
 0x11c   :  { %5133 = vmatmul.mubr.msk.f32.gmra.mrb[4].mxu0 %vm191_vm0, %v543_v15  ;;  %v1113_v15 = vunpack.c.l.s4 %v7689_v14 }
 0x11d   :  { %664 = vmatprep.mubr.f32.mxu0 %v7688_v0 }
 0x120   :  { %5134 = vmatmul.mubr.msk.f32.gmra.mrb[6].mxu0 %vm191_vm0, %v544_v16  ;;  %v8070_v16 = vrot.slane %v1051_v12, %v8062_v11 }
 0x121   :  { %670 = vmatprep.mubr.f32.mxu0 %v7688_v0 }
 0x124   :  { %5135 = vmatmul.mubr.msk.f32.gmra.mrb[8].mxu0 %vm191_vm0, %v545_v17  ;;  %v8073_v17 = vrot.slane %v1051_v12, %v8067_v13 }
 0x125   :  { %676 = vmatprep.mubr.f32.mxu0 %v7688_v0 }
 0x128   :  { %5136 = vmatmul.mubr.msk.f32.gmra.mrb[10].mxu0 %vm191_vm0, %v546_v18 }
 0x129   :  { %682 = vmatprep.mubr.f32.mxu0 %v7688_v0 }
 0x12c   :  { %5137 = vmatmul.mubr.msk.f32.gmra.mrb[12].mxu0 %vm191_vm0, %v547_v19  ;;  %v1114_v19 = vunpack.c.0.s8 %v1113_v15 }
 0x12d   :  { %688 = vmatprep.mubr.f32.mxu0 %v7688_v0 }
 0x12e   :  { %v8077_v24 = vsub.s32 %v1114_v19, %v1054_v10 }
 0x130   :  { %5138 = vmatmul.mubr.msk.f32.gmra.mrb[14].mxu0 %vm191_vm0, %v548_v20 }
 0x131   :  { %816 = vmatprep.mubr.f32.mxu0 %v7688_v0 }
 0x134   :  { %5139 = vmatmul.mubr.msk.f32.vlgmr.msra.gmra.mrb[0].mxu0 %vm191_vm0, %v711_v25 }
 0x135   :  { %6425 = vmatpush1.bf16.msra.mxu0 %v6424_v26  ;;  %822 = vmatprep.mubr.f32.mxu0 %v7688_v0 }
 0x136   :  { %6427 = vmatprep.subr.bf16.mxu0 %v6426_v27 }
 0x138   :  { %5140 = vmatmul.mubr.msk.f32.gmra.mrb[2].mxu0 %vm191_vm0, %v712_v30  ;;  %v1586_v30 = vld [vmem:[#allocation10 + $0x18] sm:$0xff] }
 0x139   :  { %828 = vmatprep.mubr.f32.mxu0 %v7688_v0  ;;  %6429 = vmatpush1.bf16.msra.mxu0 %v6428_v31  ;;  %v1587_v31 = vld [vmem:[#allocation10 + $0x20] sm:$0xff]  ;;  %v8085_v46 = vpack.c.bf16 %v1586_v30, %v1585_v29 }
 0x13a   :  { %6623 = vmatprep.subr.bf16.mxu0 %v6430_v48 }
 0x13c   :  { %5141 = vmatmul.mubr.msk.f32.gmra.mrb[4].mxu0 %vm191_vm0, %v713_v32 }
 0x13d   :  { %834 = vmatprep.mubr.f32.mxu0 %v7688_v0 }
 0x140   :  { %5142 = vmatmul.mubr.msk.f32.gmra.mrb[6].mxu0 %vm191_vm0, %v714_v33 }
 0x141   :  { %840 = vmatprep.mubr.f32.mxu0 %v7688_v0 }
 0x144   :  { %5143 = vmatmul.mubr.msk.f32.gmra.mrb[8].mxu0 %vm191_vm0, %v715_v34  ;;  %v1588_v34 = vld [vmem:[#allocation10 + $0x28] sm:$0xff] }
 0x145   :  { %846 = vmatprep.mubr.f32.mxu0 %v7688_v0  ;;  %v8087_v47 = vpack.c.bf16 %v1588_v34, %v1587_v31 }
 0x148   :  { %5144 = vmatmul.mubr.msk.f32.gmra.mrb[10].mxu0 %vm191_vm0, %v716_v35  ;;  %v1589_v35 = vld [vmem:[#allocation10 + $0x30] sm:$0xff] }
 0x149   :  { %852 = vmatprep.mubr.f32.mxu0 %v7688_v0 }
 0x14c   :  { %5145 = vmatmul.mubr.msk.f32.gmra.mrb[12].mxu0 %vm191_vm0, %v717_v36  ;;  %v1590_v36 = vld [vmem:[#allocation10 + $0x38] sm:$0xff] }
 0x14d   :  { %858 = vmatprep.mubr.f32.mxu0 %v7688_v0 }
 0x150   :  { %5146 = vmatmul.mubr.msk.f32.gmra.mrb[14].mxu0 %vm191_vm0, %v718_v37 }
 0x151   :  { %986 = vmatprep.mubr.f32.mxu0 %v7688_v0 }
 0x154   :  { %5147 = vmatmul.mubr.msk.f32.vlgmr.msra.gmra.mrb[0].mxu0 %vm191_vm0, %v881_v38 }
 0x155   :  { %992 = vmatprep.mubr.f32.mxu0 %v7688_v0  ;;  %6625 = vmatpush3.bf16.msra.mxu0 %v6430_v48  ;;  %v8089_v48 = vpack.c.bf16 %v1590_v36, %v1589_v35 }
 0x156   :  { %6627 = vmatprep.subr.bf16.mxu0 %v6434_v51 }
 0x158   :  { %5148 = vmatmul.mubr.msk.f32.gmra.mrb[2].mxu0 %vm191_vm0, %v882_v39 }
 0x159   :  { %998 = vmatprep.mubr.f32.mxu0 %v7688_v0  ;;  %6629 = vmatpush3.bf16.msra.mxu0 %v6434_v51 }
 0x15c   :  { %5149 = vmatmul.mubr.msk.f32.gmra.mrb[4].mxu0 %vm191_vm0, %v883_v40 }
 0x15d   :  { %1004 = vmatprep.mubr.f32.mxu0 %v7688_v0 }
 0x160   :  { %5150 = vmatmul.mubr.msk.f32.gmra.mrb[6].mxu0 %vm191_vm0, %v884_v41 }
 0x161   :  { %1010 = vmatprep.mubr.f32.mxu0 %v7688_v0 }
 0x164   :  { %5151 = vmatmul.mubr.msk.f32.gmra.mrb[8].mxu0 %vm191_vm0, %v885_v42  ;;  %v1591_v42 = vld [vmem:[#allocation10 + $0x40] sm:$0xff] }
 0x165   :  { %1016 = vmatprep.mubr.f32.mxu0 %v7688_v0 }
 0x168   :  { %5152 = vmatmul.mubr.msk.f32.gmra.mrb[10].mxu0 %vm191_vm0, %v886_v43  ;;  %v1592_v43 = vld [vmem:[#allocation10 + $0x48] sm:$0xff] }
 0x169   :  { %1022 = vmatprep.mubr.f32.mxu0 %v7688_v0  ;;  %v8097_v55 = vpack.c.bf16 %v1592_v43, %v1591_v42 }
 0x16c   :  { %5153 = vmatmul.mubr.msk.f32.gmra.mrb[12].mxu0 %vm191_vm0, %v887_v44 }
 0x16d   :  { %1028 = vmatprep.mubr.f32.mxu0 %v7688_v0  ;;  %v6438_v0 = vpack.c.bf16 %v1609_v53, %v1608_v52 }
 0x16f   :  { %6439 = vmatprep.subr.bf16.mxu1 %v6438_v0  ;;  %6631 = vmatprep.subr.bf16.mxu0 %v6438_v0 }
 0x170   :  { %5154 = vmatmul.mubr.msk.f32.gmra.mrb[14].mxu0 %vm191_vm0, %v888_v45  ;;  %6441 = vmatpush3.bf16.msra.mxu1 %v6438_v0 }
 0x171   :  { %6633 = vmatpush3.bf16.msra.mxu0 %v6438_v0  ;;  %6443 = vmatprep.subr.bf16.mxu1 %v6442_v56 }
 0x172   :  { %6635 = vmatprep.subr.bf16.mxu0 %v6442_v56 }
 0x174   :  { %6445 = vmatpush3.bf16.msra.mxu1 %v6442_v56 }
 0x175   :  { %6637 = vmatpush3.bf16.msra.mxu0 %v6442_v56  ;;  %6447 = vmatprep.subr.bf16.mxu1 %v6446_v59 }
 0x176   :  { %6639 = vmatprep.subr.bf16.mxu0 %v6446_v59 }
 0x178   :  { %6449 = vmatpush3.bf16.msra.mxu1 %v6446_v59 }
 0x179   :  { %6641 = vmatpush3.bf16.msra.mxu0 %v6446_v59  ;;  %6451 = vmatprep.subr.bf16.mxu1 %v6450_v62 }
 0x17a   :  { %6643 = vmatprep.subr.bf16.mxu0 %v6450_v62 }
 0x17c   :  { %6453 = vmatpush3.bf16.msra.mxu1 %v6450_v62 }
 0x17d   :  { %6645 = vmatpush3.bf16.msra.mxu0 %v6450_v62  ;;  %6455 = vmatprep.subr.bf16.mxu1 %v6454_v2 }
 0x17e   :  { %6647 = vmatprep.subr.bf16.mxu0 %v6454_v2 }
 0x180   :  { %6457 = vmatpush3.bf16.msra.mxu1 %v6454_v2 }
 0x181   :  { %6649 = vmatpush3.bf16.msra.mxu0 %v6454_v2  ;;  %6459 = vmatprep.subr.bf16.mxu1 %v6458_v5 }
 0x182   :  { %6651 = vmatprep.subr.bf16.mxu0 %v6458_v5 }
 0x184   :  { %6461 = vmatpush3.bf16.msra.mxu1 %v6458_v5 }
 0x185   :  { %6653 = vmatpush3.bf16.msra.mxu0 %v6458_v5  ;;  %6463 = vmatprep.subr.bf16.mxu1 %v8058_v8 }
 0x186   :  { %6655 = vmatprep.subr.bf16.mxu0 %v8058_v8 }
 0x227   :  { %v988_v18 = vpop.f32.mrb[0].mxu0 }
 0x228   :  { %v1063_v20 = vadd.f32 %v8070_v16, %v988_v18  ;;  %v990_v21 = vpop.f32.mrb[1].mxu0 }
 0x229   :  { %v1064_v22 = vadd.f32 %v8073_v17, %v990_v21 }
 0x22a   :  { %v1079_v23 = vmax.f32 %v1063_v20, 0.0 }
 0x22b   :  { %v1080_v25 = vmax.f32 %v1064_v22, 0.0  ;;  %v994_v26 = vpop.f32.mrb[2].mxu0 }
 0x22c   :  { %v1065_v27 = vadd.f32 %v8070_v16, %v994_v26  ;;  %v996_v28 = vpop.f32.mrb[3].mxu0 }
 0x22d   :  { %v1095_v32 = vmax.f32 %v1079_v23, %v1080_v25  ;;  %v1066_v33 = vadd.f32 %v8073_v17, %v996_v28 }
 0x22e   :  { %v1081_v37 = vmax.f32 %v1065_v27, 0.0 }
 0x22f   :  { %v1111_v38 = vcombine.high %v1095_v32, %v1095_v32  ;;  %v1118_v39 = vrot.slane %v1095_v32, %v8077_v24  ;;  %v1082_v40 = vmax.f32 %v1066_v33, 0.0  ;;  %v1000_v41 = vpop.f32.mrb[4].mxu0 }
 0x230   :  { %v8083_v44 = vadd.f32 %v8070_v16, %v1000_v41  ;;  %v1002_v45 = vpop.f32.mrb[5].mxu0 }
 0x231   :  { %v1125_v49 = vrot.slane %v1111_v38, %v8077_v24  ;;  %v1126_v50 = vcombine.high %v1118_v39, %v1118_v39  ;;  %v1280_v51 = vsel %vm1279_vm1, %v1118_v39, -inf  ;;  %v1096_v52 = vmax.f32 %v1081_v37, %v1082_v40 }
 0x232   :  { %v1281_v53 = vrot.slane %v1280_v51, 4  ;;  %v1083_v0 = vmax.f32 %v8083_v44, 0.0  ;;  %v8095_v54 = vadd.f32 %v8073_v17, %v1002_v45 }
 0x233   :  { %v1127_v56 = vcombine.high %v1125_v49, %v1125_v49  ;;  %v1287_v57 = vsel %vm1279_vm1, %v1126_v50, -inf  ;;  %v1294_v58 = vsel %vm1279_vm1, %v1125_v49, -inf  ;;  %v1128_v59 = vcombine.high %v1096_v52, %v1096_v52  ;;  %v1006_v60 = vpop.f32.mrb[6].mxu0 }
 0x234   :  { %v1282_v61 = vmax.f32 %v1280_v51, %v1281_v53  ;;  %v1288_v62 = vrot.slane %v1287_v57, 4  ;;  %v1295_v63 = vrot.slane %v1294_v58, 4  ;;  %v1135_v1 = vrot.slane %v1096_v52, %v8077_v24  ;;  %v8102_v2 = vpop.f32.mrb[7].mxu0 }
 0x235   :  { %v1301_v3 = vsel %vm1279_vm1, %v1127_v56, -inf  ;;  %v1142_v4 = vrot.slane %v1128_v59, %v8077_v24  ;;  %v1084_v5 = vmax.f32 %v8095_v54, 0.0  ;;  %v8108_v6 = vadd.f32 %v8070_v16, %v1006_v60 }
 0x236   :  { %v1283_v7 = vrot.slane %v1282_v61, 2  ;;  %v1289_v9 = vmax.f32 %v1287_v57, %v1288_v62  ;;  %v1296_v10 = vmax.f32 %v1294_v58, %v1295_v63  ;;  %v1302_v12 = vrot.slane %v1301_v3, 4 }
 0x237   :  { %v1143_v14 = vcombine.high %v1135_v1, %v1135_v1  ;;  %v1144_v15 = vcombine.high %v1142_v4, %v1142_v4  ;;  %v1308_v18 = vsel %vm1279_vm1, %v1135_v1, -inf  ;;  %v1322_v19 = vsel %vm1279_vm1, %v1142_v4, -inf  ;;  %v8112_v20 = vpop.f32.mrb[8].mxu0 }
 0x238   :  { %v1284_v21 = vmax.f32 %v1282_v61, %v1283_v7  ;;  %v1290_v22 = vrot.slane %v1289_v9, 2  ;;  %v1297_v23 = vrot.slane %v1296_v10, 2  ;;  %v1303_v25 = vmax.f32 %v1301_v3, %v1302_v12  ;;  %v8114_v26 = vpop.f32.mrb[9].mxu0 }
 0x239   :  { %v1309_v27 = vrot.slane %v1308_v18, 4  ;;  %v1315_v28 = vsel %vm1279_vm1, %v1143_v14, -inf  ;;  %v1323_v29 = vrot.slane %v1322_v19, 4  ;;  %v1329_v30 = vsel %vm1279_vm1, %v1144_v15, -inf }
 0x23a   :  { %v1285_v31 = vrot.slane %v1284_v21, 1  ;;  %v1291_v32 = vmax.f32 %v1289_v9, %v1290_v22  ;;  %v1298_v33 = vmax.f32 %v1296_v10, %v1297_v23  ;;  %v1304_v34 = vrot.slane %v1303_v25, 2 }
 0x23b   :  { %v1310_v35 = vmax.f32 %v1308_v18, %v1309_v27  ;;  %v1316_v36 = vrot.slane %v1315_v28, 4  ;;  %v1324_v37 = vmax.f32 %v1322_v19, %v1323_v29  ;;  %v1330_v38 = vrot.slane %v1329_v30, 4  ;;  %v8118_v39 = vpop.f32.mrb[10].mxu0 }
 0x23c   :  { %v1286_v40 = vmax.f32 %v1284_v21, %v1285_v31  ;;  %v1292_v41 = vrot.slane %v1291_v32, 1  ;;  %v1299_v42 = vrot.slane %v1298_v33, 1  ;;  %v1305_v43 = vmax.f32 %v1303_v25, %v1304_v34  ;;  %v8120_v45 = vpop.f32.mrb[11].mxu0 }
 0x23d   :  { %v1311_v49 = vrot.slane %v1310_v35, 2  ;;  %v1317_v50 = vmax.f32 %v1315_v28, %v1316_v36  ;;  %v1325_v51 = vrot.slane %v1324_v37, 2  ;;  %v1331_v52 = vmax.f32 %v1329_v30, %v1330_v38 }
 0x23e   :  { %v1293_v53 = vmax.f32 %v1291_v32, %v1292_v41  ;;  %v1300_v54 = vmax.f32 %v1298_v33, %v1299_v42  ;;  %v1306_v56 = vrot.slane %v1305_v43, 1  ;;  %v1097_v57 = vmax.f32 %v1083_v0, %v1084_v5 }
 0x23f   :  { %v1312_v58 = vmax.f32 %v1310_v35, %v1311_v49  ;;  %v1318_v59 = vrot.slane %v1317_v50, 2  ;;  %v1326_v60 = vmax.f32 %v1324_v37, %v1325_v51  ;;  %v1332_v61 = vrot.slane %v1331_v52, 2  ;;  %v8124_v62 = vpop.f32.mrb[12].mxu0 }
 0x240   :  { %v1307_v63 = vmax.f32 %v1305_v43, %v1306_v56  ;;  %v1537_v1 = vsel %vm1536_vm2, %v1293_v53, %v1286_v40  ;;  %v1145_v3 = vcombine.high %v1097_v57, %v1097_v57  ;;  %v1152_v4 = vrot.slane %v1097_v57, %v8077_v24  ;;  %v8128_v7 = vpop.f32.mrb[13].mxu0 }
 0x241   :  { %v1539_v9 = vsel %vm1538_vm3, %v1300_v54, %v1537_v1  ;;  %v1313_v10 = vrot.slane %v1312_v58, 1  ;;  %v1319_v12 = vmax.f32 %v1317_v50, %v1318_v59  ;;  %v1327_v44 = vrot.slane %v1326_v60, 1 }
 0x242   :  { %v1333_v0 = vmax.f32 %v1331_v52, %v1332_v61  ;;  %v1541_v5 = vsel %vm1540_vm4, %v1307_v63, %v1539_v9  ;;  %v1159_v14 = vrot.slane %v1145_v3, %v8077_v24  ;;  %v1160_v15 = vcombine.high %v1152_v4, %v1152_v4 }
 0x243   :  { %v1314_v18 = vmax.f32 %v1312_v58, %v1313_v10  ;;  %v1320_v19 = vrot.slane %v1319_v12, 1  ;;  %v1328_v21 = vmax.f32 %v1326_v60, %v1327_v44  ;;  %v1336_v22 = vsel %vm1279_vm1, %v1152_v4, -inf  ;;  %v8134_v23 = vpop.f32.mrb[14].mxu0 }
 0x244   :  { %v1334_v25 = vrot.slane %v1333_v0, 1  ;;  %v1161_v27 = vcombine.high %v1159_v14, %v1159_v14  ;;  %v1337_v28 = vrot.slane %v1336_v22, 4  ;;  %v1343_v29 = vsel %vm1279_vm1, %v1160_v15, -inf  ;;  %v8137_v30 = vpop.f32.mrb[15].mxu0 }
 0x245   :  { %v1321_v31 = vmax.f32 %v1319_v12, %v1320_v19  ;;  %v1543_v32 = vsel %vm1542_vm5, %v1314_v18, %v1541_v5  ;;  %v1344_v33 = vrot.slane %v1343_v29, 4  ;;  %v1350_v34 = vsel %vm1279_vm1, %v1159_v14, -inf }
 0x246   :  { %v1335_v35 = vmax.f32 %v1333_v0, %v1334_v25  ;;  %v1338_v36 = vmax.f32 %v1336_v22, %v1337_v28  ;;  %v1351_v37 = vrot.slane %v1350_v34, 4  ;;  %v1357_v38 = vsel %vm1279_vm1, %v1161_v27, -inf }
 0x247   :  { %v1545_v40 = vsel %vm1544_vm6, %v1321_v31, %v1543_v32  ;;  %v1345_v41 = vmax.f32 %v1343_v29, %v1344_v33  ;;  %v1358_v42 = vrot.slane %v1357_v38, 4  ;;  %v1085_v43 = vmax.f32 %v8108_v6, 0.0 }
 0x248   :  { %v1547_v49 = vsel %vm1546_vm7, %v1328_v21, %v1545_v40  ;;  %v1339_v50 = vrot.slane %v1338_v36, 2  ;;  %v1352_v51 = vmax.f32 %v1350_v34, %v1351_v37  ;;  %v1070_v52 = vadd.f32 %v8073_v17, %v8102_v2 }
 0x249   :  { %v8148_v53 = vsel %vm1548_vm8, %v1335_v35, %v1547_v49  ;;  %v1346_v54 = vrot.slane %v1345_v41, 2  ;;  %v1359_v56 = vmax.f32 %v1357_v38, %v1358_v42  ;;  %v1071_v57 = vadd.f32 %v8070_v16, %v8112_v20 }
 0x24a   :  { %1575 = vst [vmem:[#allocation3 + $0x8] sm:$0xff] %v8148_v53  ;;  %v1340_v58 = vmax.f32 %v1338_v36, %v1339_v50  ;;  %v1353_v59 = vrot.slane %v1352_v51, 2  ;;  %v1086_v6 = vmax.f32 %v1070_v52, 0.0  ;;  %v1072_v60 = vadd.f32 %v8073_v17, %v8114_v26  ;;  %5616 = vmatprep.mubr.f32.mxu1 %v8148_v53 }
 0x24b   :  { %v1347_v61 = vmax.f32 %v1345_v41, %v1346_v54  ;;  %v1360_v2 = vrot.slane %v1359_v56, 2  ;;  %v1087_v63 = vmax.f32 %v1071_v57, 0.0  ;;  %v1073_v1 = vadd.f32 %v8070_v16, %v8118_v39 }
 0x24c   :  { %v1341_v3 = vrot.slane %v1340_v58, 1  ;;  %v1354_v4 = vmax.f32 %v1352_v51, %v1353_v59  ;;  %v1098_v9 = vmax.f32 %v1085_v43, %v1086_v6  ;;  %v1088_v20 = vmax.f32 %v1072_v60, 0.0 }
 0x24d   :  { %v1348_v10 = vrot.slane %v1347_v61, 1  ;;  %v1361_v12 = vmax.f32 %v1359_v56, %v1360_v2  ;;  %v1089_v44 = vmax.f32 %v1073_v1, 0.0  ;;  %v1074_v0 = vadd.f32 %v8073_v17, %v8120_v45 }
 0x24e   :  { %v1342_v5 = vmax.f32 %v1340_v58, %v1341_v3  ;;  %v1355_v26 = vrot.slane %v1354_v4, 1  ;;  %v1162_v14 = vcombine.high %v1098_v9, %v1098_v9  ;;  %v1169_v15 = vrot.slane %v1098_v9, %v8077_v24 }
 0x24f   :  { %v1349_v18 = vmax.f32 %v1347_v61, %v1348_v10  ;;  %v1362_v19 = vrot.slane %v1361_v12, 1  ;;  %v1099_v21 = vmax.f32 %v1087_v63, %v1088_v20  ;;  %v1090_v22 = vmax.f32 %v1074_v0, 0.0 }
 0x250   :  { %v1356_v39 = vmax.f32 %v1354_v4, %v1355_v26  ;;  %v1176_v25 = vrot.slane %v1162_v14, %v8077_v24  ;;  %v1177_v27 = vcombine.high %v1169_v15, %v1169_v15  ;;  %v1364_v28 = vsel %vm1279_vm1, %v1169_v15, -inf }
 0x251   :  { %v1363_v29 = vmax.f32 %v1361_v12, %v1362_v19  ;;  %v1550_v31 = vsel %vm1536_vm2, %v1349_v18, %v1342_v5  ;;  %v1365_v32 = vrot.slane %v1364_v28, 4  ;;  %v1179_v45 = vcombine.high %v1099_v21, %v1099_v21 }
 0x252   :  { %v1551_v33 = vsel %vm1538_vm3, %v1356_v39, %v1550_v31  ;;  %v1178_v34 = vcombine.high %v1176_v25, %v1176_v25  ;;  %v1371_v35 = vsel %vm1279_vm1, %v1177_v27, -inf  ;;  %v1378_v36 = vsel %vm1279_vm1, %v1176_v25, -inf }
 0x253   :  { %v1366_v37 = vmax.f32 %v1364_v28, %v1365_v32  ;;  %v1372_v38 = vrot.slane %v1371_v35, 4  ;;  %v1379_v40 = vrot.slane %v1378_v36, 4  ;;  %v1552_v41 = vsel %vm1540_vm4, %v1363_v29, %v1551_v33 }
 0x254   :  { %v1385_v42 = vsel %vm1279_vm1, %v1178_v34, -inf  ;;  %v1186_v43 = vrot.slane %v1099_v21, %v8077_v24  ;;  %v1193_v49 = vrot.slane %v1179_v45, %v8077_v24  ;;  %v1100_v50 = vmax.f32 %v1089_v44, %v1090_v22 }
 0x255   :  { %v1367_v51 = vrot.slane %v1366_v37, 2  ;;  %v1373_v52 = vmax.f32 %v1371_v35, %v1372_v38  ;;  %v1380_v54 = vmax.f32 %v1378_v36, %v1379_v40  ;;  %v1386_v56 = vrot.slane %v1385_v42, 4 }
 0x256   :  { %v1194_v57 = vcombine.high %v1186_v43, %v1186_v43  ;;  %v1195_v58 = vcombine.high %v1193_v49, %v1193_v49  ;;  %v1392_v59 = vsel %vm1279_vm1, %v1186_v43, -inf  ;;  %v1406_v6 = vsel %vm1279_vm1, %v1193_v49, -inf }
 0x257   :  { %v1368_v60 = vmax.f32 %v1366_v37, %v1367_v51  ;;  %v1374_v61 = vrot.slane %v1373_v52, 2  ;;  %v1381_v2 = vrot.slane %v1380_v54, 2  ;;  %v1387_v63 = vmax.f32 %v1385_v42, %v1386_v56 }
 0x258   :  { %v1393_v1 = vrot.slane %v1392_v59, 4  ;;  %v1399_v3 = vsel %vm1279_vm1, %v1194_v57, -inf  ;;  %v1407_v4 = vrot.slane %v1406_v6, 4  ;;  %v1413_v9 = vsel %vm1279_vm1, %v1195_v58, -inf }
 0x259   :  { %v1369_v20 = vrot.slane %v1368_v60, 1  ;;  %v1375_v10 = vmax.f32 %v1373_v52, %v1374_v61  ;;  %v1382_v12 = vmax.f32 %v1380_v54, %v1381_v2  ;;  %v1388_v44 = vrot.slane %v1387_v63, 2 }
 0x25a   :  { %v1394_v0 = vmax.f32 %v1392_v59, %v1393_v1  ;;  %v1400_v5 = vrot.slane %v1399_v3, 4  ;;  %v1408_v26 = vmax.f32 %v1406_v6, %v1407_v4  ;;  %v1414_v14 = vrot.slane %v1413_v9, 4 }
 0x25b   :  { %v1370_v15 = vmax.f32 %v1368_v60, %v1369_v20  ;;  %v1376_v18 = vrot.slane %v1375_v10, 1  ;;  %v1383_v19 = vrot.slane %v1382_v12, 1  ;;  %v1389_v21 = vmax.f32 %v1387_v63, %v1388_v44  ;;  %v1594_v60 = vld [vmem:[#allocation10 + $0x58] sm:$0xff] }
 0x25c   :  { %v1395_v22 = vrot.slane %v1394_v0, 2  ;;  %v1401_v39 = vmax.f32 %v1399_v3, %v1400_v5  ;;  %v1409_v25 = vrot.slane %v1408_v26, 2  ;;  %v1415_v27 = vmax.f32 %v1413_v9, %v1414_v14 }
 0x25d   :  { %v1377_v28 = vmax.f32 %v1375_v10, %v1376_v18  ;;  %v1384_v29 = vmax.f32 %v1382_v12, %v1383_v19  ;;  %v1390_v31 = vrot.slane %v1389_v21, 1  ;;  %v1553_v32 = vsel %vm1542_vm5, %v1370_v15, %v1552_v41 }
 0x25e   :  { %v1396_v45 = vmax.f32 %v1394_v0, %v1395_v22  ;;  %v1402_v33 = vrot.slane %v1401_v39, 2  ;;  %v1410_v34 = vmax.f32 %v1408_v26, %v1409_v25  ;;  %v1416_v35 = vrot.slane %v1415_v27, 2 }
 0x25f   :  { %v1391_v36 = vmax.f32 %v1389_v21, %v1390_v31  ;;  %v1554_v37 = vsel %vm1544_vm6, %v1377_v28, %v1553_v32  ;;  %v1196_v38 = vcombine.high %v1100_v50, %v1100_v50  ;;  %v1203_v40 = vrot.slane %v1100_v50, %v8077_v24  ;;  %v1593_v50 = vld [vmem:[#allocation10 + $0x50] sm:$0xff] }
 0x260   :  { %v1555_v42 = vsel %vm1546_vm7, %v1384_v29, %v1554_v37  ;;  %v1397_v43 = vrot.slane %v1396_v45, 1  ;;  %v1403_v49 = vmax.f32 %v1401_v39, %v1402_v33  ;;  %v1411_v51 = vrot.slane %v1410_v34, 1  ;;  %v1596_v39 = vld [vmem:[#allocation10 + $0x68] sm:$0xff] }
 0x261   :  { %v8180_v52 = vsel %vm1548_vm8, %v1391_v36, %v1555_v42  ;;  %v1417_v54 = vmax.f32 %v1415_v27, %v1416_v35  ;;  %v1210_v41 = vrot.slane %v1196_v38, %v8077_v24  ;;  %v1211_v56 = vcombine.high %v1203_v40, %v1203_v40 }
 0x262   :  { %1576 = vst [vmem:[#allocation3 + $0x10] sm:$0xff] %v8180_v52  ;;  %v1398_v57 = vmax.f32 %v1396_v45, %v1397_v43  ;;  %v1404_v58 = vrot.slane %v1403_v49, 1  ;;  %v1412_v59 = vmax.f32 %v1410_v34, %v1411_v51  ;;  %v1420_v6 = vsel %vm1279_vm1, %v1203_v40, -inf  ;;  %5617 = vmatmul.mubr.f32.vlgmr.msra.gmra.mrb[0].mxu1 %v8180_v52  ;;  %v1598_v34 = vld [vmem:[#allocation10 + $0x78] sm:$0xff] }
 0x263   :  { %v1418_v61 = vrot.slane %v1417_v54, 1  ;;  %v1212_v2 = vcombine.high %v1210_v41, %v1210_v41  ;;  %v1421_v63 = vrot.slane %v1420_v6, 4  ;;  %v1427_v1 = vsel %vm1279_vm1, %v1211_v56, -inf  ;;  %6465 = vmatpush3.bf16.msra.mxu1 %v8058_v8 }
 0x264   :  { %v1405_v3 = vmax.f32 %v1403_v49, %v1404_v58  ;;  %v1428_v4 = vrot.slane %v1427_v1, 4  ;;  %v1434_v9 = vsel %vm1279_vm1, %v1210_v41, -inf  ;;  %v1075_v20 = vadd.f32 %v8070_v16, %v8124_v62  ;;  %6467 = vmatprep.subr.bf16.mxu1 %v8085_v46  ;;  %v1595_v62 = vld [vmem:[#allocation10 + $0x60] sm:$0xff] }
 0x265   :  { %v1422_v10 = vmax.f32 %v1420_v6, %v1421_v63  ;;  %v1435_v12 = vrot.slane %v1434_v9, 4  ;;  %v1441_v44 = vsel %vm1279_vm1, %v1212_v2, -inf  ;;  %v8193_v0 = vpack.c.bf16 %v1594_v60, %v1593_v50 }
 0x266   :  { %v1419_v5 = vmax.f32 %v1417_v54, %v1418_v61  ;;  %v1557_v26 = vsel %vm1536_vm2, %v1405_v3, %v1398_v57  ;;  %v1429_v14 = vmax.f32 %v1427_v1, %v1428_v4  ;;  %v1442_v15 = vrot.slane %v1441_v44, 4 }
 0x267   :  { %v1423_v18 = vrot.slane %v1422_v10, 2  ;;  %v1436_v19 = vmax.f32 %v1434_v9, %v1435_v12  ;;  %v1091_v21 = vmax.f32 %v1075_v20, 0.0  ;;  %v1076_v22 = vadd.f32 %v8073_v17, %v8128_v7  ;;  %6469 = vmatpush3.bf16.msra.mxu1 %v8085_v46  ;;  %v1597_v7 = vld [vmem:[#allocation10 + $0x70] sm:$0xff] }
 0x268   :  { %v1558_v25 = vsel %vm1538_vm3, %v1412_v59, %v1557_v26  ;;  %v1430_v27 = vrot.slane %v1429_v14, 2  ;;  %v1443_v28 = vmax.f32 %v1441_v44, %v1442_v15  ;;  %v1077_v29 = vadd.f32 %v8070_v16, %v8134_v23  ;;  %6471 = vmatprep.subr.bf16.mxu1 %v8087_v47  ;;  %v1795_v16 = vld [vmem:[#allocation10 + $0x100] sm:$0xff]  ;;  %v1796_v23 = vld [vmem:[#allocation10 + $0x108] sm:$0xff] }
 0x269   :  { %v1424_v31 = vmax.f32 %v1422_v10, %v1423_v18  ;;  %v1437_v32 = vrot.slane %v1436_v19, 2  ;;  %v1092_v45 = vmax.f32 %v1076_v22, 0.0  ;;  %v1078_v33 = vadd.f32 %v8073_v17, %v8137_v30 }
 0x26a   :  { %v1431_v35 = vmax.f32 %v1429_v14, %v1430_v27  ;;  %v1444_v36 = vrot.slane %v1443_v28, 2  ;;  %v1093_v37 = vmax.f32 %v1077_v29, 0.0  ;;  %v8205_v38 = vpack.c.bf16 %v1596_v39, %v1595_v62 }
 0x26b   :  { %v1425_v40 = vrot.slane %v1424_v31, 1  ;;  %v1438_v42 = vmax.f32 %v1436_v19, %v1437_v32  ;;  %v1101_v43 = vmax.f32 %v1091_v21, %v1092_v45  ;;  %v1094_v49 = vmax.f32 %v1078_v33, 0.0  ;;  %6473 = vmatpush3.bf16.msra.mxu1 %v8087_v47 }
 0x26c   :  { %v1432_v51 = vrot.slane %v1431_v35, 1  ;;  %v1445_v54 = vmax.f32 %v1443_v28, %v1444_v36  ;;  %v1559_v41 = vsel %vm1540_vm4, %v1419_v5, %v1558_v25  ;;  %6475 = vmatprep.subr.bf16.mxu1 %v8089_v48  ;;  %v8210_v17 = vpack.c.bf16 %v1598_v34, %v1597_v7 }
 0x26d   :  { %v1426_v30 = vmax.f32 %v1424_v31, %v1425_v40  ;;  %v1439_v56 = vrot.slane %v1438_v42, 1  ;;  %v1213_v57 = vcombine.high %v1101_v43, %v1101_v43  ;;  %v1220_v58 = vrot.slane %v1101_v43, %v8077_v24 }
 0x26e   :  { %v1433_v59 = vmax.f32 %v1431_v35, %v1432_v51  ;;  %v1446_v6 = vrot.slane %v1445_v54, 1  ;;  %v1102_v50 = vmax.f32 %v1093_v37, %v1094_v49  ;;  %v8213_v60 = vpack.c.bf16 %v1796_v23, %v1795_v16 }
 0x26f   :  { %v1440_v61 = vmax.f32 %v1438_v42, %v1439_v56  ;;  %v1560_v2 = vsel %vm1542_vm5, %v1426_v30, %v1559_v41  ;;  %v1227_v63 = vrot.slane %v1213_v57, %v8077_v24  ;;  %v1228_v1 = vcombine.high %v1220_v58, %v1220_v58  ;;  %6477 = vmatpush3.bf16.msra.mxu1 %v8089_v48 }
 0x270   :  { %v1447_v3 = vmax.f32 %v1445_v54, %v1446_v6  ;;  %v1561_v4 = vsel %vm1544_vm6, %v1433_v59, %v1560_v2  ;;  %v1448_v9 = vsel %vm1279_vm1, %v1220_v58, -inf  ;;  %v1230_v20 = vcombine.high %v1102_v50, %v1102_v50  ;;  %6479 = vmatprep.subr.bf16.mxu1 %v8097_v55 }
 0x271   :  { %v1562_v10 = vsel %vm1546_vm7, %v1440_v61, %v1561_v4  ;;  %v1229_v12 = vcombine.high %v1227_v63, %v1227_v63  ;;  %v1449_v44 = vrot.slane %v1448_v9, 4  ;;  %v1455_v5 = vsel %vm1279_vm1, %v1228_v1, -inf }
 0x272   :  { %v8224_v26 = vsel %vm1548_vm8, %v1447_v3, %v1562_v10  ;;  %v1456_v14 = vrot.slane %v1455_v5, 4  ;;  %v1462_v15 = vsel %vm1279_vm1, %v1227_v63, -inf  ;;  %v1237_v18 = vrot.slane %v1102_v50, %v8077_v24 }
 0x273   :  { %1577 = vst [vmem:[#allocation3 + $0x28] sm:$0xff] %v8224_v26  ;;  %v1450_v19 = vmax.f32 %v1448_v9, %v1449_v44  ;;  %v1463_v21 = vrot.slane %v1462_v15, 4  ;;  %v1469_v22 = vsel %vm1279_vm1, %v1229_v12, -inf  ;;  %v1244_v62 = vrot.slane %v1230_v20, %v8077_v24  ;;  %5619 = vmatprep.mubr.f32.mxu1 %v8224_v26  ;;  %6481 = vmatpush3.bf16.msra.mxu1 %v8097_v55 }
 0x274   :  { %v1457_v39 = vmax.f32 %v1455_v5, %v1456_v14  ;;  %v1470_v25 = vrot.slane %v1469_v22, 4  ;;  %v1245_v27 = vcombine.high %v1237_v18, %v1237_v18  ;;  %v1476_v28 = vsel %vm1279_vm1, %v1237_v18, -inf  ;;  %6483 = vmatprep.subr.bf16.mxu1 %v8193_v0 }
 0x275   :  { %v1451_v29 = vrot.slane %v1450_v19, 2  ;;  %v1464_v31 = vmax.f32 %v1462_v15, %v1463_v21  ;;  %v1246_v32 = vcombine.high %v1244_v62, %v1244_v62  ;;  %v1477_v45 = vrot.slane %v1476_v28, 4 }
 0x276   :  { %v1458_v33 = vrot.slane %v1457_v39, 2  ;;  %v1471_v7 = vmax.f32 %v1469_v22, %v1470_v25  ;;  %v1483_v34 = vsel %vm1279_vm1, %v1245_v27, -inf  ;;  %v1490_v35 = vsel %vm1279_vm1, %v1244_v62, -inf }
 0x277   :  { %v1452_v36 = vmax.f32 %v1450_v19, %v1451_v29  ;;  %v1465_v37 = vrot.slane %v1464_v31, 2  ;;  %v1478_v40 = vmax.f32 %v1476_v28, %v1477_v45  ;;  %v1484_v42 = vrot.slane %v1483_v34, 4  ;;  %6485 = vmatpush3.bf16.msra.mxu1 %v8193_v0 }
 0x278   :  { %v1459_v43 = vmax.f32 %v1457_v39, %v1458_v33  ;;  %v1472_v49 = vrot.slane %v1471_v7, 2  ;;  %v1491_v16 = vrot.slane %v1490_v35, 4  ;;  %v1497_v23 = vsel %vm1279_vm1, %v1246_v32, -inf  ;;  %6487 = vmatprep.subr.bf16.mxu1 %v8205_v38  ;;  %v1797_v33 = vld [vmem:[#allocation10 + $0x110] sm:$0xff] }
 0x279   :  { %v1453_v51 = vrot.slane %v1452_v36, 1  ;;  %v1466_v54 = vmax.f32 %v1464_v31, %v1465_v37  ;;  %v1479_v41 = vrot.slane %v1478_v40, 2  ;;  %v1485_v30 = vmax.f32 %v1483_v34, %v1484_v42  ;;  %v1579_v34 = vld [vmem:[#allocation3 + $0x7] sm:$0xff]  ;;  %v1799_v37 = vld [vmem:[#allocation10 + $0x120] sm:$0xff] }
 0x27a   :  { %v1460_v56 = vrot.slane %v1459_v43, 1  ;;  %v1473_v57 = vmax.f32 %v1471_v7, %v1472_v49  ;;  %v1492_v58 = vmax.f32 %v1490_v35, %v1491_v16  ;;  %v1498_v59 = vrot.slane %v1497_v23, 4  ;;  %v1798_v7 = vld [vmem:[#allocation10 + $0x118] sm:$0xff]  ;;  %v1801_v16 = vld [vmem:[#allocation10 + $0x130] sm:$0xff] }
 0x27b   :  { %v1454_v6 = vmax.f32 %v1452_v36, %v1453_v51  ;;  %v1467_v50 = vrot.slane %v1466_v54, 1  ;;  %v1480_v61 = vmax.f32 %v1478_v40, %v1479_v41  ;;  %v1486_v2 = vrot.slane %v1485_v30, 2  ;;  %6489 = vmatpush3.bf16.msra.mxu1 %v8205_v38  ;;  %v1580_v36 = vld [vmem:[#allocation3 + $0xf] sm:$0xff]  ;;  %v1800_v40 = vld [vmem:[#allocation10 + $0x128] sm:$0xff]  ;;  %v1581_v42 = vld [vmem:[#allocation3 + $0x27] sm:$0xff] }
 0x27c   :  { %v1461_v63 = vmax.f32 %v1459_v43, %v1460_v56  ;;  %v1474_v1 = vrot.slane %v1473_v57, 1  ;;  %v1493_v3 = vrot.slane %v1492_v58, 2  ;;  %v1499_v4 = vmax.f32 %v1497_v23, %v1498_v59  ;;  %6491 = vmatprep.subr.bf16.mxu1 %v8210_v17  ;;  %v1802_v23 = vld [vmem:[#allocation10 + $0x138] sm:$0xff]  ;;  %v1803_v41 = vld [vmem:[#allocation10 + $0x140] sm:$0xff] }
 0x27d   :  { %v1468_v9 = vmax.f32 %v1466_v54, %v1467_v50  ;;  %v1481_v20 = vrot.slane %v1480_v61, 1  ;;  %v1487_v10 = vmax.f32 %v1485_v30, %v1486_v2  ;;  %v8255_v35 = vpack.c.bf16 %v1798_v7, %v1797_v33  ;;  %v1790_v51 = vld [vmem:[#allocation3 + $0x9] sm:$0xff]  ;;  %v1804_v30 = vld [vmem:[#allocation10 + $0x148] sm:$0xff]  ;;  %v1809_v2 = vld [vmem:[#allocation10 + $0x170] sm:$0xff] }
 0x27e   :  { %v1475_v12 = vmax.f32 %v1473_v57, %v1474_v1  ;;  %v1564_v44 = vsel %vm1536_vm2, %v1461_v63, %v1454_v6  ;;  %v1494_v5 = vmax.f32 %v1492_v58, %v1493_v3  ;;  %v1500_v14 = vrot.slane %v1499_v4, 2  ;;  %v1805_v57 = vld [vmem:[#allocation10 + $0x150] sm:$0xff]  ;;  %v1806_v58 = vld [vmem:[#allocation10 + $0x158] sm:$0xff]  ;;  %v1807_v6 = vld [vmem:[#allocation10 + $0x160] sm:$0xff] }
 0x27f   :  { %v1565_v15 = vsel %vm1538_vm3, %v1468_v9, %v1564_v44  ;;  %v1482_v18 = vmax.f32 %v1480_v61, %v1481_v20  ;;  %v1488_v19 = vrot.slane %v1487_v10, 1  ;;  %6493 = vmatpush3.bf16.msra.mxu1 %v8210_v17  ;;  %v8259_v43 = vpack.c.bf16 %v1800_v40, %v1799_v37  ;;  %v1808_v50 = vld [vmem:[#allocation10 + $0x168] sm:$0xff]  ;;  %v1810_v63 = vld [vmem:[#allocation10 + $0x178] sm:$0xff]  ;;  %v1944_v3 = vld [vmem:[#allocation11 + $0x80] sm:$0xff] }
 0x280   :  { %v1495_v21 = vrot.slane %v1494_v5, 1  ;;  %v1501_v22 = vmax.f32 %v1499_v4, %v1500_v14  ;;  %v1566_v62 = vsel %vm1540_vm4, %v1475_v12, %v1565_v15  ;;  %6495 = vmatprep.subr.bf16.mxu1 %v8213_v60  ;;  %v8263_v54 = vpack.c.bf16 %v1802_v23, %v1801_v16  ;;  %v1945_v4 = vld [vmem:[#allocation11 + $0x88] sm:$0xff]  ;;  %v1946_v20 = vld [vmem:[#allocation11 + $0x90] sm:$0xff]  ;;  %v1923_v37 = vld [vmem:[#allocation11] sm:$0xff] }
 0x281   :  { %v1489_v39 = vmax.f32 %v1487_v10, %v1488_v19  ;;  %v1567_v25 = vsel %vm1542_vm5, %v1482_v18, %v1566_v62  ;;  %v8267_v56 = vpack.c.bf16 %v1804_v30, %v1803_v41  ;;  %v8271_v59 = vpack.c.bf16 %v1806_v58, %v1805_v57  ;;  %v1947_v10 = vld [vmem:[#allocation11 + $0x98] sm:$0xff]  ;;  %v1791_v44 = vld [vmem:[#allocation3 + $0x11] sm:$0xff]  ;;  %v8322_v16 = vld [vmem:[%s8756_s5] ss:$0 sm:$0xff] }
 0x282   :  { %v1496_v27 = vmax.f32 %v1494_v5, %v1495_v21  ;;  %v1502_v28 = vrot.slane %v1501_v22, 1  ;;  %v8275_v61 = vpack.c.bf16 %v1808_v50, %v1807_v6  ;;  %v8279_v1 = vpack.c.bf16 %v1810_v63, %v1809_v2  ;;  %v1948_v5 = vld [vmem:[#allocation11 + $0xa0] sm:$0xff]  ;;  %v1949_v14 = vld [vmem:[#allocation11 + $0xa8] sm:$0xff]  ;;  %v1950_v21 = vld [vmem:[#allocation11 + $0xb0] sm:$0xff] }
 0x283   :  { %v1568_v29 = vsel %vm1544_vm6, %v1489_v39, %v1567_v25  ;;  %v8283_v9 = vpack.c.bf16 %v1945_v4, %v1944_v3  ;;  %v8287_v12 = vpack.c.bf16 %v1947_v10, %v1946_v20  ;;  %v8291_v18 = vpack.c.bf16 %v1949_v14, %v1948_v5  ;;  %v1952_v39 = vld [vmem:[#allocation11 + $0xc0] sm:$0xff]  ;;  %v1953_v25 = vld [vmem:[#allocation11 + $0xc8] sm:$0xff]  ;;  %v1925_v57 = vld [vmem:[#allocation11 + $0x10] sm:$0xff] }
 0x284   :  { %v1503_v31 = vmax.f32 %v1501_v22, %v1502_v28  ;;  %v1569_v32 = vsel %vm1546_vm7, %v1496_v27, %v1568_v29  ;;  %v1951_v22 = vld [vmem:[#allocation11 + $0xb8] sm:$0xff]  ;;  %v8299_v27 = vpack.c.bf16 %v1953_v25, %v1952_v39  ;;  %v1954_v28 = vld [vmem:[#allocation11 + $0xd0] sm:$0xff]  ;;  %v1957_v33 = vld [vmem:[#allocation11 + $0xe8] sm:$0xff] }
 0x285   :  { %v8295_v62 = vpack.c.bf16 %v1951_v22, %v1950_v21  ;;  %v1955_v29 = vld [vmem:[#allocation11 + $0xd8] sm:$0xff]  ;;  %v1927_v10 = vld [vmem:[#allocation11 + $0x20] sm:$0xff] }
 0x286   :  { %v8251_v45 = vsel %vm1548_vm8, %v1503_v31, %v1569_v32  ;;  %v8304_v31 = vpack.c.bf16 %v1955_v29, %v1954_v28  ;;  %v1956_v32 = vld [vmem:[#allocation11 + $0xe0] sm:$0xff]  ;;  %v1926_v58 = vld [vmem:[#allocation11 + $0x18] sm:$0xff]  ;;  %v1932_v28 = vld [vmem:[#allocation11 + $0x48] sm:$0xff] }
 0x287   :  { %1578 = vst [vmem:[#allocation3 + $0x30] sm:$0xff] %v8251_v45  ;;  %5620 = vmatmul.mubr.f32.gmra.mrb[2].mxu1 %v8251_v45  ;;  %v8308_v7 = vpack.c.bf16 %v1957_v33, %v1956_v32  ;;  %v8327_v4 = vpack.c.bf16 %v1926_v58, %v1925_v57  ;;  %v1930_v21 = vld [vmem:[#allocation11 + $0x38] sm:$0xff]  ;;  %v1931_v25 = vld [vmem:[#allocation11 + $0x40] sm:$0xff]  ;;  %v1933_v32 = vld [vmem:[#allocation11 + $0x50] sm:$0xff] }
 0x288   :  { %5654 = vmatprep.mubr.f32.mxu1 %v1579_v34  ;;  %v1958_v34 = vld [vmem:[#allocation11 + $0xf0] sm:$0xff]  ;;  %v8340_v29 = vpack.c.bf16 %v1932_v28, %v1931_v25  ;;  %v1934_v33 = vld [vmem:[#allocation11 + $0x58] sm:$0xff]  ;;  %v2136_v57 = vld [vmem:[#allocation11 + $0x108] sm:$0xff] }
 0x289   :  { %v2143_v25 = vld [vmem:[#allocation11 + $0x140] sm:$0xff]  ;;  %v2144_v28 = vld [vmem:[#allocation11 + $0x148] sm:$0xff] }
 0x28b   :  { %5655 = vmatmul.mubr.f32.vlgmr.msra.gmra.mrb[0].mxu1 %v1580_v36  ;;  %v1959_v36 = vld [vmem:[#allocation11 + $0xf8] sm:$0xff] }
 0x28c   :  { %5657 = vmatprep.mubr.f32.mxu1 %v1581_v42  ;;  %6497 = vmatpush3.bf16.msra.mxu1 %v8213_v60  ;;  %v8312_v40 = vpack.c.bf16 %v1959_v36, %v1958_v34  ;;  %v1924_v42 = vld [vmem:[#allocation11 + $0x8] sm:$0xff]  ;;  %v8344_v34 = vpack.c.bf16 %v1934_v33, %v1933_v32  ;;  %v1935_v36 = vld [vmem:[#allocation11 + $0x60] sm:$0xff]  ;;  %v8372_v32 = vpack.c.bf16 %v2144_v28, %v2143_v25  ;;  %v2145_v33 = vld [vmem:[#allocation11 + $0x150] sm:$0xff] }
 0x28d   :  { %6499 = vmatprep.subr.bf16.mxu1 %v8255_v35 }
 0x28e   :  { %v1582_v49 = vld [vmem:[#allocation3 + $0x2f] sm:$0xff] }
 0x28f   :  { %5658 = vmatmul.mubr.f32.gmra.mrb[2].mxu1 %v1582_v49  ;;  %v1792_v15 = vld [vmem:[#allocation3 + $0x29] sm:$0xff]  ;;  %v1793_v19 = vld [vmem:[#allocation3 + $0x31] sm:$0xff]  ;;  %v8314_v49 = vpack.c.bf16 %v1924_v42, %v1923_v37 }
 0x290   :  { %6501 = vmatpush3.bf16.msra.mxu1 %v8255_v35  ;;  %5692 = vmatprep.mubr.f32.mxu1 %v1790_v51  ;;  %v1936_v37 = vld [vmem:[#allocation11 + $0x68] sm:$0xff] }
 0x291   :  { %6503 = vmatprep.subr.bf16.mxu1 %v8259_v43  ;;  %v8348_v42 = vpack.c.bf16 %v1936_v37, %v1935_v36  ;;  %v2146_v36 = vld [vmem:[#allocation11 + $0x158] sm:$0xff] }
 0x292   :  { %v8376_v37 = vpack.c.bf16 %v2146_v36, %v2145_v33 }
 0x294   :  { %6505 = vmatpush3.bf16.msra.mxu1 %v8259_v43 }
 0x295   :  { %6507 = vmatprep.subr.bf16.mxu1 %v8263_v54 }
 0x298   :  { %6509 = vmatpush3.bf16.msra.mxu1 %v8263_v54 }
 0x299   :  { %6511 = vmatprep.subr.bf16.mxu1 %v8267_v56 }
 0x29c   :  { %6513 = vmatpush3.bf16.msra.mxu1 %v8267_v56 }
 0x29d   :  { %6515 = vmatprep.subr.bf16.mxu1 %v8271_v59 }
 0x2a0   :  { %6517 = vmatpush3.bf16.msra.mxu1 %v8271_v59 }
 0x2a1   :  { %6519 = vmatprep.subr.bf16.mxu1 %v8275_v61 }
 0x2a4   :  { %6521 = vmatpush3.bf16.msra.mxu1 %v8275_v61 }
 0x2a5   :  { %6523 = vmatprep.subr.bf16.mxu1 %v8279_v1 }
 0x2a8   :  { %6525 = vmatpush3.bf16.msra.mxu1 %v8279_v1 }
 0x2a9   :  { %6527 = vmatprep.subr.bf16.mxu1 %v8283_v9 }
 0x2ab   :  { %5693 = vmatmul.mubr.f32.vlgmr.msra.gmra.mrb[0].mxu1 %v1791_v44  ;;  %v1928_v44 = vld [vmem:[#allocation11 + $0x28] sm:$0xff] }
 0x2ac   :  { %5695 = vmatprep.mubr.f32.mxu1 %v1792_v15  ;;  %6529 = vmatpush3.bf16.msra.mxu1 %v8283_v9  ;;  %v8332_v15 = vpack.c.bf16 %v1928_v44, %v1927_v10 }
 0x2ad   :  { %6531 = vmatprep.subr.bf16.mxu1 %v8287_v12 }
 0x2af   :  { %5696 = vmatmul.mubr.f32.gmra.mrb[2].mxu1 %v1793_v19  ;;  %v1929_v19 = vld [vmem:[#allocation11 + $0x30] sm:$0xff] }
 0x2b0   :  { %6533 = vmatpush3.bf16.msra.mxu1 %v8287_v12  ;;  %v8336_v39 = vpack.c.bf16 %v1930_v21, %v1929_v19  ;;  %v2142_v19 = vld [vmem:[#allocation11 + $0x138] sm:$0xff] }
 0x2b1   :  { %6535 = vmatprep.subr.bf16.mxu1 %v8291_v18 }
 0x2b4   :  { %6537 = vmatpush3.bf16.msra.mxu1 %v8291_v18 }
 0x2b5   :  { %6539 = vmatprep.subr.bf16.mxu1 %v8295_v62 }
 0x2b8   :  { %6541 = vmatpush3.bf16.msra.mxu1 %v8295_v62 }
 0x2b9   :  { %6543 = vmatprep.subr.bf16.mxu1 %v8299_v27 }
 0x2bc   :  { %6545 = vmatpush3.bf16.msra.mxu1 %v8299_v27 }
 0x2bd   :  { %6547 = vmatprep.subr.bf16.mxu1 %v8304_v31 }
 0x2c0   :  { %6549 = vmatpush3.bf16.msra.mxu1 %v8304_v31 }
 0x2c1   :  { %6551 = vmatprep.subr.bf16.mxu1 %v8308_v7 }
 0x2c4   :  { %6553 = vmatpush3.bf16.msra.mxu1 %v8308_v7 }
 0x2c5   :  { %6555 = vmatprep.subr.bf16.mxu1 %v8312_v40 }
 0x2c8   :  { %6557 = vmatpush3.bf16.msra.mxu1 %v8312_v40 }
 0x2c9   :  { %6559 = vmatprep.subr.bf16.mxu1 %v8314_v49 }
 0x37e   :  { %v5694_v23 = vpop.f32.mrb[0].mxu1 }
 0x37f   :  { %v1908_v51 = vadd.f32 %v5694_v23, %v8322_v16  ;;  %v1877_v41 = vpop.f32.mrb[1].mxu1  ;;  %v1937_v23 = vld [vmem:[#allocation11 + $0x70] sm:$0xff] }
 0x380   :  { %v1907_v30 = vadd.f32 %v8322_v16, %v1877_v41 }
 0x381   :  { %v1912_v6 = vmax.f32 %v1908_v51, 0.0  ;;  %v1938_v51 = vld [vmem:[#allocation11 + $0x78] sm:$0xff] }
 0x382   :  { %v1911_v50 = vmax.f32 %v1907_v30, 0.0  ;;  %v5697_v2 = vpop.f32.mrb[2].mxu1  ;;  %v8352_v41 = vpack.c.bf16 %v1938_v51, %v1937_v23  ;;  %v2135_v30 = vld [vmem:[#allocation11 + $0x100] sm:$0xff]  ;;  %v2148_v51 = vld [vmem:[#allocation11 + $0x168] sm:$0xff] }
 0x383   :  { %1916 = vst [vmem:[#allocation3 + $0x10] sm:$0xff] %v1912_v6  ;;  %v1910_v63 = vadd.f32 %v5697_v2, %v8322_v16  ;;  %v1887_v3 = vpop.f32.mrb[3].mxu1  ;;  %v8356_v58 = vpack.c.bf16 %v2136_v57, %v2135_v30  ;;  %v2147_v23 = vld [vmem:[#allocation11 + $0x160] sm:$0xff]  ;;  %v2149_v57 = vld [vmem:[#allocation11 + $0x170] sm:$0xff] }
 0x384   :  { %1915 = vst [vmem:[#allocation3 + $0x8] sm:$0xff] %v1911_v50  ;;  %v1909_v20 = vadd.f32 %v8322_v16, %v1887_v3  ;;  %5730 = vmatprep.mubr.f32.mxu1 %v1911_v50  ;;  %v2138_v50 = vld [vmem:[#allocation11 + $0x118] sm:$0xff]  ;;  %v2139_v3 = vld [vmem:[#allocation11 + $0x120] sm:$0xff]  ;;  %v8380_v30 = vpack.c.bf16 %v2148_v51, %v2147_v23 }
 0x385   :  { %v1914_v5 = vmax.f32 %v1910_v63, 0.0  ;;  %5731 = vmatmul.mubr.f32.vlgmr.msra.gmra.mrb[4].mxu1 %v1912_v6  ;;  %v2137_v6 = vld [vmem:[#allocation11 + $0x110] sm:$0xff] }
 0x386   :  { %v1913_v14 = vmax.f32 %v1909_v20, 0.0  ;;  %6561 = vmatpush3.bf16.msra.mxu1 %v8314_v49  ;;  %v8360_v2 = vpack.c.bf16 %v2138_v50, %v2137_v6  ;;  %v2140_v20 = vld [vmem:[#allocation11 + $0x128] sm:$0xff]  ;;  %v2150_v6 = vld [vmem:[#allocation11 + $0x178] sm:$0xff] }
 0x387   :  { %1918 = vst [vmem:[#allocation3 + $0x30] sm:$0xff] %v1914_v5  ;;  %6563 = vmatprep.subr.bf16.mxu1 %v8327_v4  ;;  %v8364_v44 = vpack.c.bf16 %v2140_v20, %v2139_v3  ;;  %v8384_v50 = vpack.c.bf16 %v2150_v6, %v2149_v57 }
 0x388   :  { %1917 = vst [vmem:[#allocation3 + $0x28] sm:$0xff] %v1913_v14  ;;  %5733 = vmatprep.mubr.f32.mxu1 %v1913_v14  ;;  %v2141_v14 = vld [vmem:[#allocation11 + $0x130] sm:$0xff] }
 0x389   :  { %5734 = vmatmul.mubr.f32.gmra.mrb[6].mxu1 %v1914_v5 }
 0x38a   :  { %6565 = vmatpush3.bf16.msra.mxu1 %v8327_v4 }
 0x38b   :  { %v1919_v22 = vld [vmem:[#allocation3 + $0x7] sm:$0xff]  ;;  %6567 = vmatprep.subr.bf16.mxu1 %v8332_v15  ;;  %v1920_v63 = vld [vmem:[#allocation3 + $0xf] sm:$0xff] }
 0x38c   :  { %5768 = vmatprep.mubr.f32.mxu1 %v1919_v22  ;;  %v2130_v21 = vld [vmem:[#allocation3 + $0x9] sm:$0xff]  ;;  %v8368_v22 = vpack.c.bf16 %v2142_v19, %v2141_v14 }
 0x38e   :  { %6569 = vmatpush3.bf16.msra.mxu1 %v8332_v15  ;;  %v2133_v20 = vld [vmem:[#allocation3 + $0x31] sm:$0xff] }
 0x38f   :  { %6571 = vmatprep.subr.bf16.mxu1 %v8336_v39  ;;  %v1921_v10 = vld [vmem:[#allocation3 + $0x27] sm:$0xff]  ;;  %v1922_v5 = vld [vmem:[#allocation3 + $0x2f] sm:$0xff] }
 0x390   :  { %v2132_v3 = vld [vmem:[#allocation3 + $0x29] sm:$0xff] }
 0x392   :  { %6573 = vmatpush3.bf16.msra.mxu1 %v8336_v39 }
 0x393   :  { %6575 = vmatprep.subr.bf16.mxu1 %v8340_v29 }
 0x396   :  { %6577 = vmatpush3.bf16.msra.mxu1 %v8340_v29 }
 0x397   :  { %6579 = vmatprep.subr.bf16.mxu1 %v8344_v34 }
 0x39a   :  { %6581 = vmatpush3.bf16.msra.mxu1 %v8344_v34 }
 0x39b   :  { %6583 = vmatprep.subr.bf16.mxu1 %v8348_v42 }
 0x39e   :  { %6585 = vmatpush3.bf16.msra.mxu1 %v8348_v42 }
 0x39f   :  { %6587 = vmatprep.subr.bf16.mxu1 %v8352_v41 }
 0x3a2   :  { %6589 = vmatpush3.bf16.msra.mxu1 %v8352_v41 }
 0x3a3   :  { %6591 = vmatprep.subr.bf16.mxu1 %v8356_v58 }
 0x3a5   :  { %5769 = vmatmul.mubr.f32.vlgmr.msra.gmra.mrb[4].mxu1 %v1920_v63  ;;  %v2131_v63 = vld [vmem:[#allocation3 + $0x11] sm:$0xff] }
 0x3a6   :  { %5771 = vmatprep.mubr.f32.mxu1 %v1921_v10  ;;  %6593 = vmatpush3.bf16.msra.mxu1 %v8356_v58 }
 0x3a7   :  { %6595 = vmatprep.subr.bf16.mxu1 %v8360_v2 }
 0x3a9   :  { %5772 = vmatmul.mubr.f32.gmra.mrb[6].mxu1 %v1922_v5 }
 0x3aa   :  { %6597 = vmatpush3.bf16.msra.mxu1 %v8360_v2  ;;  %5806 = vmatprep.mubr.f32.mxu1 %v2130_v21  ;;  %v8423_v21 = vld [vmem:[%s8731_s16] ss:$0 sm:$0xff] }
 0x3ab   :  { %6599 = vmatprep.subr.bf16.mxu1 %v8364_v44 }
 0x3ae   :  { %6601 = vmatpush3.bf16.msra.mxu1 %v8364_v44 }
 0x3af   :  { %6603 = vmatprep.subr.bf16.mxu1 %v8368_v22 }
 0x3b2   :  { %6605 = vmatpush3.bf16.msra.mxu1 %v8368_v22 }
 0x3b3   :  { %6607 = vmatprep.subr.bf16.mxu1 %v8372_v32 }
 0x3b6   :  { %6609 = vmatpush3.bf16.msra.mxu1 %v8372_v32 }
 0x3b7   :  { %6611 = vmatprep.subr.bf16.mxu1 %v8376_v37 }
 0x3ba   :  { %6613 = vmatpush3.bf16.msra.mxu1 %v8376_v37 }
 0x3bb   :  { %6615 = vmatprep.subr.bf16.mxu1 %v8380_v30 }
 0x3be   :  { %6617 = vmatpush3.bf16.msra.mxu1 %v8380_v30 }
 0x3bf   :  { %6619 = vmatprep.subr.bf16.mxu1 %v8384_v50 }
 0x3c2   :  { %6621 = vmatpush3.bf16.msra.mxu1 %v8384_v50 }
 0x3c3   :  { %6719 = vmatprep.subr.bf16.mxu1 %v8283_v9 }
 0x3c5   :  { %5807 = vmatmul.mubr.f32.vlgmr.msra.gmra.mrb[4].mxu1 %v2131_v63 }
 0x3c6   :  { %5809 = vmatprep.mubr.f32.mxu1 %v2132_v3  ;;  %6721 = vmatpush3.bf16.msra.mxu1 %v8283_v9  ;;  %v8409_v9 = vld [vmem:[%s8721_s6] ss:$0 sm:$0xff] }
 0x3c7   :  { %6723 = vmatprep.subr.bf16.mxu1 %v8287_v12 }
 0x3c9   :  { %5810 = vmatmul.mubr.f32.gmra.mrb[6].mxu1 %v2133_v20 }
 0x3ca   :  { %6725 = vmatpush3.bf16.msra.mxu1 %v8287_v12 }
 0x3cb   :  { %6727 = vmatprep.subr.bf16.mxu1 %v8291_v18 }
 0x3ce   :  { %6729 = vmatpush3.bf16.msra.mxu1 %v8291_v18 }
 0x3cf   :  { %6731 = vmatprep.subr.bf16.mxu1 %v8295_v62 }
 0x3d2   :  { %6733 = vmatpush3.bf16.msra.mxu1 %v8295_v62 }
 0x3d3   :  { %6735 = vmatprep.subr.bf16.mxu1 %v8299_v27 }
 0x3d6   :  { %6737 = vmatpush3.bf16.msra.mxu1 %v8299_v27 }
 0x3d7   :  { %6739 = vmatprep.subr.bf16.mxu1 %v8304_v31 }
 0x3da   :  { %6741 = vmatpush3.bf16.msra.mxu1 %v8304_v31 }
 0x3db   :  { %6743 = vmatprep.subr.bf16.mxu1 %v8308_v7 }
 0x3de   :  { %6745 = vmatpush3.bf16.msra.mxu1 %v8308_v7  ;;  %v8416_v7 = vld [vmem:[%s8730_s15] ss:$0 sm:$0xff] }
 0x3df   :  { %6747 = vmatprep.subr.bf16.mxu1 %v8312_v40 }
 0x3e2   :  { %6749 = vmatpush3.bf16.msra.mxu1 %v8312_v40 }
 0x3e3   :  { %6751 = vmatprep.subr.bf16.mxu1 %v8314_v49 }
 0x498   :  { %v5808_v12 = vpop.f32.mrb[4].mxu1 }
 0x499   :  { %v2248_v18 = vadd.f32 %v5808_v12, %v8409_v9  ;;  %v2217_v62 = vpop.f32.mrb[5].mxu1 }
 0x49a   :  { %v2247_v27 = vadd.f32 %v8409_v9, %v2217_v62 }
 0x49b   :  { %v2252_v31 = vmax.f32 %v2248_v18, 0.0 }
 0x49c   :  { %v2251_v40 = vmax.f32 %v2247_v27, 0.0  ;;  %v5811_v10 = vpop.f32.mrb[6].mxu1 }
 0x49d   :  { %v2256_v5 = vadd.f32 %v2252_v31, %v8180_v52  ;;  %v2250_v14 = vadd.f32 %v5811_v10, %v8409_v9  ;;  %v2227_v19 = vpop.f32.mrb[7].mxu1  ;;  %v3042_v10 = vld [vmem:[#allocation13 + $0x130] sm:$0xff] }
 0x49e   :  { %v2255_v25 = vadd.f32 %v2251_v40, %v8148_v53  ;;  %v2249_v28 = vadd.f32 %v8409_v9, %v2227_v19 }
 0x49f   :  { %v2267_v33 = vmul.f32 %v8416_v7, %v2256_v5  ;;  %v2254_v36 = vmax.f32 %v2250_v14, 0.0  ;;  %v3045_v5 = vld [vmem:[#allocation13 + $0x148] sm:$0xff]  ;;  %v3047_v14 = vld [vmem:[#allocation13 + $0x158] sm:$0xff] }
 0x4a0   :  { %v2266_v23 = vmul.f32 %v8416_v7, %v2255_v25  ;;  %v2253_v51 = vmax.f32 %v2249_v28, 0.0  ;;  %v6822_v25 = vpack.c.bf16 %v3047_v14, %v3045_v5  ;;  %v3044_v28 = vld [vmem:[#allocation13 + $0x140] sm:$0xff] }
 0x4a1   :  { %v2278_v52 = vadd.f32 %v8423_v21, %v2267_v33  ;;  %v2258_v57 = vadd.f32 %v2254_v36, %v8251_v45  ;;  %v3046_v33 = vld [vmem:[#allocation13 + $0x150] sm:$0xff]  ;;  %v3064_v14 = vld [vmem:[#allocation13 + $0x1e0] sm:$0xff] }
 0x4a2   :  { %v2277_v6 = vadd.f32 %v8423_v21, %v2266_v23  ;;  %v2257_v63 = vadd.f32 %v2253_v51, %v8224_v26  ;;  %v6824_v36 = vpack.c.bf16 %v3046_v33, %v3044_v28  ;;  %v3000_v28 = vld [vmem:[#allocation13 + $0x8] sm:$0xff]  ;;  %v3002_v33 = vld [vmem:[#allocation13 + $0x18] sm:$0xff] }
 0x4a3   :  { %v8433_v3 = vmax.f32 %v2278_v52, 0.0  ;;  %v2269_v53 = vmul.f32 %v8416_v7, %v2258_v57 }
 0x4a4   :  { %v8436_v20 = vmax.f32 %v2277_v6, 0.0  ;;  %v2268_v12 = vmul.f32 %v8416_v7, %v2257_v63 }
 0x4a5   :  { %2286 = vst [vmem:[#allocation3 + $0x10] sm:$0xff] %v8433_v3  ;;  %v2280_v18 = vadd.f32 %v8423_v21, %v2269_v53 }
 0x4a6   :  { %2285 = vst [vmem:[#allocation3 + $0x8] sm:$0xff] %v8436_v20  ;;  %v2279_v45 = vadd.f32 %v8423_v21, %v2268_v12  ;;  %5844 = vmatprep.mubr.f32.mxu0 %v8436_v20 }
 0x4a7   :  { %v8444_v62 = vmax.f32 %v2280_v18, 0.0  ;;  %5845 = vmatmul.mubr.f32.vlgmr.msra.gmra.mrb[16].mxu0 %v8433_v3 }
 0x4a8   :  { %v8447_v26 = vmax.f32 %v2279_v45, 0.0  ;;  %6657 = vmatpush3.bf16.msra.mxu0 %v8058_v8 }
 0x4a9   :  { %2288 = vst [vmem:[#allocation3 + $0x30] sm:$0xff] %v8444_v62  ;;  %6659 = vmatprep.subr.bf16.mxu0 %v8085_v46 }
 0x4aa   :  { %2287 = vst [vmem:[#allocation3 + $0x28] sm:$0xff] %v8447_v26  ;;  %5847 = vmatprep.mubr.f32.mxu0 %v8447_v26 }
 0x4ab   :  { %5848 = vmatmul.mubr.f32.gmra.mrb[18].mxu0 %v8444_v62 }
 0x4ac   :  { %6661 = vmatpush3.bf16.msra.mxu0 %v8085_v46 }
 0x4ad   :  { %v2289_v27 = vld [vmem:[#allocation3 + $0x7] sm:$0xff]  ;;  %6663 = vmatprep.subr.bf16.mxu0 %v8087_v47  ;;  %v2290_v8 = vld [vmem:[#allocation3 + $0xf] sm:$0xff] }
 0x4ae   :  { %5882 = vmatprep.mubr.f32.mxu0 %v2289_v27 }
 0x4b0   :  { %6665 = vmatpush3.bf16.msra.mxu0 %v8087_v47 }
 0x4b1   :  { %6667 = vmatprep.subr.bf16.mxu0 %v8089_v48  ;;  %v2291_v46 = vld [vmem:[#allocation3 + $0x27] sm:$0xff]  ;;  %v2292_v47 = vld [vmem:[#allocation3 + $0x2f] sm:$0xff] }
 0x4b4   :  { %6669 = vmatpush3.bf16.msra.mxu0 %v8089_v48  ;;  %v2499_v48 = vld [vmem:[#allocation3 + $0x9] sm:$0xff] }
 0x4b5   :  { %6671 = vmatprep.subr.bf16.mxu0 %v8097_v55 }
 0x4b8   :  { %6673 = vmatpush3.bf16.msra.mxu0 %v8097_v55  ;;  %v2500_v55 = vld [vmem:[#allocation3 + $0x11] sm:$0xff] }
 0x4b9   :  { %6675 = vmatprep.subr.bf16.mxu0 %v8193_v0 }
 0x4bc   :  { %6677 = vmatpush3.bf16.msra.mxu0 %v8193_v0  ;;  %v2501_v0 = vld [vmem:[#allocation3 + $0x29] sm:$0xff] }
 0x4bd   :  { %6679 = vmatprep.subr.bf16.mxu0 %v8205_v38 }
 0x4c0   :  { %6681 = vmatpush3.bf16.msra.mxu0 %v8205_v38  ;;  %v2502_v38 = vld [vmem:[#allocation3 + $0x31] sm:$0xff] }
 0x4c1   :  { %6683 = vmatprep.subr.bf16.mxu0 %v8210_v17 }
 0x4c4   :  { %6685 = vmatpush3.bf16.msra.mxu0 %v8210_v17  ;;  %v8484_v17 = vld [vmem:[#allocation3] sm:$0xff] }
 0x4c5   :  { %6687 = vmatprep.subr.bf16.mxu0 %v8213_v60 }
 0x4c7   :  { %5883 = vmatmul.mubr.f32.vlgmr.msra.gmra.mrb[16].mxu0 %v2290_v8 }
 0x4c8   :  { %5885 = vmatprep.mubr.f32.mxu0 %v2291_v46  ;;  %6689 = vmatpush3.bf16.msra.mxu0 %v8213_v60  ;;  %v3037_v60 = vld [vmem:[#allocation13 + $0x108] sm:$0xff] }
 0x4c9   :  { %6691 = vmatprep.subr.bf16.mxu0 %v8255_v35 }
 0x4cb   :  { %5886 = vmatmul.mubr.f32.gmra.mrb[18].mxu0 %v2292_v47  ;;  %v3052_v47 = vld [vmem:[#allocation13 + $0x180] sm:$0xff] }
 0x4cc   :  { %6693 = vmatpush3.bf16.msra.mxu0 %v8255_v35  ;;  %5920 = vmatprep.mubr.f32.mxu0 %v2499_v48  ;;  %v3039_v35 = vld [vmem:[#allocation13 + $0x118] sm:$0xff]  ;;  %v3054_v48 = vld [vmem:[#allocation13 + $0x190] sm:$0xff] }
 0x4cd   :  { %6695 = vmatprep.subr.bf16.mxu0 %v8259_v43 }
 0x4d0   :  { %6697 = vmatpush3.bf16.msra.mxu0 %v8259_v43  ;;  %v3036_v43 = vld [vmem:[#allocation13 + $0x100] sm:$0xff] }
 0x4d1   :  { %6699 = vmatprep.subr.bf16.mxu0 %v8263_v54 }
 0x4d4   :  { %6701 = vmatpush3.bf16.msra.mxu0 %v8263_v54  ;;  %v6814_v54 = vpack.c.bf16 %v3039_v35, %v3037_v60  ;;  %v3056_v60 = vld [vmem:[#allocation13 + $0x1a0] sm:$0xff]  ;;  %v3058_v35 = vld [vmem:[#allocation13 + $0x1b0] sm:$0xff] }
 0x4d5   :  { %6703 = vmatprep.subr.bf16.mxu0 %v8267_v56 }
 0x4d8   :  { %6705 = vmatpush3.bf16.msra.mxu0 %v8267_v56  ;;  %v3038_v56 = vld [vmem:[#allocation13 + $0x110] sm:$0xff] }
 0x4d9   :  { %6707 = vmatprep.subr.bf16.mxu0 %v8271_v59  ;;  %v6816_v31 = vpack.c.bf16 %v3038_v56, %v3036_v43  ;;  %v6836_v43 = vpack.c.bf16 %v3058_v35, %v3056_v60  ;;  %v3063_v56 = vld [vmem:[#allocation13 + $0x1d8] sm:$0xff]  ;;  %v3009_v60 = vld [vmem:[#allocation13 + $0x50] sm:$0xff]  ;;  %v3012_v35 = vld [vmem:[#allocation13 + $0x68] sm:$0xff] }
 0x4dc   :  { %6709 = vmatpush3.bf16.msra.mxu0 %v8271_v59  ;;  %v3041_v59 = vld [vmem:[#allocation13 + $0x128] sm:$0xff] }
 0x4dd   :  { %6711 = vmatprep.subr.bf16.mxu0 %v8275_v61 }
 0x4e0   :  { %6713 = vmatpush3.bf16.msra.mxu0 %v8275_v61  ;;  %v3043_v61 = vld [vmem:[#allocation13 + $0x138] sm:$0xff] }
 0x4e1   :  { %6715 = vmatprep.subr.bf16.mxu0 %v8279_v1  ;;  %v6818_v40 = vpack.c.bf16 %v3043_v61, %v3041_v59  ;;  %v3060_v61 = vld [vmem:[#allocation13 + $0x1c0] sm:$0xff] }
 0x4e4   :  { %6717 = vmatpush3.bf16.msra.mxu0 %v8279_v1  ;;  %v3040_v1 = vld [vmem:[#allocation13 + $0x120] sm:$0xff] }
 0x4e5   :  { %6815 = vmatprep.subr.bf16.mxu0 %v6814_v54  ;;  %v6820_v19 = vpack.c.bf16 %v3042_v10, %v3040_v1  ;;  %v3061_v54 = vld [vmem:[#allocation13 + $0x1c8] sm:$0xff]  ;;  %v3067_v10 = vld [vmem:[#allocation13 + $0x1f8] sm:$0xff] }
 0x4e6   :  { %v6838_v59 = vpack.c.bf16 %v3063_v56, %v3061_v54  ;;  %v3065_v1 = vld [vmem:[#allocation13 + $0x1e8] sm:$0xff]  ;;  %v3011_v56 = vld [vmem:[#allocation13 + $0x60] sm:$0xff] }
 0x4e7   :  { %5921 = vmatmul.mubr.f32.vlgmr.msra.gmra.mrb[16].mxu0 %v2500_v55  ;;  %v3057_v55 = vld [vmem:[#allocation13 + $0x1a8] sm:$0xff]  ;;  %v6842_v5 = vpack.c.bf16 %v3067_v10, %v3065_v1  ;;  %v3015_v10 = vld [vmem:[#allocation13 + $0x80] sm:$0xff] }
 0x4e8   :  { %5923 = vmatprep.mubr.f32.mxu0 %v2501_v0  ;;  %6817 = vmatpush1.bf16.msra.mxu0 %v6816_v31  ;;  %v3059_v0 = vld [vmem:[#allocation13 + $0x1b8] sm:$0xff]  ;;  %v3062_v31 = vld [vmem:[#allocation13 + $0x1d0] sm:$0xff] }
 0x4e9   :  { %6819 = vmatprep.subr.bf16.mxu0 %v6818_v40  ;;  %v6840_v40 = vpack.c.bf16 %v3062_v31, %v3060_v61  ;;  %v3016_v61 = vld [vmem:[#allocation13 + $0x88] sm:$0xff]  ;;  %v3018_v31 = vld [vmem:[#allocation13 + $0x98] sm:$0xff] }
 0x4ea   :  { %v6862_v1 = vpack.c.bf16 %v3018_v31, %v3016_v61 }
 0x4eb   :  { %5924 = vmatmul.mubr.f32.gmra.mrb[18].mxu0 %v2502_v38  ;;  %v6834_v38 = vpack.c.bf16 %v3059_v0, %v3057_v55 }
 0x4ec   :  { %3132 = vmatprep.mubr.f32.mxu0 %v8484_v17  ;;  %6821 = vmatpush1.bf16.msra.mxu0 %v6820_v19  ;;  %v3066_v19 = vld [vmem:[#allocation13 + $0x1f0] sm:$0xff] }
 0x4ed   :  { %6823 = vmatprep.subr.bf16.mxu0 %v6822_v25  ;;  %v6844_v25 = vpack.c.bf16 %v3066_v19, %v3064_v14  ;;  %v3020_v14 = vld [vmem:[#allocation13 + $0xa8] sm:$0xff]  ;;  %v3022_v19 = vld [vmem:[#allocation13 + $0xb8] sm:$0xff] }
 0x4f0   :  { %6825 = vmatpush1.bf16.msra.mxu0 %v6824_v36  ;;  %v6846_v36 = vpack.c.bf16 %v3002_v33, %v3000_v28  ;;  %v6866_v28 = vpack.c.bf16 %v3022_v19, %v3020_v14  ;;  %v3019_v33 = vld [vmem:[#allocation13 + $0xa0] sm:$0xff] }
 0x5ba   :  { %v5922_v23 = vpop.f32.mrb[16].mxu0 }
 0x5bb   :  { %v2616_v51 = vadd.f32 %v5922_v23, %v8322_v16  ;;  %v2585_v52 = vpop.f32.mrb[17].mxu0 }
 0x5bc   :  { %v2615_v57 = vadd.f32 %v8322_v16, %v2585_v52 }
 0x5bd   :  { %v2620_v6 = vmax.f32 %v2616_v51, 0.0 }
 0x5be   :  { %v2619_v63 = vmax.f32 %v2615_v57, 0.0  ;;  %v5925_v53 = vpop.f32.mrb[18].mxu0 }
 0x5bf   :  { %2624 = vst [vmem:[#allocation3 + $0x10] sm:$0xff] %v2620_v6  ;;  %v2618_v12 = vadd.f32 %v5925_v53, %v8322_v16  ;;  %v2595_v18 = vpop.f32.mrb[19].mxu0 }
 0x5c0   :  { %2623 = vst [vmem:[#allocation3 + $0x8] sm:$0xff] %v2619_v63  ;;  %v2617_v45 = vadd.f32 %v8322_v16, %v2595_v18  ;;  %5958 = vmatprep.mubr.f32.mxu1 %v2619_v63 }
 0x5c1   :  { %v2622_v27 = vmax.f32 %v2618_v12, 0.0  ;;  %5959 = vmatmul.mubr.f32.vlgmr.msra.gmra.mrb[8].mxu1 %v2620_v6 }
 0x5c2   :  { %v2621_v8 = vmax.f32 %v2617_v45, 0.0  ;;  %6753 = vmatpush3.bf16.msra.mxu1 %v8314_v49 }
 0x5c3   :  { %2626 = vst [vmem:[#allocation3 + $0x30] sm:$0xff] %v2622_v27  ;;  %6755 = vmatprep.subr.bf16.mxu1 %v8327_v4 }
 0x5c4   :  { %2625 = vst [vmem:[#allocation3 + $0x28] sm:$0xff] %v2621_v8  ;;  %5961 = vmatprep.mubr.f32.mxu1 %v2621_v8 }
 0x5c5   :  { %5962 = vmatmul.mubr.f32.gmra.mrb[10].mxu1 %v2622_v27 }
 0x5c6   :  { %6757 = vmatpush3.bf16.msra.mxu1 %v8327_v4 }
 0x5c7   :  { %v2627_v46 = vld [vmem:[#allocation3 + $0x7] sm:$0xff]  ;;  %6759 = vmatprep.subr.bf16.mxu1 %v8332_v15  ;;  %v2628_v49 = vld [vmem:[#allocation3 + $0xf] sm:$0xff] }
 0x5c8   :  { %5996 = vmatprep.mubr.f32.mxu1 %v2627_v46 }
 0x5ca   :  { %6761 = vmatpush3.bf16.msra.mxu1 %v8332_v15  ;;  %v2837_v15 = vld [vmem:[#allocation3 + $0x9] sm:$0xff] }
 0x5cb   :  { %6763 = vmatprep.subr.bf16.mxu1 %v8336_v39  ;;  %v2629_v16 = vld [vmem:[#allocation3 + $0x27] sm:$0xff]  ;;  %v2630_v4 = vld [vmem:[#allocation3 + $0x2f] sm:$0xff] }
 0x5ce   :  { %6765 = vmatpush3.bf16.msra.mxu1 %v8336_v39  ;;  %v2838_v39 = vld [vmem:[#allocation3 + $0x11] sm:$0xff] }
 0x5cf   :  { %6767 = vmatprep.subr.bf16.mxu1 %v8340_v29 }
 0x5d2   :  { %6769 = vmatpush3.bf16.msra.mxu1 %v8340_v29  ;;  %v2839_v29 = vld [vmem:[#allocation3 + $0x29] sm:$0xff] }
 0x5d3   :  { %6771 = vmatprep.subr.bf16.mxu1 %v8344_v34 }
 0x5d6   :  { %6773 = vmatpush3.bf16.msra.mxu1 %v8344_v34  ;;  %v2840_v34 = vld [vmem:[#allocation3 + $0x31] sm:$0xff] }
 0x5d7   :  { %6775 = vmatprep.subr.bf16.mxu1 %v8348_v42 }
 0x5da   :  { %6777 = vmatpush3.bf16.msra.mxu1 %v8348_v42  ;;  %v3049_v42 = vld [vmem:[#allocation13 + $0x168] sm:$0xff] }
 0x5db   :  { %6779 = vmatprep.subr.bf16.mxu1 %v8352_v41 }
 0x5de   :  { %6781 = vmatpush3.bf16.msra.mxu1 %v8352_v41  ;;  %v3051_v41 = vld [vmem:[#allocation13 + $0x178] sm:$0xff] }
 0x5df   :  { %6783 = vmatprep.subr.bf16.mxu1 %v8356_v58 }
 0x5e1   :  { %5997 = vmatmul.mubr.f32.vlgmr.msra.gmra.mrb[8].mxu1 %v2628_v49 }
 0x5e2   :  { %5999 = vmatprep.mubr.f32.mxu1 %v2629_v16  ;;  %6785 = vmatpush3.bf16.msra.mxu1 %v8356_v58  ;;  %v6826_v58 = vpack.c.bf16 %v3051_v41, %v3049_v42  ;;  %v3006_v42 = vld [vmem:[#allocation13 + $0x38] sm:$0xff] }
 0x5e3   :  { %6787 = vmatprep.subr.bf16.mxu1 %v8360_v2 }
 0x5e4   :  { %6827 = vmatprep.subr.bf16.mxu0 %v6826_v58 }
 0x5e5   :  { %6000 = vmatmul.mubr.f32.gmra.mrb[10].mxu1 %v2630_v4 }
 0x5e6   :  { %6789 = vmatpush3.bf16.msra.mxu1 %v8360_v2  ;;  %6034 = vmatprep.mubr.f32.mxu1 %v2837_v15  ;;  %v3048_v2 = vld [vmem:[#allocation13 + $0x160] sm:$0xff] }
 0x5e7   :  { %6791 = vmatprep.subr.bf16.mxu1 %v8364_v44  ;;  %v2999_v15 = vld [vmem:[#allocation13] sm:$0xff] }
 0x5ea   :  { %6793 = vmatpush3.bf16.msra.mxu1 %v8364_v44  ;;  %v3050_v44 = vld [vmem:[#allocation13 + $0x170] sm:$0xff] }
 0x5eb   :  { %6795 = vmatprep.subr.bf16.mxu1 %v8368_v22 }
 0x5ee   :  { %6797 = vmatpush3.bf16.msra.mxu1 %v8368_v22  ;;  %v6828_v22 = vpack.c.bf16 %v3050_v44, %v3048_v2 }
 0x5ef   :  { %6799 = vmatprep.subr.bf16.mxu1 %v8372_v32 }
 0x5f0   :  { %6829 = vmatpush1.bf16.msra.mxu0 %v6828_v22 }
 0x5f2   :  { %6801 = vmatpush3.bf16.msra.mxu1 %v8372_v32  ;;  %v3053_v32 = vld [vmem:[#allocation13 + $0x188] sm:$0xff] }
 0x5f3   :  { %6803 = vmatprep.subr.bf16.mxu1 %v8376_v37 }
 0x5f6   :  { %6805 = vmatpush3.bf16.msra.mxu1 %v8376_v37  ;;  %v3055_v37 = vld [vmem:[#allocation13 + $0x198] sm:$0xff] }
 0x5f7   :  { %6807 = vmatprep.subr.bf16.mxu1 %v8380_v30 }
 0x5fa   :  { %6809 = vmatpush3.bf16.msra.mxu1 %v8380_v30  ;;  %v6830_v30 = vpack.c.bf16 %v3055_v37, %v3053_v32  ;;  %v3003_v37 = vld [vmem:[#allocation13 + $0x20] sm:$0xff] }
 0x5fb   :  { %6811 = vmatprep.subr.bf16.mxu1 %v8384_v50 }
 0x5fc   :  { %6831 = vmatprep.subr.bf16.mxu0 %v6830_v30  ;;  %v3005_v30 = vld [vmem:[#allocation13 + $0x30] sm:$0xff] }
 0x5fd   :  { %v6852_v55 = vpack.c.bf16 %v3005_v30, %v3003_v37  ;;  %v3261_v37 = vld [vmem:[#allocation13 + $0x250] sm:$0xff] }
 0x5fe   :  { %6813 = vmatpush3.bf16.msra.mxu1 %v8384_v50  ;;  %v6832_v50 = vpack.c.bf16 %v3054_v48, %v3052_v47  ;;  %v3010_v48 = vld [vmem:[#allocation13 + $0x58] sm:$0xff] }
 0x600   :  { %6833 = vmatpush1.bf16.msra.mxu0 %v6832_v50 }
 0x601   :  { %6035 = vmatmul.mubr.f32.vlgmr.msra.gmra.mrb[8].mxu1 %v2838_v39  ;;  %6835 = vmatprep.subr.bf16.mxu0 %v6834_v38  ;;  %v3001_v39 = vld [vmem:[#allocation13 + $0x10] sm:$0xff]  ;;  %v3007_v38 = vld [vmem:[#allocation13 + $0x40] sm:$0xff] }
 0x602   :  { %6037 = vmatprep.mubr.f32.mxu1 %v2839_v29  ;;  %v6848_v2 = vpack.c.bf16 %v3001_v39, %v2999_v15  ;;  %v3251_v15 = vld [vmem:[#allocation13 + $0x200] sm:$0xff]  ;;  %v3253_v39 = vld [vmem:[#allocation13 + $0x210] sm:$0xff] }
 0x604   :  { %6837 = vmatpush1.bf16.msra.mxu0 %v6836_v43  ;;  %v3014_v43 = vld [vmem:[#allocation13 + $0x78] sm:$0xff] }
 0x605   :  { %6038 = vmatmul.mubr.f32.gmra.mrb[10].mxu1 %v2840_v34  ;;  %6839 = vmatprep.subr.bf16.mxu0 %v6838_v59  ;;  %v6858_v54 = vpack.c.bf16 %v3014_v43, %v3012_v35  ;;  %v3013_v59 = vld [vmem:[#allocation13 + $0x70] sm:$0xff]  ;;  %v3267_v43 = vld [vmem:[#allocation13 + $0x280] sm:$0xff] }
 0x608   :  { %6841 = vmatpush1.bf16.msra.mxu0 %v6840_v40  ;;  %v6860_v40 = vpack.c.bf16 %v3013_v59, %v3011_v56  ;;  %v3272_v56 = vld [vmem:[#allocation13 + $0x2a8] sm:$0xff]  ;;  %v3274_v59 = vld [vmem:[#allocation13 + $0x2b8] sm:$0xff] }
 0x609   :  { %6843 = vmatprep.subr.bf16.mxu0 %v6842_v5  ;;  %v3017_v5 = vld [vmem:[#allocation13 + $0x90] sm:$0xff]  ;;  %v6898_v31 = vpack.c.bf16 %v3274_v59, %v3272_v56 }
 0x60c   :  { %6845 = vmatpush1.bf16.msra.mxu0 %v6844_v25  ;;  %v6864_v25 = vpack.c.bf16 %v3017_v5, %v3015_v10  ;;  %v3276_v10 = vld [vmem:[#allocation13 + $0x2c8] sm:$0xff]  ;;  %v3278_v5 = vld [vmem:[#allocation13 + $0x2d8] sm:$0xff] }
 0x60d   :  { %6847 = vmatprep.subr.bf16.mxu0 %v6846_v36  ;;  %v3021_v36 = vld [vmem:[#allocation13 + $0xb0] sm:$0xff]  ;;  %v6902_v19 = vpack.c.bf16 %v3278_v5, %v3276_v10 }
 0x6d4   :  { %v6036_v23 = vpop.f32.mrb[8].mxu1 }
 0x6d5   :  { %v2954_v51 = vadd.f32 %v6036_v23, %v8409_v9  ;;  %v2923_v52 = vpop.f32.mrb[9].mxu1  ;;  %v3024_v23 = vld [vmem:[#allocation13 + $0xc8] sm:$0xff] }
 0x6d6   :  { %v2953_v57 = vadd.f32 %v8409_v9, %v2923_v52  ;;  %v6868_v52 = vpack.c.bf16 %v3021_v36, %v3019_v33  ;;  %v3280_v33 = vld [vmem:[#allocation13 + $0x2e8] sm:$0xff]  ;;  %v3282_v36 = vld [vmem:[#allocation13 + $0x2f8] sm:$0xff] }
 0x6d7   :  { %v2958_v6 = vmax.f32 %v2954_v51, 0.0  ;;  %v3026_v51 = vld [vmem:[#allocation13 + $0xd8] sm:$0xff] }
 0x6d8   :  { %v2957_v63 = vmax.f32 %v2953_v57, 0.0  ;;  %v6039_v53 = vpop.f32.mrb[10].mxu1  ;;  %v6870_v57 = vpack.c.bf16 %v3026_v51, %v3024_v23  ;;  %v6906_v51 = vpack.c.bf16 %v3282_v36, %v3280_v33  ;;  %v3971_v36 = vld [vmem:[#allocation16 + $0xc0] sm:$0xff] }
 0x6d9   :  { %v2962_v12 = vadd.f32 %v2958_v6, %v8433_v3  ;;  %v2956_v18 = vadd.f32 %v6039_v53, %v8409_v9  ;;  %v2933_v45 = vpop.f32.mrb[11].mxu1  ;;  %v3004_v3 = vld [vmem:[#allocation13 + $0x28] sm:$0xff]  ;;  %v3023_v6 = vld [vmem:[#allocation13 + $0xc0] sm:$0xff] }
 0x6da   :  { %v2961_v27 = vadd.f32 %v2957_v63, %v8436_v20  ;;  %v2955_v8 = vadd.f32 %v8409_v9, %v2933_v45  ;;  %v6850_v32 = vpack.c.bf16 %v3006_v42, %v3004_v3  ;;  %v3025_v63 = vld [vmem:[#allocation13 + $0xd0] sm:$0xff]  ;;  %v3028_v53 = vld [vmem:[#allocation13 + $0xe8] sm:$0xff]  ;;  %v6880_v3 = vpack.c.bf16 %v3253_v39, %v3251_v15 }
 0x6db   :  { %v2973_v46 = vmul.f32 %v8416_v7, %v2962_v12  ;;  %v2960_v49 = vmax.f32 %v2956_v18, 0.0  ;;  %v3030_v12 = vld [vmem:[#allocation13 + $0xf8] sm:$0xff]  ;;  %v6872_v18 = vpack.c.bf16 %v3025_v63, %v3023_v6  ;;  %v3672_v15 = vld [vmem:[#allocation14 + $0xa8] sm:$0xff] }
 0x6dc   :  { %v2972_v16 = vmul.f32 %v8416_v7, %v2961_v27  ;;  %v2959_v4 = vmax.f32 %v2955_v8, 0.0  ;;  %v6874_v45 = vpack.c.bf16 %v3030_v12, %v3028_v53  ;;  %v3027_v27 = vld [vmem:[#allocation13 + $0xe0] sm:$0xff]  ;;  %v3029_v8 = vld [vmem:[#allocation13 + $0xf0] sm:$0xff] }
 0x6dd   :  { %v2984_v29 = vadd.f32 %v8423_v21, %v2973_v46  ;;  %v2964_v34 = vadd.f32 %v2960_v49, %v8444_v62  ;;  %v3008_v62 = vld [vmem:[#allocation13 + $0x48] sm:$0xff]  ;;  %v3254_v49 = vld [vmem:[#allocation13 + $0x218] sm:$0xff] }
 0x6de   :  { %v2983_v41 = vadd.f32 %v8423_v21, %v2972_v16  ;;  %v2963_v20 = vadd.f32 %v2959_v4, %v8447_v26  ;;  %v3252_v46 = vld [vmem:[#allocation13 + $0x208] sm:$0xff]  ;;  %v6876_v16 = vpack.c.bf16 %v3029_v8, %v3027_v27 }
 0x6df   :  { %v2988_v58 = vmax.f32 %v2984_v29, 0.0  ;;  %v2975_v9 = vmul.f32 %v8416_v7, %v2964_v34  ;;  %v6878_v4 = vpack.c.bf16 %v3254_v49, %v3252_v46  ;;  %v3256_v29 = vld [vmem:[#allocation13 + $0x228] sm:$0xff]  ;;  %v3258_v34 = vld [vmem:[#allocation13 + $0x238] sm:$0xff]  ;;  %v3669_v46 = vld [vmem:[#allocation14 + $0x90] sm:$0xff] }
 0x6e0   :  { %v2987_v44 = vmax.f32 %v2983_v41, 0.0  ;;  %v2974_v22 = vmul.f32 %v8416_v7, %v2963_v20  ;;  %v6854_v7 = vpack.c.bf16 %v3010_v48, %v3008_v62  ;;  %v6882_v42 = vpack.c.bf16 %v3258_v34, %v3256_v29  ;;  %v3255_v41 = vld [vmem:[#allocation13 + $0x220] sm:$0xff]  ;;  %v3257_v20 = vld [vmem:[#allocation13 + $0x230] sm:$0xff]  ;;  %v3266_v62 = vld [vmem:[#allocation13 + $0x278] sm:$0xff] }
 0x6e1   :  { %2992 = vst [vmem:[#allocation3 + $0x10] sm:$0xff] %v2988_v58  ;;  %v2986_v47 = vadd.f32 %v8423_v21, %v2975_v9  ;;  %v3260_v9 = vld [vmem:[#allocation13 + $0x248] sm:$0xff]  ;;  %v3670_v49 = vld [vmem:[#allocation14 + $0x98] sm:$0xff]  ;;  %v3673_v29 = vld [vmem:[#allocation14 + $0xb0] sm:$0xff] }
 0x6e2   :  { %2991 = vst [vmem:[#allocation3 + $0x8] sm:$0xff] %v2987_v44  ;;  %v2985_v50 = vadd.f32 %v8423_v21, %v2974_v22  ;;  %3133 = vmatmul.mubr.f32.vlgmr.msra.gmra.mrb[20].mxu0 %v2987_v44  ;;  %v6856_v21 = vpack.c.bf16 %v3009_v60, %v3007_v38  ;;  %v6884_v44 = vpack.c.bf16 %v3257_v20, %v3255_v41  ;;  %v3270_v38 = vld [vmem:[#allocation13 + $0x298] sm:$0xff]  ;;  %v3668_v27 = vld [vmem:[#allocation14 + $0x88] sm:$0xff]  ;;  %v3677_v20 = vld [vmem:[#allocation14 + $0xd0] sm:$0xff] }
 0x6e3   :  { %v2990_v26 = vmax.f32 %v2986_v47, 0.0  ;;  %6849 = vmatpush1.bf16.msra.mxu0 %v6848_v2  ;;  %3138 = vmatprep.mubr.f32.mxu0 %v8484_v17  ;;  %v3262_v2 = vld [vmem:[#allocation13 + $0x258] sm:$0xff]  ;;  %v3264_v47 = vld [vmem:[#allocation13 + $0x268] sm:$0xff] }
 0x6e4   :  { %v2989_v0 = vmax.f32 %v2985_v50, 0.0  ;;  %6851 = vmatprep.subr.bf16.mxu0 %v6850_v32  ;;  %v6886_v22 = vpack.c.bf16 %v3262_v2, %v3260_v9  ;;  %v3259_v32 = vld [vmem:[#allocation13 + $0x240] sm:$0xff]  ;;  %v6890_v50 = vpack.c.bf16 %v3266_v62, %v3264_v47  ;;  %v3674_v34 = vld [vmem:[#allocation14 + $0xb8] sm:$0xff]  ;;  %v3649_v62 = vld [vmem:[#allocation14 + $0x8] sm:$0xff] }
 0x6e5   :  { %2994 = vst [vmem:[#allocation3 + $0x30] sm:$0xff] %v2990_v26  ;;  %v6888_v48 = vpack.c.bf16 %v3261_v37, %v3259_v32  ;;  %v3679_v2 = vld [vmem:[#allocation14 + $0xe0] sm:$0xff]  ;;  %v3681_v32 = vld [vmem:[#allocation14 + $0xf0] sm:$0xff]  ;;  %v3682_v37 = vld [vmem:[#allocation14 + $0xf8] sm:$0xff] }
 0x6e6   :  { %2993 = vst [vmem:[#allocation3 + $0x28] sm:$0xff] %v2989_v0  ;;  %3139 = vmatmul.mubr.f32.gmra.mrb[22].mxu0 %v2988_v58  ;;  %v3648_v47 = vld [vmem:[#allocation14] sm:$0xff] }
 0x6e7   :  { %6853 = vmatpush1.bf16.msra.mxu0 %v6852_v55  ;;  %3144 = vmatprep.mubr.f32.mxu0 %v8484_v17  ;;  %v3265_v55 = vld [vmem:[#allocation13 + $0x270] sm:$0xff] }
 0x6e8   :  { %6855 = vmatprep.subr.bf16.mxu0 %v6854_v7  ;;  %v3268_v7 = vld [vmem:[#allocation13 + $0x288] sm:$0xff] }
 0x6e9   :  { %v2995_v58 = vld [vmem:[#allocation3 + $0x7] sm:$0xff]  ;;  %v2996_v30 = vld [vmem:[#allocation3 + $0xf] sm:$0xff]  ;;  %v6894_v35 = vpack.c.bf16 %v3270_v38, %v3268_v7 }
 0x6ea   :  { %3145 = vmatmul.mubr.f32.gmra.mrb[24].mxu0 %v2989_v0  ;;  %v3246_v63 = vld [vmem:[#allocation3 + $0x9] sm:$0xff]  ;;  %v3247_v53 = vld [vmem:[#allocation3 + $0x11] sm:$0xff] }
 0x6eb   :  { %6857 = vmatpush1.bf16.msra.mxu0 %v6856_v21  ;;  %3150 = vmatprep.mubr.f32.mxu0 %v8484_v17  ;;  %v3269_v21 = vld [vmem:[#allocation13 + $0x290] sm:$0xff]  ;;  %v3966_v38 = vld [vmem:[#allocation16 + $0x98] sm:$0xff] }
 0x6ec   :  { %6859 = vmatprep.subr.bf16.mxu0 %v6858_v54  ;;  %v6896_v61 = vpack.c.bf16 %v3269_v21, %v3267_v43  ;;  %v3967_v43 = vld [vmem:[#allocation16 + $0xa0] sm:$0xff]  ;;  %v3968_v21 = vld [vmem:[#allocation16 + $0xa8] sm:$0xff] }
 0x6ed   :  { %v2997_v0 = vld [vmem:[#allocation3 + $0x27] sm:$0xff]  ;;  %v2998_v54 = vld [vmem:[#allocation3 + $0x2f] sm:$0xff]  ;;  %v7014_v59 = vpack.c.bf16 %v3968_v21, %v3967_v43 }
 0x6ee   :  { %3151 = vmatmul.mubr.f32.gmra.mrb[26].mxu0 %v2990_v26  ;;  %v3263_v26 = vld [vmem:[#allocation13 + $0x260] sm:$0xff] }
 0x6ef   :  { %6861 = vmatpush1.bf16.msra.mxu0 %v6860_v40  ;;  %3221 = vmatprep.mubr.f32.mxu0 %v8484_v17  ;;  %v6892_v60 = vpack.c.bf16 %v3265_v55, %v3263_v26  ;;  %v3271_v40 = vld [vmem:[#allocation13 + $0x2a0] sm:$0xff]  ;;  %v3964_v55 = vld [vmem:[#allocation16 + $0x88] sm:$0xff] }
 0x6f0   :  { %6863 = vmatprep.subr.bf16.mxu0 %v6862_v1  ;;  %v3273_v1 = vld [vmem:[#allocation13 + $0x2b0] sm:$0xff]  ;;  %v3248_v12 = vld [vmem:[#allocation3 + $0x29] sm:$0xff] }
 0x6f1   :  { %v6900_v14 = vpack.c.bf16 %v3273_v1, %v3271_v40  ;;  %v3963_v26 = vld [vmem:[#allocation16 + $0x80] sm:$0xff]  ;;  %v3969_v40 = vld [vmem:[#allocation16 + $0xb0] sm:$0xff]  ;;  %v3970_v1 = vld [vmem:[#allocation16 + $0xb8] sm:$0xff] }
 0x6f2   :  { %v7006_v7 = vpack.c.bf16 %v3964_v55, %v3963_v26 }
 0x6f3   :  { %6865 = vmatpush1.bf16.msra.mxu0 %v6864_v25  ;;  %v3275_v25 = vld [vmem:[#allocation13 + $0x2c0] sm:$0xff] }
 0x6f4   :  { %6867 = vmatprep.subr.bf16.mxu0 %v6866_v28  ;;  %v3277_v28 = vld [vmem:[#allocation13 + $0x2d0] sm:$0xff] }
 0x6f5   :  { %v6904_v23 = vpack.c.bf16 %v3277_v28, %v3275_v25  ;;  %v7018_v25 = vpack.c.bf16 %v3970_v1, %v3969_v40 }
 0x6f7   :  { %6869 = vmatpush1.bf16.msra.mxu0 %v6868_v52  ;;  %v3279_v52 = vld [vmem:[#allocation13 + $0x2e0] sm:$0xff] }
 0x6f8   :  { %6871 = vmatprep.subr.bf16.mxu0 %v6870_v57  ;;  %v3281_v57 = vld [vmem:[#allocation13 + $0x2f0] sm:$0xff] }
 0x6f9   :  { %v6908_v6 = vpack.c.bf16 %v3281_v57, %v3279_v52 }
 0x6fb   :  { %6873 = vmatpush1.bf16.msra.mxu0 %v6872_v18  ;;  %v3249_v18 = vld [vmem:[#allocation3 + $0x31] sm:$0xff] }
 0x6fc   :  { %6875 = vmatprep.subr.bf16.mxu0 %v6874_v45  ;;  %v3667_v45 = vld [vmem:[#allocation14 + $0x80] sm:$0xff] }
 0x6fd   :  { %v6910_v8 = vpack.c.bf16 %v3668_v27, %v3667_v45 }
 0x6ff   :  { %6877 = vmatpush1.bf16.msra.mxu0 %v6876_v16  ;;  %6911 = vmatprep.subr.bf16.mxu1 %v6910_v8  ;;  %v6914_v16 = vpack.c.bf16 %v3670_v49, %v3669_v46 }
 0x700   :  { %6879 = vmatprep.subr.bf16.mxu0 %v6878_v4  ;;  %6913 = vmatpush3.bf16.msra.mxu1 %v6910_v8  ;;  %v3671_v4 = vld [vmem:[#allocation14 + $0xa0] sm:$0xff] }
 0x701   :  { %6915 = vmatprep.subr.bf16.mxu1 %v6914_v16  ;;  %v6918_v39 = vpack.c.bf16 %v3672_v15, %v3671_v4 }
 0x702   :  { %3222 = vmatmul.mubr.f32.vlgmr.msra.gmra.mrb[20].mxu0 %v2995_v58  ;;  %v3678_v58 = vld [vmem:[#allocation14 + $0xd8] sm:$0xff] }
 0x703   :  { %6881 = vmatpush1.bf16.msra.mxu0 %v6880_v3  ;;  %3227 = vmatprep.mubr.f32.mxu0 %v8484_v17  ;;  %v3675_v3 = vld [vmem:[#allocation14 + $0xc0] sm:$0xff]  ;;  %v6930_v9 = vpack.c.bf16 %v3678_v58, %v3677_v20 }
 0x704   :  { %6883 = vmatprep.subr.bf16.mxu0 %v6882_v42  ;;  %6917 = vmatpush3.bf16.msra.mxu1 %v6914_v16  ;;  %v3676_v42 = vld [vmem:[#allocation14 + $0xc8] sm:$0xff] }
 0x705   :  { %6919 = vmatprep.subr.bf16.mxu1 %v6918_v39  ;;  %v6926_v41 = vpack.c.bf16 %v3676_v42, %v3675_v3 }
 0x706   :  { %3228 = vmatmul.mubr.f32.gmra.mrb[22].mxu0 %v2996_v30  ;;  %v6938_v30 = vpack.c.bf16 %v3682_v37, %v3681_v32 }
 0x707   :  { %6885 = vmatpush1.bf16.msra.mxu0 %v6884_v44  ;;  %3233 = vmatprep.mubr.f32.mxu0 %v8484_v17  ;;  %v3680_v44 = vld [vmem:[#allocation14 + $0xe8] sm:$0xff] }
 0x708   :  { %6887 = vmatprep.subr.bf16.mxu0 %v6886_v22  ;;  %6921 = vmatpush3.bf16.msra.mxu1 %v6918_v39  ;;  %v6934_v22 = vpack.c.bf16 %v3680_v44, %v3679_v2 }
 0x70a   :  { %3234 = vmatmul.mubr.f32.gmra.mrb[24].mxu0 %v2997_v0  ;;  %v3965_v0 = vld [vmem:[#allocation16 + $0x90] sm:$0xff] }
 0x70b   :  { %6889 = vmatpush1.bf16.msra.mxu0 %v6888_v48  ;;  %3239 = vmatprep.mubr.f32.mxu0 %v8484_v17  ;;  %v8549_v48 = vpack.c.bf16 %v3649_v62, %v3648_v47 }
 0x70c   :  { %6891 = vmatprep.subr.bf16.mxu0 %v6890_v50  ;;  %v3380_v50 = vld [vmem:[%s8723_s8] sm:$0x3] }
 0x70e   :  { %3240 = vmatmul.mubr.f32.gmra.mrb[26].mxu0 %v2998_v54  ;;  %v8557_v54 = vrot.slane %v3380_v50, %v8067_v13 }
 0x70f   :  { %6893 = vmatpush1.bf16.msra.mxu0 %v6892_v60  ;;  %3347 = vmatprep.mubr.f32.mxu0 %v8484_v17  ;;  %v3385_v60 = vrot.slane %v3380_v50, %v8062_v11 }
 0x710   :  { %6895 = vmatprep.subr.bf16.mxu0 %v6894_v35  ;;  %v7010_v35 = vpack.c.bf16 %v3966_v38, %v3965_v0 }
 0x713   :  { %6897 = vmatpush1.bf16.msra.mxu0 %v6896_v61 }
 0x714   :  { %6899 = vmatprep.subr.bf16.mxu0 %v6898_v31 }
 0x717   :  { %6901 = vmatpush1.bf16.msra.mxu0 %v6900_v14 }
 0x718   :  { %6903 = vmatprep.subr.bf16.mxu0 %v6902_v19 }
 0x71b   :  { %6905 = vmatpush1.bf16.msra.mxu0 %v6904_v23  ;;  %v3972_v23 = vld [vmem:[#allocation16 + $0xc8] sm:$0xff] }
 0x71c   :  { %6907 = vmatprep.subr.bf16.mxu0 %v6906_v51 }
 0x71f   :  { %6909 = vmatpush1.bf16.msra.mxu0 %v6908_v6 }
 0x720   :  { %7007 = vmatprep.subr.bf16.mxu0 %v7006_v7 }
 0x722   :  { %3348 = vmatmul.mubr.f32.vlgmr.msra.gmra.mrb[20].mxu0 %v3246_v63 }
 0x723   :  { %3353 = vmatprep.mubr.f32.mxu0 %v8484_v17  ;;  %7009 = vmatpush3.bf16.msra.mxu0 %v7006_v7 }
 0x724   :  { %7011 = vmatprep.subr.bf16.mxu0 %v7010_v35 }
 0x726   :  { %3354 = vmatmul.mubr.f32.gmra.mrb[22].mxu0 %v3247_v53 }
 0x727   :  { %3359 = vmatprep.mubr.f32.mxu0 %v8484_v17  ;;  %7013 = vmatpush3.bf16.msra.mxu0 %v7010_v35 }
 0x728   :  { %7015 = vmatprep.subr.bf16.mxu0 %v7014_v59 }
 0x72a   :  { %3360 = vmatmul.mubr.f32.gmra.mrb[24].mxu0 %v3248_v12 }
 0x72b   :  { %3365 = vmatprep.mubr.f32.mxu0 %v8484_v17  ;;  %v6922_v17 = vpack.c.bf16 %v3674_v34, %v3673_v29  ;;  %7017 = vmatpush3.bf16.msra.mxu0 %v7014_v59 }
 0x72c   :  { %7019 = vmatprep.subr.bf16.mxu0 %v7018_v25 }
 0x72d   :  { %6923 = vmatprep.subr.bf16.mxu1 %v6922_v17 }
 0x72e   :  { %3366 = vmatmul.mubr.f32.gmra.mrb[26].mxu0 %v3249_v18  ;;  %6925 = vmatpush3.bf16.msra.mxu1 %v6922_v17  ;;  %v7022_v18 = vpack.c.bf16 %v3972_v23, %v3971_v36 }
 0x72f   :  { %6927 = vmatprep.subr.bf16.mxu1 %v6926_v41  ;;  %7021 = vmatpush3.bf16.msra.mxu0 %v7018_v25 }
 0x730   :  { %7023 = vmatprep.subr.bf16.mxu0 %v7022_v18 }
 0x732   :  { %6929 = vmatpush3.bf16.msra.mxu1 %v6926_v41 }
 0x733   :  { %6931 = vmatprep.subr.bf16.mxu1 %v6930_v9  ;;  %7025 = vmatpush3.bf16.msra.mxu0 %v7022_v18 }
 0x736   :  { %6933 = vmatpush3.bf16.msra.mxu1 %v6930_v9 }
 0x737   :  { %6935 = vmatprep.subr.bf16.mxu1 %v6934_v22 }
 0x73a   :  { %6937 = vmatpush3.bf16.msra.mxu1 %v6934_v22 }
 0x73b   :  { %6939 = vmatprep.subr.bf16.mxu1 %v6938_v30 }
 0x73e   :  { %6941 = vmatpush3.bf16.msra.mxu1 %v6938_v30 }
 0x73f   :  { %6943 = vmatprep.subr.bf16.mxu1 %v8549_v48 }
 0x7f5   :  { %v3349_v56 = vpop.f32.mrb[20].mxu0 }
 0x7f6   :  { %v3392_v61 = vadd.f32 %v3385_v60, %v3349_v56  ;;  %v3351_v31 = vpop.f32.mrb[21].mxu0 }
 0x7f7   :  { %v3393_v10 = vadd.f32 %v8557_v54, %v3351_v31 }
 0x7f8   :  { %v3400_v5 = vmax.f32 %v3392_v61, 0.0 }
 0x7f9   :  { %v3401_v14 = vmax.f32 %v3393_v10, 0.0  ;;  %v3355_v19 = vpop.f32.mrb[22].mxu0 }
 0x7fa   :  { %v3394_v28 = vadd.f32 %v3385_v60, %v3355_v19  ;;  %v3357_v33 = vpop.f32.mrb[23].mxu0 }
 0x7fb   :  { %v3408_v51 = vmax.f32 %v3400_v5, %v3401_v14  ;;  %v3395_v52 = vadd.f32 %v8557_v54, %v3357_v33 }
 0x7fc   :  { %v3402_v57 = vmax.f32 %v3394_v28, 0.0 }
 0x7fd   :  { %v3416_v6 = vcombine.high %v3408_v51, %v3408_v51  ;;  %v3423_v63 = vrot.slane %v3408_v51, %v8077_v24  ;;  %v3403_v53 = vmax.f32 %v3395_v52, 0.0  ;;  %v3361_v12 = vpop.f32.mrb[24].mxu0 }
 0x7fe   :  { %v3396_v45 = vadd.f32 %v3385_v60, %v3361_v12  ;;  %v3363_v27 = vpop.f32.mrb[25].mxu0 }
 0x7ff   :  { %v3430_v8 = vrot.slane %v3416_v6, %v8077_v24  ;;  %v3431_v46 = vcombine.high %v3423_v63, %v3423_v63  ;;  %v3500_v49 = vsel %vm1279_vm1, %v3423_v63, -inf  ;;  %v3409_v16 = vmax.f32 %v3402_v57, %v3403_v53 }
 0x800   :  { %v3501_v4 = vrot.slane %v3500_v49, 4  ;;  %v3404_v15 = vmax.f32 %v3396_v45, 0.0  ;;  %v3397_v39 = vadd.f32 %v8557_v54, %v3363_v27 }
 0x801   :  { %v3432_v29 = vcombine.high %v3430_v8, %v3430_v8  ;;  %v3507_v34 = vsel %vm1279_vm1, %v3431_v46, -inf  ;;  %v3514_v17 = vsel %vm1279_vm1, %v3430_v8, -inf  ;;  %v3433_v3 = vcombine.high %v3409_v16, %v3409_v16  ;;  %v3367_v42 = vpop.f32.mrb[26].mxu0 }
 0x802   :  { %v3502_v41 = vmax.f32 %v3500_v49, %v3501_v4  ;;  %v3508_v20 = vrot.slane %v3507_v34, 4  ;;  %v3515_v58 = vrot.slane %v3514_v17, 4  ;;  %v3440_v9 = vrot.slane %v3409_v16, %v8077_v24  ;;  %v8568_v2 = vpop.f32.mrb[27].mxu0 }
 0x803   :  { %v3521_v44 = vsel %vm1279_vm1, %v3432_v29, -inf  ;;  %v3447_v22 = vrot.slane %v3433_v3, %v8077_v24  ;;  %v3405_v32 = vmax.f32 %v3397_v39, 0.0  ;;  %v8572_v37 = vadd.f32 %v3385_v60, %v3367_v42 }
 0x804   :  { %v3503_v30 = vrot.slane %v3502_v41, 2  ;;  %v3509_v47 = vmax.f32 %v3507_v34, %v3508_v20  ;;  %v3516_v62 = vmax.f32 %v3514_v17, %v3515_v58  ;;  %v3522_v50 = vrot.slane %v3521_v44, 4 }
 0x805   :  { %v3448_v26 = vcombine.high %v3440_v9, %v3440_v9  ;;  %v3449_v55 = vcombine.high %v3447_v22, %v3447_v22  ;;  %v3528_v0 = vsel %vm1279_vm1, %v3440_v9, -inf  ;;  %v3542_v7 = vsel %vm1279_vm1, %v3447_v22, -inf }
 0x806   :  { %v3504_v38 = vmax.f32 %v3502_v41, %v3503_v30  ;;  %v3510_v35 = vrot.slane %v3509_v47, 2  ;;  %v3517_v43 = vrot.slane %v3516_v62, 2  ;;  %v3523_v21 = vmax.f32 %v3521_v44, %v3522_v50 }
 0x807   :  { %v3529_v56 = vrot.slane %v3528_v0, 4  ;;  %v3535_v59 = vsel %vm1279_vm1, %v3448_v26, -inf  ;;  %v3543_v60 = vrot.slane %v3542_v7, 4  ;;  %v3549_v61 = vsel %vm1279_vm1, %v3449_v55, -inf }
 0x808   :  { %v3505_v31 = vrot.slane %v3504_v38, 1  ;;  %v3511_v40 = vmax.f32 %v3509_v47, %v3510_v35  ;;  %v3518_v1 = vmax.f32 %v3516_v62, %v3517_v43  ;;  %v3524_v10 = vrot.slane %v3523_v21, 2 }
 0x809   :  { %v3530_v5 = vmax.f32 %v3528_v0, %v3529_v56  ;;  %v3536_v14 = vrot.slane %v3535_v59, 4  ;;  %v3544_v19 = vmax.f32 %v3542_v7, %v3543_v60  ;;  %v3550_v25 = vrot.slane %v3549_v61, 4 }
 0x80a   :  { %v3506_v28 = vmax.f32 %v3504_v38, %v3505_v31  ;;  %v3512_v33 = vrot.slane %v3511_v40, 1  ;;  %v3519_v36 = vrot.slane %v3518_v1, 1  ;;  %v3525_v23 = vmax.f32 %v3523_v21, %v3524_v10 }
 0x80b   :  { %v3531_v51 = vrot.slane %v3530_v5, 2  ;;  %v3537_v52 = vmax.f32 %v3535_v59, %v3536_v14  ;;  %v3545_v57 = vrot.slane %v3544_v19, 2  ;;  %v3551_v6 = vmax.f32 %v3549_v61, %v3550_v25 }
 0x80c   :  { %v3513_v63 = vmax.f32 %v3511_v40, %v3512_v33  ;;  %v3520_v53 = vmax.f32 %v3518_v1, %v3519_v36  ;;  %v3526_v12 = vrot.slane %v3525_v23, 1  ;;  %v3410_v18 = vmax.f32 %v3404_v15, %v3405_v32 }
 0x80d   :  { %v3532_v45 = vmax.f32 %v3530_v5, %v3531_v51  ;;  %v3538_v27 = vrot.slane %v3537_v52, 2  ;;  %v3546_v8 = vmax.f32 %v3544_v19, %v3545_v57  ;;  %v3552_v46 = vrot.slane %v3551_v6, 2 }
 0x80e   :  { %v3527_v49 = vmax.f32 %v3525_v23, %v3526_v12  ;;  %v3628_v16 = vsel %vm1536_vm2, %v3513_v63, %v3506_v28  ;;  %v3450_v4 = vcombine.high %v3410_v18, %v3410_v18  ;;  %v3457_v39 = vrot.slane %v3410_v18, %v8077_v24 }
 0x80f   :  { %v3629_v29 = vsel %vm1538_vm3, %v3520_v53, %v3628_v16  ;;  %v3533_v34 = vrot.slane %v3532_v45, 1  ;;  %v3539_v17 = vmax.f32 %v3537_v52, %v3538_v27  ;;  %v3547_v3 = vrot.slane %v3546_v8, 1 }
 0x810   :  { %v3553_v42 = vmax.f32 %v3551_v6, %v3552_v46  ;;  %v3630_v41 = vsel %vm1540_vm4, %v3527_v49, %v3629_v29  ;;  %v3464_v15 = vrot.slane %v3450_v4, %v8077_v24  ;;  %v3465_v20 = vcombine.high %v3457_v39, %v3457_v39 }
 0x811   :  { %v3534_v58 = vmax.f32 %v3532_v45, %v3533_v34  ;;  %v3540_v9 = vrot.slane %v3539_v17, 1  ;;  %v3548_v44 = vmax.f32 %v3546_v8, %v3547_v3  ;;  %v3556_v22 = vsel %vm1279_vm1, %v3457_v39, -inf }
 0x812   :  { %v3554_v32 = vrot.slane %v3553_v42, 1  ;;  %v3466_v30 = vcombine.high %v3464_v15, %v3464_v15  ;;  %v3557_v47 = vrot.slane %v3556_v22, 4  ;;  %v3563_v62 = vsel %vm1279_vm1, %v3465_v20, -inf }
 0x813   :  { %v3541_v50 = vmax.f32 %v3539_v17, %v3540_v9  ;;  %v3631_v26 = vsel %vm1542_vm5, %v3534_v58, %v3630_v41  ;;  %v3564_v55 = vrot.slane %v3563_v62, 4  ;;  %v3570_v0 = vsel %vm1279_vm1, %v3464_v15, -inf }
 0x814   :  { %v3555_v7 = vmax.f32 %v3553_v42, %v3554_v32  ;;  %v3558_v38 = vmax.f32 %v3556_v22, %v3557_v47  ;;  %v3571_v35 = vrot.slane %v3570_v0, 4  ;;  %v3577_v43 = vsel %vm1279_vm1, %v3466_v30, -inf }
 0x815   :  { %v3632_v21 = vsel %vm1544_vm6, %v3541_v50, %v3631_v26  ;;  %v3565_v56 = vmax.f32 %v3563_v62, %v3564_v55  ;;  %v3578_v59 = vrot.slane %v3577_v43, 4  ;;  %v3406_v60 = vmax.f32 %v8572_v37, 0.0 }
 0x816   :  { %v3633_v61 = vsel %vm1546_vm7, %v3548_v44, %v3632_v21  ;;  %v3559_v31 = vrot.slane %v3558_v38, 2  ;;  %v3572_v40 = vmax.f32 %v3570_v0, %v3571_v35  ;;  %v3399_v1 = vadd.f32 %v8557_v54, %v8568_v2 }
 0x817   :  { %v8594_v10 = vsel %vm1548_vm8, %v3555_v7, %v3633_v61  ;;  %v3566_v5 = vrot.slane %v3565_v56, 2  ;;  %v3579_v14 = vmax.f32 %v3577_v43, %v3578_v59  ;;  %v3651_v61 = vld [vmem:[#allocation14 + $0x18] sm:$0xff] }
 0x818   :  { %3644 = vst [vmem:[#allocation4 + $0x8] sm:$0xff] %v8594_v10  ;;  %v3560_v19 = vmax.f32 %v3558_v38, %v3559_v31  ;;  %v3573_v25 = vrot.slane %v3572_v40, 2  ;;  %v3407_v28 = vmax.f32 %v3399_v1, 0.0  ;;  %6072 = vmatprep.mubr.f32.mxu1 %v8594_v10 }
 0x819   :  { %v3567_v37 = vmax.f32 %v3565_v56, %v3566_v5  ;;  %v3580_v33 = vrot.slane %v3579_v14, 2 }
 0x81a   :  { %v3574_v36 = vmax.f32 %v3572_v40, %v3573_v25  ;;  %v3411_v23 = vmax.f32 %v3406_v60, %v3407_v28  ;;  %v3561_v51 = vrot.slane %v3560_v19, 1  ;;  %v3650_v60 = vld [vmem:[#allocation14 + $0x10] sm:$0xff]  ;;  %v3652_v25 = vld [vmem:[#allocation14 + $0x20] sm:$0xff]  ;;  %v3653_v28 = vld [vmem:[#allocation14 + $0x28] sm:$0xff] }
 0x81b   :  { %v3568_v52 = vrot.slane %v3567_v37, 1  ;;  %v3581_v57 = vmax.f32 %v3579_v14, %v3580_v33  ;;  %v6946_v14 = vpack.c.bf16 %v3651_v61, %v3650_v60  ;;  %v3654_v33 = vld [vmem:[#allocation14 + $0x30] sm:$0xff]  ;;  %v3978_v61 = vld [vmem:[#allocation16 + $0xf8] sm:$0xff] }
 0x81c   :  { %v3575_v54 = vrot.slane %v3574_v36, 1  ;;  %v3467_v2 = vcombine.high %v3411_v23, %v3411_v23  ;;  %v3474_v6 = vrot.slane %v3411_v23, %v8077_v24  ;;  %v3562_v45 = vmax.f32 %v3560_v19, %v3561_v51  ;;  %v3656_v51 = vld [vmem:[#allocation14 + $0x40] sm:$0xff]  ;;  %v3977_v60 = vld [vmem:[#allocation16 + $0xf0] sm:$0xff] }
 0x81d   :  { %v3569_v63 = vmax.f32 %v3567_v37, %v3568_v52  ;;  %v3582_v27 = vrot.slane %v3581_v57, 1  ;;  %v6950_v37 = vpack.c.bf16 %v3653_v28, %v3652_v25  ;;  %v3657_v52 = vld [vmem:[#allocation14 + $0x48] sm:$0xff]  ;;  %v4300_v25 = vld [vmem:[#allocation17 + $0x118] sm:$0xff]  ;;  %v4297_v28 = vld [vmem:[#allocation17 + $0x100] sm:$0xff] }
 0x81e   :  { %v3481_v53 = vrot.slane %v3467_v2, %v8077_v24  ;;  %v3482_v12 = vcombine.high %v3474_v6, %v3474_v6  ;;  %v3584_v18 = vsel %vm1279_vm1, %v3474_v6, -inf  ;;  %v3576_v46 = vmax.f32 %v3574_v36, %v3575_v54  ;;  %v3655_v36 = vld [vmem:[#allocation14 + $0x38] sm:$0xff]  ;;  %v3658_v54 = vld [vmem:[#allocation14 + $0x50] sm:$0xff] }
 0x81f   :  { %v3585_v8 = vrot.slane %v3584_v18, 4  ;;  %v3635_v39 = vsel %vm1536_vm2, %v3569_v63, %v3562_v45  ;;  %v3583_v58 = vmax.f32 %v3581_v57, %v3582_v27  ;;  %v3646_v5 = vld [vmem:[#allocation4 + $0x7] sm:$0xff]  ;;  %v6954_v23 = vpack.c.bf16 %v3655_v36, %v3654_v33  ;;  %v3660_v63 = vld [vmem:[#allocation14 + $0x60] sm:$0xff]  ;;  %v4302_v36 = vld [vmem:[#allocation17 + $0x128] sm:$0xff] }
 0x820   :  { %v3483_v49 = vcombine.high %v3481_v53, %v3481_v53  ;;  %v3591_v16 = vsel %vm1279_vm1, %v3482_v12, -inf  ;;  %v3598_v4 = vsel %vm1279_vm1, %v3481_v53, -inf  ;;  %v3636_v9 = vsel %vm1538_vm3, %v3576_v46, %v3635_v39  ;;  %v3659_v2 = vld [vmem:[#allocation14 + $0x58] sm:$0xff]  ;;  %v3662_v12 = vld [vmem:[#allocation14 + $0x70] sm:$0xff]  ;;  %v3836_v27 = vld [vmem:[#allocation14 + $0x100] sm:$0xff] }
 0x821   :  { %v3586_v29 = vmax.f32 %v3584_v18, %v3585_v8  ;;  %v3592_v34 = vrot.slane %v3591_v16, 4  ;;  %v3599_v17 = vrot.slane %v3598_v4, 4  ;;  %v3637_v55 = vsel %vm1540_vm4, %v3583_v58, %v3636_v9  ;;  %v3663_v18 = vld [vmem:[#allocation14 + $0x78] sm:$0xff]  ;;  %v3837_v8 = vld [vmem:[#allocation14 + $0x108] sm:$0xff]  ;;  %v4299_v33 = vld [vmem:[#allocation17 + $0x110] sm:$0xff] }
 0x822   :  { %v3605_v3 = vsel %vm1279_vm1, %v3483_v49, -inf  ;;  %v6958_v57 = vpack.c.bf16 %v3657_v52, %v3656_v51  ;;  %v6962_v6 = vpack.c.bf16 %v3659_v2, %v3658_v54  ;;  %v6970_v45 = vpack.c.bf16 %v3663_v18, %v3662_v12  ;;  %v3838_v49 = vld [vmem:[#allocation14 + $0x110] sm:$0xff]  ;;  %v3845_v58 = vld [vmem:[#allocation14 + $0x148] sm:$0xff] }
 0x823   :  { %v3587_v42 = vrot.slane %v3586_v29, 2  ;;  %v3593_v41 = vmax.f32 %v3591_v16, %v3592_v34  ;;  %v3600_v15 = vmax.f32 %v3598_v4, %v3599_v17  ;;  %v3606_v20 = vrot.slane %v3605_v3, 4  ;;  %v3839_v16 = vld [vmem:[#allocation14 + $0x118] sm:$0xff]  ;;  %v3841_v34 = vld [vmem:[#allocation14 + $0x128] sm:$0xff]  ;;  %v4303_v54 = vld [vmem:[#allocation17 + $0x130] sm:$0xff] }
 0x824   :  { %v6974_v46 = vpack.c.bf16 %v3837_v8, %v3836_v27  ;;  %v6978_v4 = vpack.c.bf16 %v3839_v16, %v3838_v49  ;;  %v3833_v17 = vld [vmem:[#allocation4 + $0x9] sm:$0xff]  ;;  %v7104_v51 = vpack.c.bf16 %v4299_v33, %v4297_v28  ;;  %v4306_v2 = vld [vmem:[#allocation17 + $0x148] sm:$0xff]  ;;  %v4307_v12 = vld [vmem:[#allocation17 + $0x150] sm:$0xff] }
 0x825   :  { %v3588_v44 = vmax.f32 %v3586_v29, %v3587_v42  ;;  %v3594_v22 = vrot.slane %v3593_v41, 2  ;;  %v3601_v32 = vrot.slane %v3600_v15, 2  ;;  %v3607_v30 = vmax.f32 %v3605_v3, %v3606_v20  ;;  %v3840_v29 = vld [vmem:[#allocation14 + $0x120] sm:$0xff]  ;;  %v3842_v42 = vld [vmem:[#allocation14 + $0x130] sm:$0xff]  ;;  %v4141_v33 = vld [vmem:[#allocation16 + $0x148] sm:$0xff] }
 0x826   :  { %v6982_v3 = vpack.c.bf16 %v3841_v34, %v3840_v29  ;;  %v3844_v20 = vld [vmem:[#allocation14 + $0x140] sm:$0xff]  ;;  %v3946_v16 = vld [vmem:[#allocation16 + $0x10] sm:$0xff] }
 0x827   :  { %v3589_v47 = vrot.slane %v3588_v44, 1  ;;  %v3595_v62 = vmax.f32 %v3593_v41, %v3594_v22  ;;  %v3602_v50 = vmax.f32 %v3600_v15, %v3601_v32  ;;  %v3608_v26 = vrot.slane %v3607_v30, 2  ;;  %v3843_v41 = vld [vmem:[#allocation14 + $0x138] sm:$0xff] }
 0x828   :  { %v6986_v15 = vpack.c.bf16 %v3843_v41, %v3842_v42  ;;  %v6990_v9 = vpack.c.bf16 %v3845_v58, %v3844_v20  ;;  %v3847_v22 = vld [vmem:[#allocation14 + $0x158] sm:$0xff]  ;;  %v3950_v41 = vld [vmem:[#allocation16 + $0x30] sm:$0xff] }
 0x829   :  { %v3590_v0 = vmax.f32 %v3588_v44, %v3589_v47  ;;  %v3596_v7 = vrot.slane %v3595_v62, 1  ;;  %v3603_v38 = vrot.slane %v3602_v50, 1  ;;  %v3609_v35 = vmax.f32 %v3607_v30, %v3608_v26  ;;  %v3846_v44 = vld [vmem:[#allocation14 + $0x150] sm:$0xff]  ;;  %v3848_v30 = vld [vmem:[#allocation14 + $0x160] sm:$0xff]  ;;  %v3849_v47 = vld [vmem:[#allocation14 + $0x168] sm:$0xff] }
 0x82a   :  { %v6994_v32 = vpack.c.bf16 %v3847_v22, %v3846_v44  ;;  %v3851_v26 = vld [vmem:[#allocation14 + $0x178] sm:$0xff]  ;;  %v3953_v44 = vld [vmem:[#allocation16 + $0x48] sm:$0xff] }
 0x82b   :  { %v3597_v43 = vmax.f32 %v3595_v62, %v3596_v7  ;;  %v3604_v21 = vmax.f32 %v3602_v50, %v3603_v38  ;;  %v3610_v56 = vrot.slane %v3609_v35, 1  ;;  %v3638_v59 = vsel %vm1542_vm5, %v3590_v0, %v3637_v55  ;;  %v3850_v50 = vld [vmem:[#allocation14 + $0x170] sm:$0xff] }
 0x82c   :  { %v6998_v62 = vpack.c.bf16 %v3849_v47, %v3848_v30  ;;  %v7002_v55 = vpack.c.bf16 %v3851_v26, %v3850_v50  ;;  %v8616_v7 = vld [vmem:[#allocation3] sm:$0xff]  ;;  %v3955_v30 = vld [vmem:[#allocation16 + $0x58] sm:$0xff]  ;;  %v3957_v50 = vld [vmem:[#allocation16 + $0x68] sm:$0xff] }
 0x82d   :  { %v3611_v31 = vmax.f32 %v3609_v35, %v3610_v56  ;;  %v3639_v40 = vsel %vm1544_vm6, %v3597_v43, %v3638_v59  ;;  %v3973_v38 = vld [vmem:[#allocation16 + $0xd0] sm:$0xff]  ;;  %v3974_v35 = vld [vmem:[#allocation16 + $0xd8] sm:$0xff]  ;;  %v3976_v56 = vld [vmem:[#allocation16 + $0xe8] sm:$0xff] }
 0x82e   :  { %v3640_v1 = vsel %vm1546_vm7, %v3604_v21, %v3639_v40  ;;  %v7026_v43 = vpack.c.bf16 %v3974_v35, %v3973_v38  ;;  %v3975_v21 = vld [vmem:[#allocation16 + $0xe0] sm:$0xff] }
 0x82f   :  { %v8611_v19 = vsel %vm1548_vm8, %v3611_v31, %v3640_v1  ;;  %v7030_v59 = vpack.c.bf16 %v3976_v56, %v3975_v21  ;;  %v7034_v31 = vpack.c.bf16 %v3978_v61, %v3977_v60  ;;  %v3944_v40 = vld [vmem:[#allocation16] sm:$0xff]  ;;  %v3945_v1 = vld [vmem:[#allocation16 + $0x8] sm:$0xff]  ;;  %v4134_v56 = vld [vmem:[#allocation16 + $0x110] sm:$0xff] }
 0x830   :  { %3645 = vst [vmem:[#allocation4 + $0x20] sm:$0xff] %v8611_v19  ;;  %6073 = vmatmul.mubr.f32.vlgmr.msra.gmra.mrb[12].mxu1 %v8611_v19  ;;  %7027 = vmatprep.subr.bf16.mxu0 %v7026_v43  ;;  %v4132_v35 = vld [vmem:[#allocation16 + $0x100] sm:$0xff] }
 0x831   :  { %6945 = vmatpush3.bf16.msra.mxu1 %v8549_v48  ;;  %6107 = vmatprep.mubr.f32.mxu1 %v3646_v5  ;;  %v3661_v48 = vld [vmem:[#allocation14 + $0x68] sm:$0xff]  ;;  %v7038_v5 = vpack.c.bf16 %v3945_v1, %v3944_v40 }
 0x832   :  { %6947 = vmatprep.subr.bf16.mxu1 %v6946_v14  ;;  %v6966_v53 = vpack.c.bf16 %v3661_v48, %v3660_v63  ;;  %7029 = vmatpush3.bf16.msra.mxu0 %v7026_v43  ;;  %v4133_v43 = vld [vmem:[#allocation16 + $0x108] sm:$0xff] }
 0x833   :  { %7031 = vmatprep.subr.bf16.mxu0 %v7030_v59  ;;  %v7070_v21 = vpack.c.bf16 %v4133_v43, %v4132_v35  ;;  %v4137_v40 = vld [vmem:[#allocation16 + $0x128] sm:$0xff]  ;;  %v4265_v35 = vld [vmem:[#allocation17 + $0x18] sm:$0xff] }
 0x835   :  { %6949 = vmatpush3.bf16.msra.mxu1 %v6946_v14  ;;  %v4298_v14 = vld [vmem:[#allocation17 + $0x108] sm:$0xff] }
 0x836   :  { %6951 = vmatprep.subr.bf16.mxu1 %v6950_v37  ;;  %7033 = vmatpush3.bf16.msra.mxu0 %v7030_v59  ;;  %v4135_v59 = vld [vmem:[#allocation16 + $0x118] sm:$0xff] }
 0x837   :  { %v3647_v39 = vld [vmem:[#allocation4 + $0x1f] sm:$0xff]  ;;  %7035 = vmatprep.subr.bf16.mxu0 %v7034_v31  ;;  %v7074_v60 = vpack.c.bf16 %v4135_v59, %v4134_v56  ;;  %v7690_v59 = vmov 0.0|0.0  }
 0x838   :  { %v3834_v0 = vld [vmem:[#allocation4 + $0x21] sm:$0xff]  ;;  %v4739_v56 = vld [vmem:[#allocation19 + $0x88] sm:$0xff] }
 0x839   :  { %6953 = vmatpush3.bf16.msra.mxu1 %v6950_v37  ;;  %v7102_v37 = vpack.c.bf16 %v4300_v25, %v4298_v14  ;;  %v4138_v14 = vld [vmem:[#allocation16 + $0x130] sm:$0xff]  ;;  %v4139_v25 = vld [vmem:[#allocation16 + $0x138] sm:$0xff] }
 0x83a   :  { %6955 = vmatprep.subr.bf16.mxu1 %v6954_v23  ;;  %7037 = vmatpush3.bf16.msra.mxu0 %v7034_v31  ;;  %v4136_v31 = vld [vmem:[#allocation16 + $0x120] sm:$0xff]  ;;  %v7082_v28 = vpack.c.bf16 %v4139_v25, %v4138_v14  ;;  %v5165_v25 = vld [vmem:[%s8732_s17] ss:$0 sm:$0xff] }
 0x83b   :  { %7039 = vmatprep.subr.bf16.mxu0 %v7038_v5 }
 0x83d   :  { %6957 = vmatpush3.bf16.msra.mxu1 %v6954_v23  ;;  %v4304_v23 = vld [vmem:[#allocation17 + $0x138] sm:$0xff] }
 0x83e   :  { %6959 = vmatprep.subr.bf16.mxu1 %v6958_v57  ;;  %v7106_v52 = vpack.c.bf16 %v4304_v23, %v4302_v36  ;;  %v4142_v23 = vld [vmem:[#allocation16 + $0x150] sm:$0xff] }
 0x841   :  { %6961 = vmatpush3.bf16.msra.mxu1 %v6958_v57  ;;  %v4301_v57 = vld [vmem:[#allocation17 + $0x120] sm:$0xff] }
 0x842   :  { %6963 = vmatprep.subr.bf16.mxu1 %v6962_v6  ;;  %v7108_v63 = vpack.c.bf16 %v4303_v54, %v4301_v57  ;;  %v4144_v57 = vld [vmem:[#allocation16 + $0x160] sm:$0xff]  ;;  %v4145_v54 = vld [vmem:[#allocation16 + $0x168] sm:$0xff] }
 0x845   :  { %6965 = vmatpush3.bf16.msra.mxu1 %v6962_v6  ;;  %v4308_v6 = vld [vmem:[#allocation17 + $0x158] sm:$0xff] }
 0x846   :  { %6967 = vmatprep.subr.bf16.mxu1 %v6966_v53  ;;  %v7110_v48 = vpack.c.bf16 %v4308_v6, %v4306_v2  ;;  %v7094_v2 = vpack.c.bf16 %v4145_v54, %v4144_v57  ;;  %v4146_v6 = vld [vmem:[#allocation16 + $0x170] sm:$0xff] }
 0x847   :  { %v4264_v57 = vld [vmem:[#allocation17 + $0x10] sm:$0xff] }
 0x849   :  { %6969 = vmatpush3.bf16.msra.mxu1 %v6966_v53  ;;  %v4305_v53 = vld [vmem:[#allocation17 + $0x140] sm:$0xff] }
 0x84a   :  { %6971 = vmatprep.subr.bf16.mxu1 %v6970_v45  ;;  %v7112_v18 = vpack.c.bf16 %v4307_v12, %v4305_v53  ;;  %v4310_v12 = vld [vmem:[#allocation17 + $0x168] sm:$0xff] }
 0x84d   :  { %6973 = vmatpush3.bf16.msra.mxu1 %v6970_v45  ;;  %v5163_v45 = vld [vmem:[%s8725_s10] ss:$0 sm:$0xff] }
 0x84e   :  { %6975 = vmatprep.subr.bf16.mxu1 %v6974_v46 }
 0x850   :  { %6108 = vmatmul.mubr.f32.vlgmr.msra.gmra.mrb[12].mxu1 %v3647_v39 }
 0x851   :  { %6977 = vmatpush3.bf16.msra.mxu1 %v6974_v46  ;;  %6142 = vmatprep.mubr.f32.mxu1 %v3833_v17  ;;  %v3948_v17 = vld [vmem:[#allocation16 + $0x20] sm:$0xff] }
 0x852   :  { %6979 = vmatprep.subr.bf16.mxu1 %v6978_v4 }
 0x855   :  { %6981 = vmatpush3.bf16.msra.mxu1 %v6978_v4  ;;  %v3947_v4 = vld [vmem:[#allocation16 + $0x18] sm:$0xff] }
 0x856   :  { %6983 = vmatprep.subr.bf16.mxu1 %v6982_v3  ;;  %v7042_v34 = vpack.c.bf16 %v3947_v4, %v3946_v16  ;;  %v4316_v16 = vld [vmem:[#allocation17 + $0x198] sm:$0xff] }
 0x859   :  { %6985 = vmatpush3.bf16.msra.mxu1 %v6982_v3  ;;  %v3949_v3 = vld [vmem:[#allocation16 + $0x28] sm:$0xff] }
 0x85a   :  { %6987 = vmatprep.subr.bf16.mxu1 %v6986_v15  ;;  %v7046_v42 = vpack.c.bf16 %v3949_v3, %v3948_v17  ;;  %v4318_v17 = vld [vmem:[#allocation17 + $0x1a8] sm:$0xff]  ;;  %v4320_v3 = vld [vmem:[#allocation17 + $0x1b8] sm:$0xff] }
 0x85d   :  { %6989 = vmatpush3.bf16.msra.mxu1 %v6986_v15  ;;  %v3951_v15 = vld [vmem:[#allocation16 + $0x38] sm:$0xff] }
 0x85e   :  { %6991 = vmatprep.subr.bf16.mxu1 %v6990_v9  ;;  %v7050_v58 = vpack.c.bf16 %v3951_v15, %v3950_v41  ;;  %v4317_v41 = vld [vmem:[#allocation17 + $0x1a0] sm:$0xff]  ;;  %v4319_v15 = vld [vmem:[#allocation17 + $0x1b0] sm:$0xff] }
 0x861   :  { %6993 = vmatpush3.bf16.msra.mxu1 %v6990_v9  ;;  %v3952_v9 = vld [vmem:[#allocation16 + $0x40] sm:$0xff] }
 0x862   :  { %6995 = vmatprep.subr.bf16.mxu1 %v6994_v32  ;;  %v7054_v22 = vpack.c.bf16 %v3953_v44, %v3952_v9  ;;  %v4324_v9 = vld [vmem:[#allocation17 + $0x1d8] sm:$0xff] }
 0x865   :  { %6997 = vmatpush3.bf16.msra.mxu1 %v6994_v32  ;;  %v3954_v32 = vld [vmem:[#allocation16 + $0x50] sm:$0xff] }
 0x866   :  { %6999 = vmatprep.subr.bf16.mxu1 %v6998_v62  ;;  %v7058_v47 = vpack.c.bf16 %v3955_v30, %v3954_v32  ;;  %v4323_v32 = vld [vmem:[#allocation17 + $0x1d0] sm:$0xff] }
 0x869   :  { %7001 = vmatpush3.bf16.msra.mxu1 %v6998_v62  ;;  %v3956_v62 = vld [vmem:[#allocation16 + $0x60] sm:$0xff] }
 0x86a   :  { %7003 = vmatprep.subr.bf16.mxu1 %v7002_v55  ;;  %v7062_v26 = vpack.c.bf16 %v3957_v50, %v3956_v62  ;;  %v4328_v62 = vld [vmem:[#allocation17 + $0x1f8] sm:$0xff] }
 0x86d   :  { %7005 = vmatpush3.bf16.msra.mxu1 %v7002_v55  ;;  %v3958_v55 = vld [vmem:[#allocation16 + $0x70] sm:$0xff] }
 0x86e   :  { %7103 = vmatprep.subr.bf16.mxu1 %v7102_v37  ;;  %v4140_v37 = vld [vmem:[#allocation16 + $0x140] sm:$0xff] }
 0x86f   :  { %v7086_v36 = vpack.c.bf16 %v4141_v33, %v4140_v37  ;;  %v5166_v33 = vld [vmem:[%s8733_s18] ss:$0 sm:$0xff]  ;;  %s8757_s18 = sld [smem:[#allocation33_spill]] }
 0x870   :  { %6143 = vmatmul.mubr.f32.vlgmr.msra.gmra.mrb[12].mxu1 %v3834_v0  ;;  %v3959_v0 = vld [vmem:[#allocation16 + $0x78] sm:$0xff] }
 0x871   :  { %4393 = vmatprep.mubr.f32.mxu1 %v8616_v7  ;;  %7105 = vmatpush1.bf16.msra.mxu1 %v7104_v51  ;;  %v7066_v38 = vpack.c.bf16 %v3959_v0, %v3958_v55  ;;  %v4143_v51 = vld [vmem:[#allocation16 + $0x158] sm:$0xff]  ;;  %v4327_v55 = vld [vmem:[#allocation17 + $0x1f0] sm:$0xff] }
 0x872   :  { %7107 = vmatprep.subr.bf16.mxu1 %v7106_v52  ;;  %v7090_v52 = vpack.c.bf16 %v4143_v51, %v4142_v23 }
 0x875   :  { %7109 = vmatpush1.bf16.msra.mxu1 %v7108_v63  ;;  %v4147_v63 = vld [vmem:[#allocation16 + $0x178] sm:$0xff] }
 0x876   :  { %7111 = vmatprep.subr.bf16.mxu1 %v7110_v48  ;;  %v7098_v48 = vpack.c.bf16 %v4147_v63, %v4146_v6  ;;  %v4269_v6 = vld [vmem:[#allocation17 + $0x38] sm:$0xff] }
 0x879   :  { %7113 = vmatpush1.bf16.msra.mxu1 %v7112_v18  ;;  %v4312_v18 = vld [vmem:[#allocation17 + $0x178] sm:$0xff] }
 0x943   :  { %v6144_v27 = vpop.f32.mrb[12].mxu1 }
 0x944   :  { %v3937_v8 = vadd.f32 %v6144_v27, %v5163_v45  ;;  %v3918_v46 = vpop.f32.mrb[13].mxu1  ;;  %v4309_v27 = vld [vmem:[#allocation17 + $0x160] sm:$0xff] }
 0x945   :  { %v3936_v49 = vadd.f32 %v5163_v45, %v3918_v46  ;;  %v7114_v45 = vpack.c.bf16 %v4312_v18, %v4310_v12 }
 0x946   :  { %v3939_v39 = vmax.f32 %v3937_v8, 0.0  ;;  %v4311_v8 = vld [vmem:[#allocation17 + $0x170] sm:$0xff] }
 0x947   :  { %v3938_v29 = vmax.f32 %v3936_v49, 0.0  ;;  %v7116_v46 = vpack.c.bf16 %v4311_v8, %v4309_v27  ;;  %7115 = vmatprep.subr.bf16.mxu1 %v7114_v45  ;;  %v4314_v49 = vld [vmem:[#allocation17 + $0x188] sm:$0xff]  ;;  %v4266_v45 = vld [vmem:[#allocation17 + $0x20] sm:$0xff]  ;;  %v4273_v8 = vld [vmem:[#allocation17 + $0x58] sm:$0xff] }
 0x948   :  { %3941 = vst [vmem:[#allocation4 + $0x20] sm:$0xff] %v3939_v39  ;;  %v7118_v4 = vpack.c.bf16 %v4316_v16, %v4314_v49  ;;  %v4271_v27 = vld [vmem:[#allocation17 + $0x48] sm:$0xff]  ;;  %v4270_v49 = vld [vmem:[#allocation17 + $0x40] sm:$0xff]  ;;  %v4272_v16 = vld [vmem:[#allocation17 + $0x50] sm:$0xff] }
 0x949   :  { %3940 = vst [vmem:[#allocation4 + $0x8] sm:$0xff] %v3938_v29  ;;  %6177 = vmatprep.mubr.f32.mxu0 %v3938_v29  ;;  %7117 = vmatpush1.bf16.msra.mxu1 %v7116_v46  ;;  %v4315_v29 = vld [vmem:[#allocation17 + $0x190] sm:$0xff]  ;;  %v7142_v46 = vpack.c.bf16 %v4273_v8, %v4271_v27  ;;  %v4498_v8 = vld [vmem:[#allocation17 + $0x260] sm:$0xff] }
 0x94a   :  { %6178 = vmatmul.mubr.f32.vlgmr.msra.gmra.mrb[28].mxu0 %v3939_v39  ;;  %v4313_v39 = vld [vmem:[#allocation17 + $0x180] sm:$0xff]  ;;  %7119 = vmatprep.subr.bf16.mxu1 %v7118_v4  ;;  %v4275_v4 = vld [vmem:[#allocation17 + $0x68] sm:$0xff] }
 0x94b   :  { %7041 = vmatpush3.bf16.msra.mxu0 %v7038_v5  ;;  %v7078_v5 = vpack.c.bf16 %v4137_v40, %v4136_v31 }
 0x94c   :  { %7043 = vmatprep.subr.bf16.mxu0 %v7042_v34 }
 0x94f   :  { %7045 = vmatpush3.bf16.msra.mxu0 %v7042_v34  ;;  %v3943_v61 = vld [vmem:[#allocation4 + $0x1f] sm:$0xff]  ;;  %v7120_v34 = vpack.c.bf16 %v4315_v29, %v4313_v39  ;;  %v4277_v39 = vld [vmem:[#allocation17 + $0x78] sm:$0xff]  ;;  %v7144_v29 = vpack.c.bf16 %v4272_v16, %v4270_v49 }
 0x950   :  { %v3942_v20 = vld [vmem:[#allocation4 + $0x7] sm:$0xff]  ;;  %7047 = vmatprep.subr.bf16.mxu0 %v7046_v42 }
 0x951   :  { %6212 = vmatprep.mubr.f32.mxu0 %v3942_v20  ;;  %v4129_v1 = vld [vmem:[#allocation4 + $0x9] sm:$0xff]  ;;  %v4130_v53 = vld [vmem:[#allocation4 + $0x21] sm:$0xff]  ;;  %7121 = vmatpush1.bf16.msra.mxu1 %v7120_v34  ;;  %v7124_v20 = vpack.c.bf16 %v4319_v15, %v4317_v41  ;;  %v7146_v34 = vpack.c.bf16 %v4277_v39, %v4275_v4 }
 0x952   :  { %v4281_v41 = vld [vmem:[#allocation17 + $0x98] sm:$0xff]  ;;  %v4502_v39 = vld [vmem:[#allocation17 + $0x280] sm:$0xff] }
 0x953   :  { %7049 = vmatpush3.bf16.msra.mxu0 %v7046_v42  ;;  %v7122_v42 = vpack.c.bf16 %v4320_v3, %v4318_v17  ;;  %v4274_v17 = vld [vmem:[#allocation17 + $0x60] sm:$0xff]  ;;  %v4276_v3 = vld [vmem:[#allocation17 + $0x70] sm:$0xff]  ;;  %v4505_v49 = vld [vmem:[#allocation17 + $0x298] sm:$0xff] }
 0x954   :  { %7051 = vmatprep.subr.bf16.mxu0 %v7050_v58  ;;  %v7148_v15 = vpack.c.bf16 %v4276_v3, %v4274_v17  ;;  %v4509_v17 = vld [vmem:[#allocation17 + $0x2b8] sm:$0xff] }
 0x955   :  { %7123 = vmatprep.subr.bf16.mxu1 %v7122_v42  ;;  %v4279_v42 = vld [vmem:[#allocation17 + $0x88] sm:$0xff] }
 0x956   :  { %7125 = vmatpush1.bf16.msra.mxu1 %v7124_v20  ;;  %v7150_v20 = vpack.c.bf16 %v4281_v41, %v4279_v42  ;;  %v4506_v41 = vld [vmem:[#allocation17 + $0x2a0] sm:$0xff] }
 0x957   :  { %7053 = vmatpush3.bf16.msra.mxu0 %v7050_v58  ;;  %v4322_v58 = vld [vmem:[#allocation17 + $0x1c8] sm:$0xff] }
 0x958   :  { %7055 = vmatprep.subr.bf16.mxu0 %v7054_v22  ;;  %v7126_v44 = vpack.c.bf16 %v4324_v9, %v4322_v58  ;;  %v4278_v58 = vld [vmem:[#allocation17 + $0x80] sm:$0xff]  ;;  %v4280_v9 = vld [vmem:[#allocation17 + $0x90] sm:$0xff] }
 0x95a   :  { %7127 = vmatprep.subr.bf16.mxu1 %v7126_v44  ;;  %v4283_v44 = vld [vmem:[#allocation17 + $0xa8] sm:$0xff] }
 0x95b   :  { %7057 = vmatpush3.bf16.msra.mxu0 %v7054_v22  ;;  %v4321_v22 = vld [vmem:[#allocation17 + $0x1c0] sm:$0xff] }
 0x95c   :  { %7059 = vmatprep.subr.bf16.mxu0 %v7058_v47  ;;  %v7128_v30 = vpack.c.bf16 %v4323_v32, %v4321_v22  ;;  %v4285_v22 = vld [vmem:[#allocation17 + $0xb8] sm:$0xff]  ;;  %v7152_v32 = vpack.c.bf16 %v4280_v9, %v4278_v58 }
 0x95d   :  { %v4513_v58 = vld [vmem:[#allocation17 + $0x2d8] sm:$0xff] }
 0x95e   :  { %7129 = vmatpush1.bf16.msra.mxu1 %v7128_v30  ;;  %v7154_v30 = vpack.c.bf16 %v4285_v22, %v4283_v44  ;;  %v4510_v22 = vld [vmem:[#allocation17 + $0x2c0] sm:$0xff] }
 0x95f   :  { %7061 = vmatpush3.bf16.msra.mxu0 %v7058_v47  ;;  %v4326_v47 = vld [vmem:[#allocation17 + $0x1e8] sm:$0xff] }
 0x960   :  { %7063 = vmatprep.subr.bf16.mxu0 %v7062_v26  ;;  %v7130_v50 = vpack.c.bf16 %v4328_v62, %v4326_v47  ;;  %v4282_v47 = vld [vmem:[#allocation17 + $0xa0] sm:$0xff]  ;;  %v4284_v62 = vld [vmem:[#allocation17 + $0xb0] sm:$0xff] }
 0x962   :  { %7131 = vmatprep.subr.bf16.mxu1 %v7130_v50  ;;  %v4287_v50 = vld [vmem:[#allocation17 + $0xc8] sm:$0xff] }
 0x963   :  { %7065 = vmatpush3.bf16.msra.mxu0 %v7062_v26  ;;  %v4325_v26 = vld [vmem:[#allocation17 + $0x1e0] sm:$0xff] }
 0x964   :  { %7067 = vmatprep.subr.bf16.mxu0 %v7066_v38  ;;  %v7132_v0 = vpack.c.bf16 %v4327_v55, %v4325_v26  ;;  %v4289_v26 = vld [vmem:[#allocation17 + $0xd8] sm:$0xff]  ;;  %v7156_v55 = vpack.c.bf16 %v4284_v62, %v4282_v47 }
 0x965   :  { %v4517_v47 = vld [vmem:[#allocation17 + $0x2f8] sm:$0xff] }
 0x966   :  { %7133 = vmatpush1.bf16.msra.mxu1 %v7132_v0  ;;  %v7158_v0 = vpack.c.bf16 %v4289_v26, %v4287_v50  ;;  %v4514_v26 = vld [vmem:[#allocation17 + $0x2e0] sm:$0xff] }
 0x967   :  { %7069 = vmatpush3.bf16.msra.mxu0 %v7066_v38  ;;  %v4263_v38 = vld [vmem:[#allocation17 + $0x8] sm:$0xff] }
 0x968   :  { %7071 = vmatprep.subr.bf16.mxu0 %v7070_v21  ;;  %v7134_v43 = vpack.c.bf16 %v4265_v35, %v4263_v38  ;;  %v4286_v38 = vld [vmem:[#allocation17 + $0xc0] sm:$0xff]  ;;  %v4288_v35 = vld [vmem:[#allocation17 + $0xd0] sm:$0xff] }
 0x96a   :  { %6213 = vmatmul.mubr.f32.vlgmr.msra.gmra.mrb[28].mxu0 %v3943_v61  ;;  %7135 = vmatprep.subr.bf16.mxu1 %v7134_v43  ;;  %v5164_v61 = vld [vmem:[%s8727_s12] ss:$0 sm:$0xff]  ;;  %v4291_v43 = vld [vmem:[#allocation17 + $0xe8] sm:$0xff] }
 0x96b   :  { %7073 = vmatpush3.bf16.msra.mxu0 %v7070_v21  ;;  %6247 = vmatprep.mubr.f32.mxu0 %v4129_v1  ;;  %v4738_v21 = vld [vmem:[#allocation19 + $0x80] sm:$0xff] }
 0x96c   :  { %7075 = vmatprep.subr.bf16.mxu0 %v7074_v60 }
 0x96f   :  { %7077 = vmatpush3.bf16.msra.mxu0 %v7074_v60  ;;  %v7199_v60 = vpack.c.bf16 %v4739_v56, %v4738_v21  ;;  %v4293_v21 = vld [vmem:[#allocation17 + $0xf8] sm:$0xff]  ;;  %v7160_v56 = vpack.c.bf16 %v4288_v35, %v4286_v38  ;;  %v4903_v38 = vld [vmem:[#allocation19 + $0x100] sm:$0xff]  ;;  %v4904_v35 = vld [vmem:[#allocation19 + $0x108] sm:$0xff] }
 0x970   :  { %7079 = vmatprep.subr.bf16.mxu0 %v7078_v5 }
 0x973   :  { %7081 = vmatpush3.bf16.msra.mxu0 %v7078_v5 }
 0x974   :  { %7083 = vmatprep.subr.bf16.mxu0 %v7082_v28 }
 0x977   :  { %7085 = vmatpush3.bf16.msra.mxu0 %v7082_v28 }
 0x978   :  { %7087 = vmatprep.subr.bf16.mxu0 %v7086_v36 }
 0x97b   :  { %7089 = vmatpush3.bf16.msra.mxu0 %v7086_v36 }
 0x97c   :  { %7091 = vmatprep.subr.bf16.mxu0 %v7090_v52 }
 0x97f   :  { %7093 = vmatpush3.bf16.msra.mxu0 %v7090_v52  ;;  %v4262_v52 = vld [vmem:[#allocation17] sm:$0xff] }
 0x980   :  { %7095 = vmatprep.subr.bf16.mxu0 %v7094_v2 }
 0x983   :  { %7097 = vmatpush3.bf16.msra.mxu0 %v7094_v2  ;;  %v4267_v2 = vld [vmem:[#allocation17 + $0x28] sm:$0xff] }
 0x984   :  { %7099 = vmatprep.subr.bf16.mxu0 %v7098_v48  ;;  %v7138_v18 = vpack.c.bf16 %v4269_v6, %v4267_v2  ;;  %v4497_v2 = vld [vmem:[#allocation17 + $0x258] sm:$0xff] }
 0x987   :  { %7101 = vmatpush3.bf16.msra.mxu0 %v7098_v48 }
 0x988   :  { %7198 = vmatprep.subr.bf16.mxu0 %v7690_v59 }
 0x98a   :  { %6248 = vmatmul.mubr.f32.vlgmr.msra.gmra.mrb[28].mxu0 %v4130_v53  ;;  %v7136_v53 = vpack.c.bf16 %v4264_v57, %v4262_v52  ;;  %v4492_v52 = vld [vmem:[#allocation17 + $0x230] sm:$0xff] }
 0x98b   :  { %7200 = vmatpush3.bf16.msra.mxu0 %v7199_v60  ;;  %v7162_v60 = vpack.c.bf16 %v4293_v21, %v4291_v43  ;;  %v7247_v43 = vpack.c.bf16 %v4904_v35, %v4903_v38  ;;  %6282 = vmatprep.mubr.msk.f32.mxu0 %vm7691_vm9, %v8616_v7 }
 0x98c   :  { %7201 = vmatprep.subr.bf16.mxu0 %v7690_v59 }
 0xa5d   :  { %v6249_v31 = vpop.f32.mrb[28].mxu0 }
 0xa5e   :  { %v4233_v40 = vadd.f32 %v6249_v31, %v5164_v61  ;;  %v4214_v1 = vpop.f32.mrb[29].mxu0  ;;  %v4292_v31 = vld [vmem:[#allocation17 + $0xf0] sm:$0xff] }
 0xa5f   :  { %v4232_v5 = vadd.f32 %v5164_v61, %v4214_v1  ;;  %v4290_v61 = vld [vmem:[#allocation17 + $0xe0] sm:$0xff]  ;;  %v4489_v1 = vld [vmem:[#allocation17 + $0x218] sm:$0xff] }
 0xa60   :  { %v4235_v14 = vmax.f32 %v4233_v40, 0.0  ;;  %v4487_v40 = vld [vmem:[#allocation17 + $0x208] sm:$0xff] }
 0xa61   :  { %v4234_v28 = vmax.f32 %v4232_v5, 0.0  ;;  %v7164_v5 = vpack.c.bf16 %v4292_v31, %v4290_v61  ;;  %v4741_v61 = vld [vmem:[#allocation19 + $0x98] sm:$0xff] }
 0xa62   :  { %v4237_v37 = vadd.f32 %v4235_v14, %v8611_v19  ;;  %v4268_v19 = vld [vmem:[#allocation17 + $0x30] sm:$0xff]  ;;  %v7166_v14 = vpack.c.bf16 %v4489_v1, %v4487_v40  ;;  %v4906_v1 = vld [vmem:[#allocation19 + $0x118] sm:$0xff] }
 0xa63   :  { %v4236_v36 = vadd.f32 %v4234_v28, %v8594_v10  ;;  %v7140_v10 = vpack.c.bf16 %v4268_v19, %v4266_v45  ;;  %v4488_v28 = vld [vmem:[#allocation17 + $0x210] sm:$0xff]  ;;  %v4501_v45 = vld [vmem:[#allocation17 + $0x278] sm:$0xff] }
 0xa64   :  { %v4246_v23 = vmul.f32 %v5165_v25, %v4237_v37  ;;  %v4491_v37 = vld [vmem:[#allocation17 + $0x228] sm:$0xff]  ;;  %v4905_v40 = vld [vmem:[#allocation19 + $0x110] sm:$0xff] }
 0xa65   :  { %v4245_v51 = vmul.f32 %v5165_v25, %v4236_v36  ;;  %v4486_v25 = vld [vmem:[#allocation17 + $0x200] sm:$0xff] }
 0xa66   :  { %v4255_v54 = vadd.f32 %v5166_v33, %v4246_v23  ;;  %v7168_v36 = vpack.c.bf16 %v4488_v28, %v4486_v25  ;;  %v4743_v25 = vld [vmem:[#allocation19 + $0xa8] sm:$0xff] }
 0xa67   :  { %v4254_v63 = vadd.f32 %v5166_v33, %v4245_v51  ;;  %v4493_v33 = vld [vmem:[#allocation17 + $0x238] sm:$0xff]  ;;  %v4490_v51 = vld [vmem:[#allocation17 + $0x220] sm:$0xff] }
 0xa68   :  { %v4257_v48 = vmax.f32 %v4255_v54, 0.0  ;;  %v7170_v23 = vpack.c.bf16 %v4493_v33, %v4491_v37  ;;  %v4495_v54 = vld [vmem:[#allocation17 + $0x248] sm:$0xff]  ;;  %v7172_v6 = vpack.c.bf16 %v4492_v52, %v4490_v51  ;;  %v4907_v37 = vld [vmem:[#allocation19 + $0x120] sm:$0xff]  ;;  %v4745_v51 = vld [vmem:[#allocation19 + $0xb8] sm:$0xff] }
 0xa69   :  { %v4256_v12 = vmax.f32 %v4254_v63, 0.0  ;;  %v7174_v63 = vpack.c.bf16 %v4497_v2, %v4495_v54  ;;  %v4908_v33 = vld [vmem:[#allocation19 + $0x128] sm:$0xff]  ;;  %v4910_v54 = vld [vmem:[#allocation19 + $0x138] sm:$0xff] }
 0xa6a   :  { %4259 = vst [vmem:[#allocation4 + $0x20] sm:$0xff] %v4257_v48 }
 0xa6b   :  { %4258 = vst [vmem:[#allocation4 + $0x8] sm:$0xff] %v4256_v12  ;;  %4394 = vmatmul.mubr.f32.vlgmr.msra.gmra.mrb[14].mxu1 %v4256_v12 }
 0xa6c   :  { %7137 = vmatpush1.bf16.msra.mxu1 %v7136_v53  ;;  %4399 = vmatprep.mubr.f32.mxu1 %v8616_v7  ;;  %v4496_v53 = vld [vmem:[#allocation17 + $0x250] sm:$0xff] }
 0xa6d   :  { %7139 = vmatprep.subr.bf16.mxu1 %v7138_v18  ;;  %v4499_v18 = vld [vmem:[#allocation17 + $0x268] sm:$0xff] }
 0xa6e   :  { %v7178_v27 = vpack.c.bf16 %v4501_v45, %v4499_v18  ;;  %v4748_v45 = vld [vmem:[#allocation19 + $0xd0] sm:$0xff] }
 0xa6f   :  { %4400 = vmatmul.mubr.f32.gmra.mrb[16].mxu1 %v4257_v48  ;;  %v4494_v48 = vld [vmem:[#allocation17 + $0x240] sm:$0xff] }
 0xa70   :  { %7141 = vmatpush1.bf16.msra.mxu1 %v7140_v10  ;;  %4470 = vmatprep.mubr.f32.mxu1 %v8616_v7  ;;  %v7176_v19 = vpack.c.bf16 %v4496_v53, %v4494_v48  ;;  %v4500_v10 = vld [vmem:[#allocation17 + $0x270] sm:$0xff]  ;;  %v4911_v53 = vld [vmem:[#allocation19 + $0x140] sm:$0xff] }
 0xa71   :  { %7143 = vmatprep.subr.bf16.mxu1 %v7142_v46  ;;  %v4261_v12 = vld [vmem:[#allocation4 + $0x1f] sm:$0xff]  ;;  %v7180_v16 = vpack.c.bf16 %v4500_v10, %v4498_v8  ;;  %v4914_v10 = vld [vmem:[#allocation19 + $0x158] sm:$0xff] }
 0xa72   :  { %v4260_v57 = vld [vmem:[#allocation4 + $0x7] sm:$0xff]  ;;  %v4503_v46 = vld [vmem:[#allocation17 + $0x288] sm:$0xff] }
 0xa73   :  { %v7182_v4 = vpack.c.bf16 %v4505_v49, %v4503_v46  ;;  %v4483_v21 = vld [vmem:[#allocation4 + $0x9] sm:$0xff]  ;;  %v4913_v8 = vld [vmem:[#allocation19 + $0x150] sm:$0xff] }
 0xa74   :  { %7145 = vmatpush1.bf16.msra.mxu1 %v7144_v29  ;;  %v4504_v29 = vld [vmem:[#allocation17 + $0x290] sm:$0xff]  ;;  %v7262_v46 = vpack.c.bf16 %v4914_v10, %v4913_v8  ;;  %v4750_v49 = vld [vmem:[#allocation19 + $0xe0] sm:$0xff] }
 0xa75   :  { %7147 = vmatprep.subr.bf16.mxu1 %v7146_v34  ;;  %v4507_v34 = vld [vmem:[#allocation17 + $0x2a8] sm:$0xff]  ;;  %v7184_v3 = vpack.c.bf16 %v4504_v29, %v4502_v39  ;;  %v4915_v39 = vld [vmem:[#allocation19 + $0x160] sm:$0xff] }
 0xa76   :  { %v7186_v42 = vpack.c.bf16 %v4509_v17, %v4507_v34  ;;  %v4916_v29 = vld [vmem:[#allocation19 + $0x168] sm:$0xff]  ;;  %v4752_v17 = vld [vmem:[#allocation19 + $0xf0] sm:$0xff] }
 0xa77   :  { %v7265_v34 = vpack.c.bf16 %v4916_v29, %v4915_v39 }
 0xa78   :  { %7149 = vmatpush1.bf16.msra.mxu1 %v7148_v15  ;;  %v4508_v15 = vld [vmem:[#allocation17 + $0x2b0] sm:$0xff] }
 0xa79   :  { %7151 = vmatprep.subr.bf16.mxu1 %v7150_v20  ;;  %v4511_v20 = vld [vmem:[#allocation17 + $0x2c8] sm:$0xff]  ;;  %v7188_v9 = vpack.c.bf16 %v4508_v15, %v4506_v41  ;;  %v4918_v15 = vld [vmem:[#allocation19 + $0x178] sm:$0xff] }
 0xa7a   :  { %v7190_v44 = vpack.c.bf16 %v4513_v58, %v4511_v20  ;;  %v4599_v58 = vld [vmem:[%s8757_s18] sm:$0x3] }
 0xa7c   :  { %7153 = vmatpush1.bf16.msra.mxu1 %v7152_v32  ;;  %v4512_v32 = vld [vmem:[#allocation17 + $0x2d0] sm:$0xff] }
 0xa7d   :  { %7155 = vmatprep.subr.bf16.mxu1 %v7154_v30  ;;  %v4515_v30 = vld [vmem:[#allocation17 + $0x2e8] sm:$0xff]  ;;  %v7192_v62 = vpack.c.bf16 %v4512_v32, %v4510_v22 }
 0xa7e   :  { %v7194_v50 = vpack.c.bf16 %v4517_v47, %v4515_v30 }
 0xa80   :  { %7157 = vmatpush1.bf16.msra.mxu1 %v7156_v55  ;;  %v4516_v55 = vld [vmem:[#allocation17 + $0x2f0] sm:$0xff] }
 0xa81   :  { %7159 = vmatprep.subr.bf16.mxu1 %v7158_v0  ;;  %v7196_v0 = vpack.c.bf16 %v4516_v55, %v4514_v26 }
 0xa84   :  { %7161 = vmatpush1.bf16.msra.mxu1 %v7160_v56  ;;  %v4484_v56 = vld [vmem:[#allocation4 + $0x21] sm:$0xff] }
 0xa85   :  { %7163 = vmatprep.subr.bf16.mxu1 %v7162_v60  ;;  %v4740_v60 = vld [vmem:[#allocation19 + $0x90] sm:$0xff] }
 0xa86   :  { %v7202_v31 = vpack.c.bf16 %v4741_v61, %v4740_v60 }
 0xa88   :  { %7165 = vmatpush1.bf16.msra.mxu1 %v7164_v5  ;;  %v7250_v5 = vpack.c.bf16 %v4906_v1, %v4905_v40  ;;  %7203 = vmatpush3.bf16.msra.mxu0 %v7202_v31 }
 0xa89   :  { %7167 = vmatprep.subr.bf16.mxu1 %v7166_v14  ;;  %7204 = vmatprep.subr.bf16.mxu0 %v7690_v59  ;;  %v4742_v14 = vld [vmem:[#allocation19 + $0xa0] sm:$0xff] }
 0xa8a   :  { %v7205_v28 = vpack.c.bf16 %v4743_v25, %v4742_v14 }
 0xa8b   :  { %4471 = vmatmul.mubr.f32.vlgmr.msra.gmra.mrb[14].mxu1 %v4260_v57  ;;  %v4909_v57 = vld [vmem:[#allocation19 + $0x130] sm:$0xff] }
 0xa8c   :  { %7169 = vmatpush1.bf16.msra.mxu1 %v7168_v36  ;;  %4476 = vmatprep.mubr.f32.mxu1 %v8616_v7  ;;  %v7253_v36 = vpack.c.bf16 %v4908_v33, %v4907_v37  ;;  %v7256_v2 = vpack.c.bf16 %v4910_v54, %v4909_v57 }
 0xa8d   :  { %7171 = vmatprep.subr.bf16.mxu1 %v7170_v23  ;;  %7206 = vmatpush3.bf16.msra.mxu0 %v7205_v28  ;;  %v4744_v23 = vld [vmem:[#allocation19 + $0xb0] sm:$0xff] }
 0xa8e   :  { %7207 = vmatprep.subr.bf16.mxu0 %v7690_v59  ;;  %v7208_v52 = vpack.c.bf16 %v4745_v51, %v4744_v23 }
 0xa8f   :  { %4477 = vmatmul.mubr.f32.gmra.mrb[16].mxu1 %v4261_v12  ;;  %v4912_v12 = vld [vmem:[#allocation19 + $0x148] sm:$0xff] }
 0xa90   :  { %7173 = vmatpush1.bf16.msra.mxu1 %v7172_v6  ;;  %4582 = vmatprep.mubr.f32.mxu1 %v8616_v7  ;;  %v4746_v6 = vld [vmem:[#allocation19 + $0xc0] sm:$0xff]  ;;  %v7259_v18 = vpack.c.bf16 %v4912_v12, %v4911_v53 }
 0xa91   :  { %7175 = vmatprep.subr.bf16.mxu1 %v7174_v63  ;;  %7209 = vmatpush3.bf16.msra.mxu0 %v7208_v52  ;;  %v4747_v63 = vld [vmem:[#allocation19 + $0xc8] sm:$0xff] }
 0xa92   :  { %7210 = vmatprep.subr.bf16.mxu0 %v7690_v59  ;;  %v7211_v48 = vpack.c.bf16 %v4747_v63, %v4746_v6 }
 0xa94   :  { %7177 = vmatpush1.bf16.msra.mxu1 %v7176_v19  ;;  %v4749_v19 = vld [vmem:[#allocation19 + $0xd8] sm:$0xff] }
 0xa95   :  { %7179 = vmatprep.subr.bf16.mxu1 %v7178_v27  ;;  %7212 = vmatpush3.bf16.msra.mxu0 %v7211_v48  ;;  %v7214_v27 = vpack.c.bf16 %v4749_v19, %v4748_v45 }
 0xa96   :  { %7213 = vmatprep.subr.bf16.mxu0 %v7690_v59 }
 0xa98   :  { %7181 = vmatpush1.bf16.msra.mxu1 %v7180_v16  ;;  %v4751_v16 = vld [vmem:[#allocation19 + $0xe8] sm:$0xff] }
 0xa99   :  { %7183 = vmatprep.subr.bf16.mxu1 %v7182_v4  ;;  %7215 = vmatpush3.bf16.msra.mxu0 %v7214_v27  ;;  %v7217_v4 = vpack.c.bf16 %v4751_v16, %v4750_v49 }
 0xa9a   :  { %7216 = vmatprep.subr.bf16.mxu0 %v7690_v59 }
 0xa9c   :  { %7185 = vmatpush1.bf16.msra.mxu1 %v7184_v3  ;;  %v4753_v3 = vld [vmem:[#allocation19 + $0xf8] sm:$0xff] }
 0xa9d   :  { %7187 = vmatprep.subr.bf16.mxu1 %v7186_v42  ;;  %v4917_v42 = vld [vmem:[#allocation19 + $0x170] sm:$0xff]  ;;  %7218 = vmatpush3.bf16.msra.mxu0 %v7217_v4  ;;  %v7220_v41 = vpack.c.bf16 %v4753_v3, %v4752_v17 }
 0xa9e   :  { %7219 = vmatprep.subr.bf16.mxu0 %v7690_v59  ;;  %v7268_v20 = vpack.c.bf16 %v4918_v15, %v4917_v42 }
 0xaa0   :  { %7189 = vmatpush1.bf16.msra.mxu1 %v7188_v9  ;;  %v4604_v9 = vrot.slane %v4599_v58, %v8062_v11 }
 0xaa1   :  { %7191 = vmatprep.subr.bf16.mxu1 %v7190_v44  ;;  %7221 = vmatpush3.bf16.msra.mxu0 %v7220_v41  ;;  %v4608_v44 = vrot.slane %v4599_v58, %v8067_v13 }
 0xaa2   :  { %7222 = vmatprep.subr.bf16.mxu0 %v7690_v59 }
 0xaa4   :  { %7193 = vmatpush1.bf16.msra.mxu1 %v7192_v62 }
 0xaa5   :  { %7195 = vmatprep.subr.bf16.mxu1 %v7194_v50 }
 0xaa8   :  { %7197 = vmatpush1.bf16.msra.mxu1 %v7196_v0 }
 0xaa9   :  { %7246 = vmatprep.subr.bf16.mxu1 %v7690_v59 }
 0xaab   :  { %4583 = vmatmul.mubr.f32.vlgmr.msra.gmra.mrb[14].mxu1 %v4483_v21 }
 0xaac   :  { %4588 = vmatprep.mubr.f32.mxu1 %v8616_v7  ;;  %7248 = vmatpush3.bf16.msra.mxu1 %v7247_v43 }
 0xaad   :  { %7249 = vmatprep.subr.bf16.mxu1 %v7690_v59 }
 0xaaf   :  { %4589 = vmatmul.mubr.f32.gmra.mrb[16].mxu1 %v4484_v56 }
 0xab0   :  { %7251 = vmatpush3.bf16.msra.mxu1 %v7250_v5  ;;  %6352 = vmatprep.mubr.msk.f32.mxu1 %vm7691_vm9, %v8616_v7 }
 0xab1   :  { %7252 = vmatprep.subr.bf16.mxu1 %v7690_v59 }
 0xab4   :  { %7254 = vmatpush3.bf16.msra.mxu1 %v7253_v36 }
 0xab5   :  { %7255 = vmatprep.subr.bf16.mxu1 %v7690_v59 }
 0xab8   :  { %7257 = vmatpush3.bf16.msra.mxu1 %v7256_v2 }
 0xab9   :  { %7258 = vmatprep.subr.bf16.mxu1 %v7690_v59 }
 0xabc   :  { %7260 = vmatpush3.bf16.msra.mxu1 %v7259_v18 }
 0xabd   :  { %7261 = vmatprep.subr.bf16.mxu1 %v7690_v59 }
 0xac0   :  { %7263 = vmatpush3.bf16.msra.mxu1 %v7262_v46 }
 0xac1   :  { %7264 = vmatprep.subr.bf16.mxu1 %v7690_v59 }
 0xac4   :  { %7266 = vmatpush3.bf16.msra.mxu1 %v7265_v34 }
 0xac5   :  { %7267 = vmatprep.subr.bf16.mxu1 %v7690_v59 }
 0xac8   :  { %7269 = vmatpush3.bf16.msra.mxu1 %v7268_v20 }
 0xb7e   :  { %v4584_v22 = vpop.f32.mrb[14].mxu1 }
 0xb7f   :  { %v4611_v32 = vadd.f32 %v4604_v9, %v4584_v22  ;;  %v4586_v30 = vpop.f32.mrb[15].mxu1 }
 0xb80   :  { %v4612_v47 = vadd.f32 %v4608_v44, %v4586_v30 }
 0xb81   :  { %v4615_v62 = vmax.f32 %v4611_v32, 0.0 }
 0xb82   :  { %v4616_v50 = vmax.f32 %v4612_v47, 0.0  ;;  %v4590_v26 = vpop.f32.mrb[16].mxu1  ;;  %v4721_v47 = vld [vmem:[#allocation19] sm:$0xff] }
 0xb83   :  { %v4613_v7 = vadd.f32 %v4604_v9, %v4590_v26  ;;  %v4592_v55 = vpop.f32.mrb[17].mxu1 }
 0xb84   :  { %v4619_v0 = vmax.f32 %v4615_v62, %v4616_v50  ;;  %v4614_v38 = vadd.f32 %v4608_v44, %v4592_v55  ;;  %v4722_v62 = vld [vmem:[#allocation19 + $0x8] sm:$0xff] }
 0xb85   :  { %v4617_v35 = vmax.f32 %v4613_v7, 0.0 }
 0xb86   :  { %v4623_v43 = vcombine.high %v4619_v0, %v4619_v0  ;;  %v4630_v21 = vrot.slane %v4619_v0, %v8077_v24  ;;  %v4618_v56 = vmax.f32 %v4614_v38, 0.0 }
 0xb88   :  { %v4637_v11 = vrot.slane %v4623_v43, %v8077_v24  ;;  %v4638_v60 = vcombine.high %v4630_v21, %v4630_v21  ;;  %v4665_v13 = vsel %vm1279_vm1, %v4630_v21, -inf  ;;  %v4620_v61 = vmax.f32 %v4617_v35, %v4618_v56 }
 0xb89   :  { %v4666_v31 = vrot.slane %v4665_v13, 4  ;;  %v7223_v56 = vpack.c.bf16 %v4722_v62, %v4721_v47  ;;  %v5009_v62 = vld [vmem:[#allocation19 + $0x1f0] sm:$0xff] }
 0xb8a   :  { %v4639_v40 = vcombine.high %v4637_v11, %v4637_v11  ;;  %v4672_v1 = vsel %vm1279_vm1, %v4638_v60, -inf  ;;  %v4679_v5 = vsel %vm1279_vm1, %v4637_v11, -inf  ;;  %v4640_v14 = vcombine.high %v4620_v61, %v4620_v61 }
 0xb8b   :  { %v4667_v25 = vmax.f32 %v4665_v13, %v4666_v31  ;;  %v4673_v28 = vrot.slane %v4672_v1, 4  ;;  %v4680_v37 = vrot.slane %v4679_v5, 4  ;;  %v4647_v33 = vrot.slane %v4620_v61, %v8077_v24 }
 0xb8c   :  { %v4686_v36 = vsel %vm1279_vm1, %v4639_v40, -inf  ;;  %v4654_v23 = vrot.slane %v4640_v14, %v8077_v24  ;;  %v4723_v40 = vld [vmem:[#allocation19 + $0x10] sm:$0xff] }
 0xb8d   :  { %v4668_v51 = vrot.slane %v4667_v25, 2  ;;  %v4674_v52 = vmax.f32 %v4672_v1, %v4673_v28  ;;  %v4681_v57 = vmax.f32 %v4679_v5, %v4680_v37  ;;  %v4687_v54 = vrot.slane %v4686_v36, 4  ;;  %v4724_v1 = vld [vmem:[#allocation19 + $0x18] sm:$0xff] }
 0xb8e   :  { %v4655_v2 = vcombine.high %v4647_v33, %v4647_v33  ;;  %v4656_v6 = vcombine.high %v4654_v23, %v4654_v23  ;;  %v4693_v63 = vsel %vm1279_vm1, %v4647_v33, -inf  ;;  %v4707_v48 = vsel %vm1279_vm1, %v4654_v23, -inf  ;;  %v7442_v33 = vld [vmem:[#allocation3] sm:$0xff]  ;;  %v4726_v23 = vld [vmem:[#allocation19 + $0x28] sm:$0xff] }
 0xb8f   :  { %v4682_v53 = vrot.slane %v4681_v57, 2  ;;  %v4694_v12 = vrot.slane %v4693_v63, 4  ;;  %v4708_v18 = vrot.slane %v4707_v48, 4  ;;  %v4675_v45 = vrot.slane %v4674_v52, 2 }
 0xb90   :  { %v4700_v19 = vsel %vm1279_vm1, %v4655_v2, -inf  ;;  %v4714_v27 = vsel %vm1279_vm1, %v4656_v6, -inf  ;;  %v4669_v8 = vmax.f32 %v4667_v25, %v4668_v51  ;;  %v4688_v24 = vmax.f32 %v4686_v36, %v4687_v54  ;;  %v4725_v36 = vld [vmem:[#allocation19 + $0x20] sm:$0xff]  ;;  %v4730_v6 = vld [vmem:[#allocation19 + $0x48] sm:$0xff] }
 0xb91   :  { %v4683_v10 = vmax.f32 %v4681_v57, %v4682_v53  ;;  %v4695_v46 = vmax.f32 %v4693_v63, %v4694_v12  ;;  %v4701_v49 = vrot.slane %v4700_v19, 4  ;;  %v4709_v16 = vmax.f32 %v4707_v48, %v4708_v18  ;;  %v4728_v57 = vld [vmem:[#allocation19 + $0x38] sm:$0xff]  ;;  %v4729_v2 = vld [vmem:[#allocation19 + $0x40] sm:$0xff]  ;;  %v4731_v48 = vld [vmem:[#allocation19 + $0x50] sm:$0xff] }
 0xb92   :  { %v4715_v4 = vrot.slane %v4714_v27, 4  ;;  %v4689_v39 = vrot.slane %v4688_v24, 2  ;;  %v4676_v3 = vmax.f32 %v4674_v52, %v4675_v45  ;;  %v4670_v42 = vrot.slane %v4669_v8, 1  ;;  %v4727_v52 = vld [vmem:[#allocation19 + $0x30] sm:$0xff]  ;;  %v4732_v53 = vld [vmem:[#allocation19 + $0x58] sm:$0xff]  ;;  %v4733_v18 = vld [vmem:[#allocation19 + $0x60] sm:$0xff] }
 0xb93   :  { %v4696_v29 = vrot.slane %v4695_v46, 2  ;;  %v4702_v34 = vmax.f32 %v4700_v19, %v4701_v49  ;;  %v4710_v17 = vrot.slane %v4709_v16, 2  ;;  %v4684_v9 = vrot.slane %v4683_v10, 1  ;;  %v4734_v45 = vld [vmem:[#allocation19 + $0x68] sm:$0xff] }
 0xb94   :  { %v4690_v41 = vmax.f32 %v4688_v24, %v4689_v39  ;;  %v4716_v15 = vmax.f32 %v4714_v27, %v4715_v4  ;;  %v4677_v32 = vrot.slane %v4676_v3, 1  ;;  %v4671_v7 = vmax.f32 %v4669_v8, %v4670_v42  ;;  %v4735_v27 = vld [vmem:[#allocation19 + $0x70] sm:$0xff]  ;;  %v4736_v8 = vld [vmem:[#allocation19 + $0x78] sm:$0xff] }
 0xb95   :  { %v4711_v20 = vmax.f32 %v4709_v16, %v4710_v17  ;;  %v4703_v58 = vrot.slane %v4702_v34, 2  ;;  %v4697_v44 = vmax.f32 %v4695_v46, %v4696_v29  ;;  %v4685_v35 = vmax.f32 %v4683_v10, %v4684_v9  ;;  %v4995_v10 = vld [vmem:[#allocation19 + $0x180] sm:$0xff]  ;;  %v4996_v46 = vld [vmem:[#allocation19 + $0x188] sm:$0xff]  ;;  %v4997_v16 = vld [vmem:[#allocation19 + $0x190] sm:$0xff] }
 0xb96   :  { %v4717_v22 = vrot.slane %v4716_v15, 2  ;;  %v4691_v55 = vrot.slane %v4690_v41, 1  ;;  %v4678_v60 = vmax.f32 %v4676_v3, %v4677_v32  ;;  %v7226_v37 = vpack.c.bf16 %v4724_v1, %v4723_v40  ;;  %v4998_v4 = vld [vmem:[#allocation19 + $0x198] sm:$0xff]  ;;  %v4999_v29 = vld [vmem:[#allocation19 + $0x1a0] sm:$0xff]  ;;  %v5001_v3 = vld [vmem:[#allocation19 + $0x1b0] sm:$0xff] }
 0xb97   :  { %v4704_v30 = vmax.f32 %v4702_v34, %v4703_v58  ;;  %v4712_v50 = vrot.slane %v4711_v20, 1  ;;  %v4698_v26 = vrot.slane %v4697_v44, 1  ;;  %v7229_v51 = vpack.c.bf16 %v4726_v23, %v4725_v36  ;;  %v5000_v34 = vld [vmem:[#allocation19 + $0x1a8] sm:$0xff]  ;;  %v5002_v42 = vld [vmem:[#allocation19 + $0x1b8] sm:$0xff]  ;;  %v5005_v9 = vld [vmem:[#allocation19 + $0x1d0] sm:$0xff] }
 0xb98   :  { %v4718_v0 = vmax.f32 %v4716_v15, %v4717_v22  ;;  %v4692_v5 = vmax.f32 %v4690_v41, %v4691_v55  ;;  %v7232_v54 = vpack.c.bf16 %v4728_v57, %v4727_v52  ;;  %v7235_v63 = vpack.c.bf16 %v4730_v6, %v4729_v2  ;;  %v5003_v15 = vld [vmem:[#allocation19 + $0x1c0] sm:$0xff] }
 0xb99   :  { %v4705_v38 = vrot.slane %v4704_v30, 1  ;;  %v4713_v43 = vmax.f32 %v4711_v20, %v4712_v50  ;;  %v4699_v21 = vmax.f32 %v4697_v44, %v4698_v26  ;;  %v7238_v12 = vpack.c.bf16 %v4732_v53, %v4731_v48  ;;  %v5004_v20 = vld [vmem:[#allocation19 + $0x1c8] sm:$0xff]  ;;  %v5006_v44 = vld [vmem:[#allocation19 + $0x1d8] sm:$0xff]  ;;  %v5007_v32 = vld [vmem:[#allocation19 + $0x1e0] sm:$0xff] }
 0xb9a   :  { %v4719_v11 = vrot.slane %v4718_v0, 1  ;;  %v7241_v19 = vpack.c.bf16 %v4734_v45, %v4733_v18  ;;  %v7244_v24 = vpack.c.bf16 %v4736_v8, %v4735_v27  ;;  %v7271_v49 = vpack.c.bf16 %v4996_v46, %v4995_v10  ;;  %v5010_v50 = vld [vmem:[#allocation19 + $0x1f8] sm:$0xff] }
 0xb9b   :  { %v4706_v13 = vmax.f32 %v4704_v30, %v4705_v38  ;;  %v4921_v61 = vsel %vm1536_vm2, %v4713_v43, %v4685_v35  ;;  %v4830_v31 = vsel %vm1536_vm2, %v4699_v21, %v4671_v7  ;;  %v7274_v39 = vpack.c.bf16 %v4998_v4, %v4997_v16  ;;  %v5008_v30 = vld [vmem:[#allocation19 + $0x1e8] sm:$0xff] }
 0xb9c   :  { %6353 = vmatmul.mubr.f32.vlgmr.msra.gmra.mrb[18].mxu1 %v4921_v61  ;;  %v4720_v14 = vmax.f32 %v4718_v0, %v4719_v11  ;;  %v7277_v17 = vpack.c.bf16 %v5000_v34, %v4999_v29  ;;  %v7280_v41 = vpack.c.bf16 %v5002_v42, %v5001_v3  ;;  %v7283_v58 = vpack.c.bf16 %v5004_v20, %v5003_v15 }
 0xb9d   :  { %v4756_v25 = vsel %vm1536_vm2, %v4706_v13, %v4678_v60  ;;  %v7286_v22 = vpack.c.bf16 %v5006_v44, %v5005_v9  ;;  %v7289_v47 = vpack.c.bf16 %v5008_v30, %v5007_v32  ;;  %v7292_v26 = vpack.c.bf16 %v5010_v50, %v5009_v62  ;;  %v5167_v60 = vld [vmem:[%s8758_s14] ss:$0 sm:$0xff] }
 0xb9e   :  { %6283 = vmatmul.mubr.f32.vlgmr.msra.gmra.mrb[30].mxu0 %v4756_v25  ;;  %v8680_v28 = vsel %vm1536_vm2, %v4720_v14, %v4692_v5 }
 0xb9f   :  { %7224 = vmatpush3.bf16.msra.mxu0 %v7223_v56  ;;  %6317 = vmatprep.mubr.msk.f32.mxu0 %vm7691_vm9, %v7442_v33 }
 0xba0   :  { %7225 = vmatprep.subr.bf16.mxu0 %v7690_v59 }
 0xba3   :  { %7227 = vmatpush3.bf16.msra.mxu0 %v7226_v37 }
 0xba4   :  { %7228 = vmatprep.subr.bf16.mxu0 %v7690_v59 }
 0xba7   :  { %7230 = vmatpush3.bf16.msra.mxu0 %v7229_v51 }
 0xba8   :  { %7231 = vmatprep.subr.bf16.mxu0 %v7690_v59 }
 0xbab   :  { %7233 = vmatpush3.bf16.msra.mxu0 %v7232_v54 }
 0xbac   :  { %7234 = vmatprep.subr.bf16.mxu0 %v7690_v59 }
 0xbaf   :  { %7236 = vmatpush3.bf16.msra.mxu0 %v7235_v63 }
 0xbb0   :  { %7237 = vmatprep.subr.bf16.mxu0 %v7690_v59 }
 0xbb3   :  { %7239 = vmatpush3.bf16.msra.mxu0 %v7238_v12 }
 0xbb4   :  { %7240 = vmatprep.subr.bf16.mxu0 %v7690_v59 }
 0xbb7   :  { %7242 = vmatpush3.bf16.msra.mxu0 %v7241_v19 }
 0xbb8   :  { %7243 = vmatprep.subr.bf16.mxu0 %v7690_v59 }
 0xbbb   :  { %7245 = vmatpush3.bf16.msra.mxu0 %v7244_v24 }
 0xbbc   :  { %7270 = vmatprep.subr.bf16.mxu0 %v7690_v59 }
 0xbbe   :  { %6318 = vmatmul.mubr.f32.vlgmr.msra.gmra.mrb[32].mxu0 %v4830_v31 }
 0xbbf   :  { %7272 = vmatpush3.bf16.msra.mxu0 %v7271_v49  ;;  %6387 = vmatprep.mubr.msk.f32.mxu0 %vm7691_vm9, %v7442_v33 }
 0xbc0   :  { %7273 = vmatprep.subr.bf16.mxu0 %v7690_v59 }
 0xbc3   :  { %7275 = vmatpush3.bf16.msra.mxu0 %v7274_v39 }
 0xbc4   :  { %7276 = vmatprep.subr.bf16.mxu0 %v7690_v59 }
 0xbc7   :  { %7278 = vmatpush3.bf16.msra.mxu0 %v7277_v17 }
 0xbc8   :  { %7279 = vmatprep.subr.bf16.mxu0 %v7690_v59 }
 0xbcb   :  { %7281 = vmatpush3.bf16.msra.mxu0 %v7280_v41 }
 0xbcc   :  { %7282 = vmatprep.subr.bf16.mxu0 %v7690_v59 }
 0xbcf   :  { %7284 = vmatpush3.bf16.msra.mxu0 %v7283_v58 }
 0xbd0   :  { %7285 = vmatprep.subr.bf16.mxu0 %v7690_v59 }
 0xbd3   :  { %7287 = vmatpush3.bf16.msra.mxu0 %v7286_v22 }
 0xbd4   :  { %7288 = vmatprep.subr.bf16.mxu0 %v7690_v59 }
 0xbd7   :  { %7290 = vmatpush3.bf16.msra.mxu0 %v7289_v47 }
 0xbd8   :  { %7291 = vmatprep.subr.bf16.mxu0 %v7690_v59 }
 0xbdb   :  { %7293 = vmatpush3.bf16.msra.mxu0 %v7292_v26 }
 0xbde   :  { %6388 = vmatmul.mubr.f32.vlgmr.msra.gmra.mrb[34].mxu0 %v8680_v28 }
 0xc6f   :  { %v4989_v7 = vpop.f32.mrb[18].mxu1 }
 0xc70   :  { %v6354_v55 = vpop.f32.mrb[19].mxu1 }
 0xc71   :  { %v4824_v0 = vpop.f32.mrb[30].mxu0 }
 0xc72   :  { %v6284_v38 = vpop.f32.mrb[31].mxu0 }
 0xc91   :  { %v4898_v35 = vpop.f32.mrb[32].mxu0 }
 0xc92   :  { %v4899_v43 = vadd.f32 %v4898_v35, %v4824_v0  ;;  %v6319_v21 = vpop.f32.mrb[33].mxu0 }
 0xc94   :  { %v4993_v56 = vadd.f32 %v4989_v7, %v4899_v43 }
 0xcb1   :  { %v5081_v11 = vpop.f32.mrb[34].mxu0 }
 0xcb2   :  { %v5085_v13 = vadd.f32 %v5081_v11, %v4993_v56  ;;  %v6389_v61 = vpop.f32.mrb[35].mxu0 }
 0xcb4   :  { %v5093_v59 = vadd.f32 %v5167_v60, %v5085_v13 }
 0xcb6   :  { %v5094_v31 = vmax.f32 %v5093_v59, 0.0 }
 0xcb8   :  { %5095 = vst [vmem:[#allocation20] sm:$0x3] %v5094_v31 }
 0xcb9   :  { %7652 = shalt.err (!%p7649_p6)
}
 0xcba   :  { %s8759_s1 = sld [smem:[#allocation35_spill]] }
 0xcc0   :  { %s7653_s24 = scalar_lea.hbm %s8759_s1, 32 }
 0xcc1   :  { %p7654_p7 = scmp.ne.s32.totalorder %s8759_s1, %s7653_s24  ;;  %p7657_p8 = scmp.lt.u32.totalorder %s7653_s24, %s8759_s1 }
 0xcc3   :  { %p7659_p9 = pnand %p7657_p8, %p7654_p7 }
 0xcc5   :  { %7662 = shalt.err (!%p7659_p9)
}
 0xcc6   :  { %5105 = dma.vmem_to_hbm [thread:$0]  %s5103_s11, 32, %s8759_s1, [#allocation7]  }
 0xcc7   :  { %7673 = dma.done.wait [#allocation7], 32  }
 0xcc8   :  { %7674 = vsyncadd [#allocation7], 4294967264 }
 0xcc9   :  { %5109 = vsyncpa [#allocation6], 1 }
 0xcca   :  { %5110 = vsyncpa [#allocation9], 1 }
 0xccb   :  { %5111 = vsyncpa [#allocation12], 1 }
 0xccc   :  { %5112 = vsyncpa [#allocation15], 1 }
 0xccd   :  { %5113 = vsyncpa [#allocation18], 1 }
 0xcce   :  { %5114 = vsyncpa [#allocation7], 1 }

</bundles_post_ra>
